<compile_context>
chip_gen: v7x
topology: tpu7x:2x2x1
jax: 0.10.0
libtpu: 0.0.40
codegen_flags: <defaults>
</compile_context>

<pallas_src>
import numpy as np
import jax
import jax.numpy as jnp
from jax.experimental import pallas as pl
from jax.experimental.pallas import tpu as pltpu

LN_EPS = 1e-5
LANE = 128
SUBLANE_BF16 = 16            # bf16 packs 16 sublanes per (16,128) vreg tile
DEFAULT_BATCH_TILE = 1024    # sweep point 256/512/1024; working set stays tiny


def _layernorm(x, gamma, beta):
    # x: (TB, D) f32, gamma/beta: (1, D) f32. Biased variance, eps inside
    # rsqrt -> matches torch.nn.LayerNorm. D is the *true* feature width
    # (hidden dims are not padded), so the statistics are exact.
    mean = jnp.mean(x, axis=-1, keepdims=True)
    xc = x - mean
    var = jnp.mean(xc * xc, axis=-1, keepdims=True)
    inv = jax.lax.rsqrt(var + LN_EPS)
    return xc * inv * gamma + beta


def actor_kernel(x_ref,
                 w1_ref, b1_ref, g1_ref, be1_ref,
                 w2_ref, b2_ref, g2_ref, be2_ref,
                 wmu_ref, bmu_ref,
                 out_ref):
    # bf16 MXU inputs with f32 accumulation; elementwise path stays f32.
    x = x_ref[...]                                            # (tb, d_in) bf16

    # fc1 -> LayerNorm -> ReLU      (weights already (in, out): no transpose)
    h1 = jnp.dot(x, w1_ref[...], preferred_element_type=jnp.float32) + b1_ref[...]
    h1 = jnp.maximum(_layernorm(h1, g1_ref[...], be1_ref[...]), 0.0)

    # fc2 -> LayerNorm -> ReLU
    h2 = jnp.dot(h1.astype(jnp.bfloat16), w2_ref[...],
                 preferred_element_type=jnp.float32) + b2_ref[...]
    h2 = jnp.maximum(_layernorm(h2, g2_ref[...], be2_ref[...]), 0.0)

    # mu -> tanh  (lane-padded output width; pad columns are zero weights/bias)
    a = jnp.dot(h2.astype(jnp.bfloat16), wmu_ref[...],
                preferred_element_type=jnp.float32) + bmu_ref[...]
    out_ref[...] = jnp.tanh(a).astype(out_ref.dtype)          # bf16 writeback


def prepare_params(params):
    """One-time host-side repack of PyTorch-layout params for the kernel.

    - weights transposed to (in, out) so the kernel never materializes `.T`
    - matmul weights cast to bf16 (kernel accumulates in f32)
    - mu weight/bias zero-padded to a lane-dense (multiple-of-128) width
    """
    n_actions = params["wmu"].shape[0]
    n_pad = ((n_actions + LANE - 1) // LANE) * LANE
    wmu_t = jnp.zeros((params["wmu"].shape[1], n_pad), jnp.bfloat16)
    wmu_t = wmu_t.at[:, :n_actions].set(params["wmu"].T.astype(jnp.bfloat16))
    bmu = jnp.zeros((1, n_pad), jnp.float32).at[:, :n_actions].set(params["bmu"])
    return {
        "w1": params["w1"].T.astype(jnp.bfloat16),   # (in,  fc1)
        "b1": params["b1"].astype(jnp.float32),
        "g1": params["g1"].astype(jnp.float32),
        "be1": params["be1"].astype(jnp.float32),
        "w2": params["w2"].T.astype(jnp.bfloat16),   # (fc1, fc2)
        "b2": params["b2"].astype(jnp.float32),
        "g2": params["g2"].astype(jnp.float32),
        "be2": params["be2"].astype(jnp.float32),
        "wmu": wmu_t,                                # (fc2, n_pad)
        "bmu": bmu,                                  # (1,   n_pad)
        "n_actions": n_actions,
    }


def _choose_batch_tile(B, batch_tile):
    """Pick (tile_rows, padded_batch, grid_steps).

    Overhead-bound workload -> fewest, largest grid steps.  A batch that fits
    one tile uses a single step with block == full array (no batch padding at
    all); batches in [512, batch_tile] that are 32-row aligned split into two
    sublane-aligned tiles so v7x can shard the "parallel" axis across its two
    TensorCores.  Larger batches use batch_tile-row tiles (>= 2 steps).
    """
    batch_tile = max(SUBLANE_BF16, (batch_tile // SUBLANE_BF16) * SUBLANE_BF16)
    if B <= batch_tile:
        if B >= 512 and B % (2 * SUBLANE_BF16) == 0:
            return B // 2, B, 2                      # 2 steps -> v7x megacore
        return B, B, 1                               # single step, no padding
    b_pad = pl.cdiv(B, batch_tile) * batch_tile
    return batch_tile, b_pad, b_pad // batch_tile


def actor_forward(state, prep, *, batch_tile=DEFAULT_BATCH_TILE):
    B, d_in = state.shape
    fc1 = prep["w1"].shape[1]
    fc2 = prep["w2"].shape[1]
    n_pad = prep["wmu"].shape[1]
    n_actions = prep["n_actions"]

    tb, b_pad, n_steps = _choose_batch_tile(B, batch_tile)

    # bf16 input DMA: x is only ever an MXU operand, so no accuracy change.
    x = state.astype(jnp.bfloat16)
    if b_pad != B:
        x = jnp.pad(x, ((0, b_pad - B), (0, 0)))

    weight_args = (prep["w1"], prep["b1"], prep["g1"], prep["be1"],
                   prep["w2"], prep["b2"], prep["g2"], prep["be2"],
                   prep["wmu"], prep["bmu"])

    # Advisory cost estimate (true n_actions, not the 128-lane pad).
    flops = 2 * b_pad * (d_in * fc1 + fc1 * fc2 + fc2 * n_actions)
    transcendentals = b_pad * (n_actions + 2)        # tanh + 2 rsqrt per row
    bytes_accessed = (2 * b_pad * d_in + 2 * b_pad * n_pad
                      + sum(int(np.prod(w.shape)) * w.dtype.itemsize
                            for w in weight_args))

    common = dict(
        out_shape=jax.ShapeDtypeStruct((b_pad, n_pad), jnp.bfloat16),
        grid=(n_steps,),
        out_specs=pl.BlockSpec((tb, n_pad), lambda i: (i, 0)),
        compiler_params=pltpu.CompilerParams(
            dimension_semantics=("parallel",),
            vmem_limit_bytes=64 * 1024 * 1024),
        cost_estimate=pl.CostEstimate(
            flops=flops, transcendentals=transcendentals,
            bytes_accessed=bytes_accessed),
    )
    x_spec = pl.BlockSpec((tb, d_in), lambda i: (i, 0))
    resident = lambda i: (0, 0)   # weights: same block every step -> VMEM-resident

    try:
        # Weights are fetched once; single-buffer them to halve their VMEM
        # footprint (they never need the pipeline's default double buffer).
        weight_specs = [pl.BlockSpec(w.shape, resident,
                                     pipeline_mode=pl.Buffered(1))
                        for w in weight_args]
        out = pl.pallas_call(actor_kernel, in_specs=[x_spec] + weight_specs,
                             **common)(x, *weight_args)
    except Exception:
        # Fallback for jax versions without per-operand pipeline buffering.
        weight_specs = [pl.BlockSpec(w.shape, resident) for w in weight_args]
        out = pl.pallas_call(actor_kernel, in_specs=[x_spec] + weight_specs,
                             **common)(x, *weight_args)

    # Strip batch padding (if any) and the lane padding of the action dim.
    return out[:B, :n_actions]


def init_params(key, input_dim, fc1_dims, fc2_dims, n_actions):
    """Deterministic init mirroring ActorNetwork._initialize_weights
    (PyTorch-style (out, in) weight layout; f1/f2 use weight.size()[0])."""
    k = jax.random.split(key, 6)
    f1 = 1.0 / np.sqrt(fc1_dims)
    f2 = 1.0 / np.sqrt(fc2_dims)
    f3 = 0.003
    u = lambda kk, shp, f: jax.random.uniform(kk, shp, jnp.float32, -f, f)
    return {
        "w1": u(k[0], (fc1_dims, input_dim), f1),
        "b1": u(k[1], (1, fc1_dims), f1),
        "g1": jnp.ones((1, fc1_dims), jnp.float32),    # LayerNorm weight
        "be1": jnp.zeros((1, fc1_dims), jnp.float32),  # LayerNorm bias
        "w2": u(k[2], (fc2_dims, fc1_dims), f2),
        "b2": u(k[3], (1, fc2_dims), f2),
        "g2": jnp.ones((1, fc2_dims), jnp.float32),
        "be2": jnp.zeros((1, fc2_dims), jnp.float32),
        "wmu": u(k[4], (n_actions, fc2_dims), f3),
        "bmu": u(k[5], (1, n_actions), f3),
    }


def actor_forward_ref(state, p):
    """Pure-JAX f32 reference with PyTorch-layout params."""
    def ln(x, g, b):
        m = jnp.mean(x, -1, keepdims=True)
        v = jnp.mean((x - m) ** 2, -1, keepdims=True)
        return (x - m) * jax.lax.rsqrt(v + LN_EPS) * g + b
    h1 = jnp.maximum(ln(state @ p["w1"].T + p["b1"], p["g1"], p["be1"]), 0.0)
    h2 = jnp.maximum(ln(h1 @ p["w2"].T + p["b2"], p["g2"], p["be2"]), 0.0)
    return jnp.tanh(h2 @ p["wmu"].T + p["bmu"])


def _check(out, ref):
    # bf16 MXU inputs + bf16 output vs the f32 reference.
    np.testing.assert_allclose(np.asarray(out.astype(jnp.float32)),
                               np.asarray(ref), atol=2e-2, rtol=2e-2)


if __name__ == "__main__":
    IN_DIM, FC1, FC2, N_ACT = 16, 64, 32, 4

    key = jax.random.PRNGKey(0)
    k_state, k_params = jax.random.split(key)
    params = init_params(k_params, IN_DIM, FC1, FC2, N_ACT)
    prep = prepare_params(params)

    # Path 1: batch fits one tile -> single grid step, no batch padding.
    state = jax.random.normal(k_state, (200, IN_DIM), jnp.float32)
    out = jax.block_until_ready(actor_forward(state, prep))
    assert out.shape == (200, N_ACT)
    _check(out, actor_forward_ref(state, params))

    # Path 2: 32-aligned batch >= 512 -> two tiles (v7x megacore split).
    state2 = jax.random.normal(jax.random.PRNGKey(1), (512, IN_DIM), jnp.float32)
    out2 = jax.block_until_ready(actor_forward(state2, prep))
    assert out2.shape == (512, N_ACT)
    _check(out2, actor_forward_ref(state2, params))

    print("KERNEL_OK")
</pallas_src>

<mosaic_0001>
module attributes {stable_mosaic.version = 11 : i64} {
  func.func @actor_kernel(%arg0: i32, %arg1: memref<200x16xbf16, #tpu.memory_space<vmem>>, %arg2: memref<16x64xbf16, #tpu.memory_space<vmem>>, %arg3: memref<1x64xf32, #tpu.memory_space<vmem>>, %arg4: memref<1x64xf32, #tpu.memory_space<vmem>>, %arg5: memref<1x64xf32, #tpu.memory_space<vmem>>, %arg6: memref<64x32xbf16, #tpu.memory_space<vmem>>, %arg7: memref<1x32xf32, #tpu.memory_space<vmem>>, %arg8: memref<1x32xf32, #tpu.memory_space<vmem>>, %arg9: memref<1x32xf32, #tpu.memory_space<vmem>>, %arg10: memref<32x128xbf16, #tpu.memory_space<vmem>>, %arg11: memref<1x128xf32, #tpu.memory_space<vmem>>, %arg12: memref<200x128xbf16, #tpu.memory_space<vmem>>) attributes {dimension_semantics = [#tpu.dimension_semantics<parallel>], iteration_bounds = array<i64: 1>, scalar_prefetch = 0 : i64, scratch_operands = 0 : i64, tpu.core_type = #tpu.core_type<tc>, window_params = [{transform_indices = @transform_0, window_bounds = array<i64: 200, 16>}, {pipeline_mode = #tpu.pipeline_mode<synchronous>, transform_indices = @transform_1, window_bounds = array<i64: 16, 64>}, {pipeline_mode = #tpu.pipeline_mode<synchronous>, transform_indices = @transform_2, window_bounds = array<i64: 1, 64>}, {pipeline_mode = #tpu.pipeline_mode<synchronous>, transform_indices = @transform_3, window_bounds = array<i64: 1, 64>}, {pipeline_mode = #tpu.pipeline_mode<synchronous>, transform_indices = @transform_4, window_bounds = array<i64: 1, 64>}, {pipeline_mode = #tpu.pipeline_mode<synchronous>, transform_indices = @transform_5, window_bounds = array<i64: 64, 32>}, {pipeline_mode = #tpu.pipeline_mode<synchronous>, transform_indices = @transform_6, window_bounds = array<i64: 1, 32>}, {pipeline_mode = #tpu.pipeline_mode<synchronous>, transform_indices = @transform_7, window_bounds = array<i64: 1, 32>}, {pipeline_mode = #tpu.pipeline_mode<synchronous>, transform_indices = @transform_8, window_bounds = array<i64: 1, 32>}, {pipeline_mode = #tpu.pipeline_mode<synchronous>, transform_indices = @transform_9, window_bounds = array<i64: 32, 128>}, {pipeline_mode = #tpu.pipeline_mode<synchronous>, transform_indices = @transform_10, window_bounds = array<i64: 1, 128>}, {transform_indices = @transform_11, window_bounds = array<i64: 200, 128>}]} {
    %c0 = arith.constant 0 : index
    %c0_0 = arith.constant 0 : index
    %0 = vector.load %arg1[%c0, %c0_0] : memref<200x16xbf16, #tpu.memory_space<vmem>>, vector<200x16xbf16>
    %c0_1 = arith.constant 0 : index
    %c0_2 = arith.constant 0 : index
    %1 = vector.load %arg2[%c0_1, %c0_2] : memref<16x64xbf16, #tpu.memory_space<vmem>>, vector<16x64xbf16>
    %cst = arith.constant dense<0.000000e+00> : vector<200x64xf32>
    %2 = tpu.matmul %0, %1, %cst {dimension_numbers = #tpu.dot_dimension_numbers<[1], [0], [0], [1], [0, 0, 1, 1], [], []>} : vector<200x16xbf16>, vector<16x64xbf16>, vector<200x64xf32> -> vector<200x64xf32>
    %c0_3 = arith.constant 0 : index
    %c0_4 = arith.constant 0 : index
    %3 = vector.load %arg3[%c0_3, %c0_4] : memref<1x64xf32, #tpu.memory_space<vmem>>, vector<1x64xf32>
    %4 = vector.broadcast %3 : vector<1x64xf32> to vector<200x64xf32>
    %5 = arith.addf %2, %4 : vector<200x64xf32>
    %c0_5 = arith.constant 0 : index
    %c0_6 = arith.constant 0 : index
    %6 = vector.load %arg4[%c0_5, %c0_6] : memref<1x64xf32, #tpu.memory_space<vmem>>, vector<1x64xf32>
    %c0_7 = arith.constant 0 : index
    %c0_8 = arith.constant 0 : index
    %7 = vector.load %arg5[%c0_7, %c0_8] : memref<1x64xf32, #tpu.memory_space<vmem>>, vector<1x64xf32>
    %cst_9 = arith.constant dense<0.000000e+00> : vector<200xf32>
    %8 = vector.multi_reduction <add>, %5, %cst_9 [1] : vector<200x64xf32> to vector<200xf32>
    %9 = vector.shape_cast %8 : vector<200xf32> to vector<200x1xf32>
    %cst_10 = arith.constant 6.400000e+01 : f32
    %10 = vector.broadcast %cst_10 : f32 to vector<200x1xf32>
    %11 = arith.divf %9, %10 : vector<200x1xf32>
    %12 = vector.broadcast %11 : vector<200x1xf32> to vector<200x64xf32>
    %13 = arith.subf %5, %12 : vector<200x64xf32>
    %14 = arith.mulf %13, %13 : vector<200x64xf32>
    %cst_11 = arith.constant dense<0.000000e+00> : vector<200xf32>
    %15 = vector.multi_reduction <add>, %14, %cst_11 [1] : vector<200x64xf32> to vector<200xf32>
    %16 = vector.shape_cast %15 : vector<200xf32> to vector<200x1xf32>
    %cst_12 = arith.constant 6.400000e+01 : f32
    %17 = vector.broadcast %cst_12 : f32 to vector<200x1xf32>
    %18 = arith.divf %16, %17 : vector<200x1xf32>
    %cst_13 = arith.constant 9.99999974E-6 : f32
    %19 = vector.broadcast %cst_13 : f32 to vector<200x1xf32>
    %20 = arith.addf %18, %19 : vector<200x1xf32>
    %21 = math.rsqrt %20 : vector<200x1xf32>
    %22 = vector.broadcast %21 : vector<200x1xf32> to vector<200x64xf32>
    %23 = arith.mulf %13, %22 : vector<200x64xf32>
    %24 = vector.broadcast %6 : vector<1x64xf32> to vector<200x64xf32>
    %25 = arith.mulf %23, %24 : vector<200x64xf32>
    %26 = vector.broadcast %7 : vector<1x64xf32> to vector<200x64xf32>
    %27 = arith.addf %25, %26 : vector<200x64xf32>
    %cst_14 = arith.constant 0.000000e+00 : f32
    %28 = vector.broadcast %cst_14 : f32 to vector<200x64xf32>
    %29 = arith.maximumf %27, %28 : vector<200x64xf32>
    %30 = arith.truncf %29 : vector<200x64xf32> to vector<200x64xbf16>
    %c0_15 = arith.constant 0 : index
    %c0_16 = arith.constant 0 : index
    %31 = vector.load %arg6[%c0_15, %c0_16] : memref<64x32xbf16, #tpu.memory_space<vmem>>, vector<64x32xbf16>
    %cst_17 = arith.constant dense<0.000000e+00> : vector<200x32xf32>
    %32 = tpu.matmul %30, %31, %cst_17 {dimension_numbers = #tpu.dot_dimension_numbers<[1], [0], [0], [1], [0, 0, 1, 1], [], []>} : vector<200x64xbf16>, vector<64x32xbf16>, vector<200x32xf32> -> vector<200x32xf32>
    %c0_18 = arith.constant 0 : index
    %c0_19 = arith.constant 0 : index
    %33 = vector.load %arg7[%c0_18, %c0_19] : memref<1x32xf32, #tpu.memory_space<vmem>>, vector<1x32xf32>
    %34 = vector.broadcast %33 : vector<1x32xf32> to vector<200x32xf32>
    %35 = arith.addf %32, %34 : vector<200x32xf32>
    %c0_20 = arith.constant 0 : index
    %c0_21 = arith.constant 0 : index
    %36 = vector.load %arg8[%c0_20, %c0_21] : memref<1x32xf32, #tpu.memory_space<vmem>>, vector<1x32xf32>
    %c0_22 = arith.constant 0 : index
    %c0_23 = arith.constant 0 : index
    %37 = vector.load %arg9[%c0_22, %c0_23] : memref<1x32xf32, #tpu.memory_space<vmem>>, vector<1x32xf32>
    %cst_24 = arith.constant dense<0.000000e+00> : vector<200xf32>
    %38 = vector.multi_reduction <add>, %35, %cst_24 [1] : vector<200x32xf32> to vector<200xf32>
    %39 = vector.shape_cast %38 : vector<200xf32> to vector<200x1xf32>
    %cst_25 = arith.constant 3.200000e+01 : f32
    %40 = vector.broadcast %cst_25 : f32 to vector<200x1xf32>
    %41 = arith.divf %39, %40 : vector<200x1xf32>
    %42 = vector.broadcast %41 : vector<200x1xf32> to vector<200x32xf32>
    %43 = arith.subf %35, %42 : vector<200x32xf32>
    %44 = arith.mulf %43, %43 : vector<200x32xf32>
    %cst_26 = arith.constant dense<0.000000e+00> : vector<200xf32>
    %45 = vector.multi_reduction <add>, %44, %cst_26 [1] : vector<200x32xf32> to vector<200xf32>
    %46 = vector.shape_cast %45 : vector<200xf32> to vector<200x1xf32>
    %cst_27 = arith.constant 3.200000e+01 : f32
    %47 = vector.broadcast %cst_27 : f32 to vector<200x1xf32>
    %48 = arith.divf %46, %47 : vector<200x1xf32>
    %cst_28 = arith.constant 9.99999974E-6 : f32
    %49 = vector.broadcast %cst_28 : f32 to vector<200x1xf32>
    %50 = arith.addf %48, %49 : vector<200x1xf32>
    %51 = math.rsqrt %50 : vector<200x1xf32>
    %52 = vector.broadcast %51 : vector<200x1xf32> to vector<200x32xf32>
    %53 = arith.mulf %43, %52 : vector<200x32xf32>
    %54 = vector.broadcast %36 : vector<1x32xf32> to vector<200x32xf32>
    %55 = arith.mulf %53, %54 : vector<200x32xf32>
    %56 = vector.broadcast %37 : vector<1x32xf32> to vector<200x32xf32>
    %57 = arith.addf %55, %56 : vector<200x32xf32>
    %cst_29 = arith.constant 0.000000e+00 : f32
    %58 = vector.broadcast %cst_29 : f32 to vector<200x32xf32>
    %59 = arith.maximumf %57, %58 : vector<200x32xf32>
    %60 = arith.truncf %59 : vector<200x32xf32> to vector<200x32xbf16>
    %c0_30 = arith.constant 0 : index
    %c0_31 = arith.constant 0 : index
    %61 = vector.load %arg10[%c0_30, %c0_31] : memref<32x128xbf16, #tpu.memory_space<vmem>>, vector<32x128xbf16>
    %cst_32 = arith.constant dense<0.000000e+00> : vector<200x128xf32>
    %62 = tpu.matmul %60, %61, %cst_32 {dimension_numbers = #tpu.dot_dimension_numbers<[1], [0], [0], [1], [0, 0, 1, 1], [], []>} : vector<200x32xbf16>, vector<32x128xbf16>, vector<200x128xf32> -> vector<200x128xf32>
    %c0_33 = arith.constant 0 : index
    %c0_34 = arith.constant 0 : index
    %63 = vector.load %arg11[%c0_33, %c0_34] : memref<1x128xf32, #tpu.memory_space<vmem>>, vector<1x128xf32>
    %64 = vector.broadcast %63 : vector<1x128xf32> to vector<200x128xf32>
    %65 = arith.addf %62, %64 : vector<200x128xf32>
    %66 = math.tanh %65 : vector<200x128xf32>
    %67 = arith.truncf %66 : vector<200x128xf32> to vector<200x128xbf16>
    %c0_35 = arith.constant 0 : index
    %c0_36 = arith.constant 0 : index
    %68 = vector.load %arg12[%c0_35, %c0_36] : memref<200x128xbf16, #tpu.memory_space<vmem>>, vector<200x128xbf16>
    tpu.vector_store %arg12[%c0_35, %c0_36], %67 {strides = array<i32>} : memref<200x128xbf16, #tpu.memory_space<vmem>>, vector<200x128xbf16>,
    return
  }
  func.func @transform_0(%arg0: i32) -> (i32, i32) {
    %c0_i32 = arith.constant 0 : i32
    %c0_i32_0 = arith.constant 0 : i32
    return %arg0, %c0_i32 : i32, i32
  }
  func.func @transform_1(%arg0: i32) -> (i32, i32) {
    %c0_i32 = arith.constant 0 : i32
    %c0_i32_0 = arith.constant 0 : i32
    %c0_i32_1 = arith.constant 0 : i32
    return %c0_i32, %c0_i32_0 : i32, i32
  }
  func.func @transform_2(%arg0: i32) -> (i32, i32) {
    %c0_i32 = arith.constant 0 : i32
    %c0_i32_0 = arith.constant 0 : i32
    %c0_i32_1 = arith.constant 0 : i32
    return %c0_i32, %c0_i32_0 : i32, i32
  }
  func.func @transform_3(%arg0: i32) -> (i32, i32) {
    %c0_i32 = arith.constant 0 : i32
    %c0_i32_0 = arith.constant 0 : i32
    %c0_i32_1 = arith.constant 0 : i32
    return %c0_i32, %c0_i32_0 : i32, i32
  }
  func.func @transform_4(%arg0: i32) -> (i32, i32) {
    %c0_i32 = arith.constant 0 : i32
    %c0_i32_0 = arith.constant 0 : i32
    %c0_i32_1 = arith.constant 0 : i32
    return %c0_i32, %c0_i32_0 : i32, i32
  }
  func.func @transform_5(%arg0: i32) -> (i32, i32) {
    %c0_i32 = arith.constant 0 : i32
    %c0_i32_0 = arith.constant 0 : i32
    %c0_i32_1 = arith.constant 0 : i32
    return %c0_i32, %c0_i32_0 : i32, i32
  }
  func.func @transform_6(%arg0: i32) -> (i32, i32) {
    %c0_i32 = arith.constant 0 : i32
    %c0_i32_0 = arith.constant 0 : i32
    %c0_i32_1 = arith.constant 0 : i32
    return %c0_i32, %c0_i32_0 : i32, i32
  }
  func.func @transform_7(%arg0: i32) -> (i32, i32) {
    %c0_i32 = arith.constant 0 : i32
    %c0_i32_0 = arith.constant 0 : i32
    %c0_i32_1 = arith.constant 0 : i32
    return %c0_i32, %c0_i32_0 : i32, i32
  }
  func.func @transform_8(%arg0: i32) -> (i32, i32) {
    %c0_i32 = arith.constant 0 : i32
    %c0_i32_0 = arith.constant 0 : i32
    %c0_i32_1 = arith.constant 0 : i32
    return %c0_i32, %c0_i32_0 : i32, i32
  }
  func.func @transform_9(%arg0: i32) -> (i32, i32) {
    %c0_i32 = arith.constant 0 : i32
    %c0_i32_0 = arith.constant 0 : i32
    %c0_i32_1 = arith.constant 0 : i32
    return %c0_i32, %c0_i32_0 : i32, i32
  }
  func.func @transform_10(%arg0: i32) -> (i32, i32) {
    %c0_i32 = arith.constant 0 : i32
    %c0_i32_0 = arith.constant 0 : i32
    %c0_i32_1 = arith.constant 0 : i32
    return %c0_i32, %c0_i32_0 : i32, i32
  }
  func.func @transform_11(%arg0: i32) -> (i32, i32) {
    %c0_i32 = arith.constant 0 : i32
    %c0_i32_0 = arith.constant 0 : i32
    return %arg0, %c0_i32 : i32, i32
  }
}

module attributes {stable_mosaic.version = 11 : i64} {
  func.func @actor_kernel(%arg0: i32, %arg1: memref<200x16xbf16, #tpu.memory_space<vmem>>, %arg2: memref<16x64xbf16, #tpu.memory_space<vmem>>, %arg3: memref<1x64xf32, #tpu.memory_space<vmem>>, %arg4: memref<1x64xf32, #tpu.memory_space<vmem>>, %arg5: memref<1x64xf32, #tpu.memory_space<vmem>>, %arg6: memref<64x32xbf16, #tpu.memory_space<vmem>>, %arg7: memref<1x32xf32, #tpu.memory_space<vmem>>, %arg8: memref<1x32xf32, #tpu.memory_space<vmem>>, %arg9: memref<1x32xf32, #tpu.memory_space<vmem>>, %arg10: memref<32x128xbf16, #tpu.memory_space<vmem>>, %arg11: memref<1x128xf32, #tpu.memory_space<vmem>>, %arg12: memref<200x128xbf16, #tpu.memory_space<vmem>>) attributes {dimension_semantics = [#tpu.dimension_semantics<parallel>], iteration_bounds = array<i64: 1>, scalar_prefetch = 0 : i64, scratch_operands = 0 : i64, tpu.core_type = #tpu.core_type<tc>, window_params = [{transform_indices = @transform_0, window_bounds = array<i64: 200, 16>}, {pipeline_mode = #tpu.pipeline_mode<synchronous>, transform_indices = @transform_1, window_bounds = array<i64: 16, 64>}, {pipeline_mode = #tpu.pipeline_mode<synchronous>, transform_indices = @transform_2, window_bounds = array<i64: 1, 64>}, {pipeline_mode = #tpu.pipeline_mode<synchronous>, transform_indices = @transform_3, window_bounds = array<i64: 1, 64>}, {pipeline_mode = #tpu.pipeline_mode<synchronous>, transform_indices = @transform_4, window_bounds = array<i64: 1, 64>}, {pipeline_mode = #tpu.pipeline_mode<synchronous>, transform_indices = @transform_5, window_bounds = array<i64: 64, 32>}, {pipeline_mode = #tpu.pipeline_mode<synchronous>, transform_indices = @transform_6, window_bounds = array<i64: 1, 32>}, {pipeline_mode = #tpu.pipeline_mode<synchronous>, transform_indices = @transform_7, window_bounds = array<i64: 1, 32>}, {pipeline_mode = #tpu.pipeline_mode<synchronous>, transform_indices = @transform_8, window_bounds = array<i64: 1, 32>}, {pipeline_mode = #tpu.pipeline_mode<synchronous>, transform_indices = @transform_9, window_bounds = array<i64: 32, 128>}, {pipeline_mode = #tpu.pipeline_mode<synchronous>, transform_indices = @transform_10, window_bounds = array<i64: 1, 128>}, {transform_indices = @transform_11, window_bounds = array<i64: 200, 128>}]} {
    %c0 = arith.constant 0 : index
    %c0_0 = arith.constant 0 : index
    %0 = vector.load %arg1[%c0, %c0_0] : memref<200x16xbf16, #tpu.memory_space<vmem>>, vector<200x16xbf16>
    %c0_1 = arith.constant 0 : index
    %c0_2 = arith.constant 0 : index
    %1 = vector.load %arg2[%c0_1, %c0_2] : memref<16x64xbf16, #tpu.memory_space<vmem>>, vector<16x64xbf16>
    %cst = arith.constant dense<0.000000e+00> : vector<200x64xf32>
    %2 = tpu.matmul %0, %1, %cst {dimension_numbers = #tpu.dot_dimension_numbers<[1], [0], [0], [1], [0, 0, 1, 1], [], []>} : vector<200x16xbf16>, vector<16x64xbf16>, vector<200x64xf32> -> vector<200x64xf32>
    %c0_3 = arith.constant 0 : index
    %c0_4 = arith.constant 0 : index
    %3 = vector.load %arg3[%c0_3, %c0_4] : memref<1x64xf32, #tpu.memory_space<vmem>>, vector<1x64xf32>
    %4 = vector.broadcast %3 : vector<1x64xf32> to vector<200x64xf32>
    %5 = arith.addf %2, %4 : vector<200x64xf32>
    %c0_5 = arith.constant 0 : index
    %c0_6 = arith.constant 0 : index
    %6 = vector.load %arg4[%c0_5, %c0_6] : memref<1x64xf32, #tpu.memory_space<vmem>>, vector<1x64xf32>
    %c0_7 = arith.constant 0 : index
    %c0_8 = arith.constant 0 : index
    %7 = vector.load %arg5[%c0_7, %c0_8] : memref<1x64xf32, #tpu.memory_space<vmem>>, vector<1x64xf32>
    %cst_9 = arith.constant dense<0.000000e+00> : vector<200xf32>
    %8 = vector.multi_reduction <add>, %5, %cst_9 [1] : vector<200x64xf32> to vector<200xf32>
    %9 = vector.shape_cast %8 : vector<200xf32> to vector<200x1xf32>
    %cst_10 = arith.constant 6.400000e+01 : f32
    %10 = vector.broadcast %cst_10 : f32 to vector<200x1xf32>
    %11 = arith.divf %9, %10 : vector<200x1xf32>
    %12 = vector.broadcast %11 : vector<200x1xf32> to vector<200x64xf32>
    %13 = arith.subf %5, %12 : vector<200x64xf32>
    %14 = arith.mulf %13, %13 : vector<200x64xf32>
    %cst_11 = arith.constant dense<0.000000e+00> : vector<200xf32>
    %15 = vector.multi_reduction <add>, %14, %cst_11 [1] : vector<200x64xf32> to vector<200xf32>
    %16 = vector.shape_cast %15 : vector<200xf32> to vector<200x1xf32>
    %cst_12 = arith.constant 6.400000e+01 : f32
    %17 = vector.broadcast %cst_12 : f32 to vector<200x1xf32>
    %18 = arith.divf %16, %17 : vector<200x1xf32>
    %cst_13 = arith.constant 9.99999974E-6 : f32
    %19 = vector.broadcast %cst_13 : f32 to vector<200x1xf32>
    %20 = arith.addf %18, %19 : vector<200x1xf32>
    %21 = math.rsqrt %20 : vector<200x1xf32>
    %22 = vector.broadcast %21 : vector<200x1xf32> to vector<200x64xf32>
    %23 = arith.mulf %13, %22 : vector<200x64xf32>
    %24 = vector.broadcast %6 : vector<1x64xf32> to vector<200x64xf32>
    %25 = arith.mulf %23, %24 : vector<200x64xf32>
    %26 = vector.broadcast %7 : vector<1x64xf32> to vector<200x64xf32>
    %27 = arith.addf %25, %26 : vector<200x64xf32>
    %cst_14 = arith.constant 0.000000e+00 : f32
    %28 = vector.broadcast %cst_14 : f32 to vector<200x64xf32>
    %29 = arith.maximumf %27, %28 : vector<200x64xf32>
    %30 = arith.truncf %29 : vector<200x64xf32> to vector<200x64xbf16>
    %c0_15 = arith.constant 0 : index
    %c0_16 = arith.constant 0 : index
    %31 = vector.load %arg6[%c0_15, %c0_16] : memref<64x32xbf16, #tpu.memory_space<vmem>>, vector<64x32xbf16>
    %cst_17 = arith.constant dense<0.000000e+00> : vector<200x32xf32>
    %32 = tpu.matmul %30, %31, %cst_17 {dimension_numbers = #tpu.dot_dimension_numbers<[1], [0], [0], [1], [0, 0, 1, 1], [], []>} : vector<200x64xbf16>, vector<64x32xbf16>, vector<200x32xf32> -> vector<200x32xf32>
    %c0_18 = arith.constant 0 : index
    %c0_19 = arith.constant 0 : index
    %33 = vector.load %arg7[%c0_18, %c0_19] : memref<1x32xf32, #tpu.memory_space<vmem>>, vector<1x32xf32>
    %34 = vector.broadcast %33 : vector<1x32xf32> to vector<200x32xf32>
    %35 = arith.addf %32, %34 : vector<200x32xf32>
    %c0_20 = arith.constant 0 : index
    %c0_21 = arith.constant 0 : index
    %36 = vector.load %arg8[%c0_20, %c0_21] : memref<1x32xf32, #tpu.memory_space<vmem>>, vector<1x32xf32>
    %c0_22 = arith.constant 0 : index
    %c0_23 = arith.constant 0 : index
    %37 = vector.load %arg9[%c0_22, %c0_23] : memref<1x32xf32, #tpu.memory_space<vmem>>, vector<1x32xf32>
    %cst_24 = arith.constant dense<0.000000e+00> : vector<200xf32>
    %38 = vector.multi_reduction <add>, %35, %cst_24 [1] : vector<200x32xf32> to vector<200xf32>
    %39 = vector.shape_cast %38 : vector<200xf32> to vector<200x1xf32>
    %cst_25 = arith.constant 3.200000e+01 : f32
    %40 = vector.broadcast %cst_25 : f32 to vector<200x1xf32>
    %41 = arith.divf %39, %40 : vector<200x1xf32>
    %42 = vector.broadcast %41 : vector<200x1xf32> to vector<200x32xf32>
    %43 = arith.subf %35, %42 : vector<200x32xf32>
    %44 = arith.mulf %43, %43 : vector<200x32xf32>
    %cst_26 = arith.constant dense<0.000000e+00> : vector<200xf32>
    %45 = vector.multi_reduction <add>, %44, %cst_26 [1] : vector<200x32xf32> to vector<200xf32>
    %46 = vector.shape_cast %45 : vector<200xf32> to vector<200x1xf32>
    %cst_27 = arith.constant 3.200000e+01 : f32
    %47 = vector.broadcast %cst_27 : f32 to vector<200x1xf32>
    %48 = arith.divf %46, %47 : vector<200x1xf32>
    %cst_28 = arith.constant 9.99999974E-6 : f32
    %49 = vector.broadcast %cst_28 : f32 to vector<200x1xf32>
    %50 = arith.addf %48, %49 : vector<200x1xf32>
    %51 = math.rsqrt %50 : vector<200x1xf32>
    %52 = vector.broadcast %51 : vector<200x1xf32> to vector<200x32xf32>
    %53 = arith.mulf %43, %52 : vector<200x32xf32>
    %54 = vector.broadcast %36 : vector<1x32xf32> to vector<200x32xf32>
    %55 = arith.mulf %53, %54 : vector<200x32xf32>
    %56 = vector.broadcast %37 : vector<1x32xf32> to vector<200x32xf32>
    %57 = arith.addf %55, %56 : vector<200x32xf32>
    %cst_29 = arith.constant 0.000000e+00 : f32
    %58 = vector.broadcast %cst_29 : f32 to vector<200x32xf32>
    %59 = arith.maximumf %57, %58 : vector<200x32xf32>
    %60 = arith.truncf %59 : vector<200x32xf32> to vector<200x32xbf16>
    %c0_30 = arith.constant 0 : index
    %c0_31 = arith.constant 0 : index
    %61 = vector.load %arg10[%c0_30, %c0_31] : memref<32x128xbf16, #tpu.memory_space<vmem>>, vector<32x128xbf16>
    %cst_32 = arith.constant dense<0.000000e+00> : vector<200x128xf32>
    %62 = tpu.matmul %60, %61, %cst_32 {dimension_numbers = #tpu.dot_dimension_numbers<[1], [0], [0], [1], [0, 0, 1, 1], [], []>} : vector<200x32xbf16>, vector<32x128xbf16>, vector<200x128xf32> -> vector<200x128xf32>
    %c0_33 = arith.constant 0 : index
    %c0_34 = arith.constant 0 : index
    %63 = vector.load %arg11[%c0_33, %c0_34] : memref<1x128xf32, #tpu.memory_space<vmem>>, vector<1x128xf32>
    %64 = vector.broadcast %63 : vector<1x128xf32> to vector<200x128xf32>
    %65 = arith.addf %62, %64 : vector<200x128xf32>
    %66 = math.tanh %65 : vector<200x128xf32>
    %67 = arith.truncf %66 : vector<200x128xf32> to vector<200x128xbf16>
    %c0_35 = arith.constant 0 : index
    %c0_36 = arith.constant 0 : index
    %68 = vector.load %arg12[%c0_35, %c0_36] : memref<200x128xbf16, #tpu.memory_space<vmem>>, vector<200x128xbf16>
    tpu.vector_store %arg12[%c0_35, %c0_36], %67 {strides = array<i32>} : memref<200x128xbf16, #tpu.memory_space<vmem>>, vector<200x128xbf16>,
    return
  }
  func.func @transform_0(%arg0: i32) -> (i32, i32) {
    %c0_i32 = arith.constant 0 : i32
    %c0_i32_0 = arith.constant 0 : i32
    return %arg0, %c0_i32 : i32, i32
  }
  func.func @transform_1(%arg0: i32) -> (i32, i32) {
    %c0_i32 = arith.constant 0 : i32
    %c0_i32_0 = arith.constant 0 : i32
    %c0_i32_1 = arith.constant 0 : i32
    return %c0_i32, %c0_i32_0 : i32, i32
  }
  func.func @transform_2(%arg0: i32) -> (i32, i32) {
    %c0_i32 = arith.constant 0 : i32
    %c0_i32_0 = arith.constant 0 : i32
    %c0_i32_1 = arith.constant 0 : i32
    return %c0_i32, %c0_i32_0 : i32, i32
  }
  func.func @transform_3(%arg0: i32) -> (i32, i32) {
    %c0_i32 = arith.constant 0 : i32
    %c0_i32_0 = arith.constant 0 : i32
    %c0_i32_1 = arith.constant 0 : i32
    return %c0_i32, %c0_i32_0 : i32, i32
  }
  func.func @transform_4(%arg0: i32) -> (i32, i32) {
    %c0_i32 = arith.constant 0 : i32
    %c0_i32_0 = arith.constant 0 : i32
    %c0_i32_1 = arith.constant 0 : i32
    return %c0_i32, %c0_i32_0 : i32, i32
  }
  func.func @transform_5(%arg0: i32) -> (i32, i32) {
    %c0_i32 = arith.constant 0 : i32
    %c0_i32_0 = arith.constant 0 : i32
    %c0_i32_1 = arith.constant 0 : i32
    return %c0_i32, %c0_i32_0 : i32, i32
  }
  func.func @transform_6(%arg0: i32) -> (i32, i32) {
    %c0_i32 = arith.constant 0 : i32
    %c0_i32_0 = arith.constant 0 : i32
    %c0_i32_1 = arith.constant 0 : i32
    return %c0_i32, %c0_i32_0 : i32, i32
  }
  func.func @transform_7(%arg0: i32) -> (i32, i32) {
    %c0_i32 = arith.constant 0 : i32
    %c0_i32_0 = arith.constant 0 : i32
    %c0_i32_1 = arith.constant 0 : i32
    return %c0_i32, %c0_i32_0 : i32, i32
  }
  func.func @transform_8(%arg0: i32) -> (i32, i32) {
    %c0_i32 = arith.constant 0 : i32
    %c0_i32_0 = arith.constant 0 : i32
    %c0_i32_1 = arith.constant 0 : i32
    return %c0_i32, %c0_i32_0 : i32, i32
  }
  func.func @transform_9(%arg0: i32) -> (i32, i32) {
    %c0_i32 = arith.constant 0 : i32
    %c0_i32_0 = arith.constant 0 : i32
    %c0_i32_1 = arith.constant 0 : i32
    return %c0_i32, %c0_i32_0 : i32, i32
  }
  func.func @transform_10(%arg0: i32) -> (i32, i32) {
    %c0_i32 = arith.constant 0 : i32
    %c0_i32_0 = arith.constant 0 : i32
    %c0_i32_1 = arith.constant 0 : i32
    return %c0_i32, %c0_i32_0 : i32, i32
  }
  func.func @transform_11(%arg0: i32) -> (i32, i32) {
    %c0_i32 = arith.constant 0 : i32
    %c0_i32_0 = arith.constant 0 : i32
    return %arg0, %c0_i32 : i32, i32
  }
}

</mosaic_0001>

<bundles_post_ra>
// kernel: tpu_custom_call.1
= control target key start
LH: loop header
LB: loop body
LE: loop exit
PB: predicated region body
PF: predicated region fallthrough
CT: control target
= control target key end

     0   :  { %16 = vsyncpa [#allocation3], 0  ;;  %s3898_s0 = inlined_call_operand.hbm [shape: bf16[200,16], index: 0, kind: input, shape index: {}]   ;;  %s3899_s1 = inlined_call_operand.hbm [shape: bf16[16,64], index: 1, kind: input, shape index: {}]   ;;  %s3900_s2 = inlined_call_operand.hbm [shape: f32[1,64], index: 2, kind: input, shape index: {}]   ;;  %s3901_s3 = inlined_call_operand.hbm [shape: f32[1,64], index: 3, kind: input, shape index: {}]   ;;  %s3902_s4 = inlined_call_operand.hbm [shape: f32[1,64], index: 4, kind: input, shape index: {}]   ;;  %s3903_s5 = inlined_call_operand.hbm [shape: bf16[64,32], index: 5, kind: input, shape index: {}]   ;;  %s3904_s6 = inlined_call_operand.hbm [shape: f32[1,32], index: 6, kind: input, shape index: {}]   ;;  %s3905_s7 = inlined_call_operand.hbm [shape: f32[1,32], index: 7, kind: input, shape index: {}]   ;;  %s3906_s8 = inlined_call_operand.hbm [shape: f32[1,32], index: 8, kind: input, shape index: {}]   ;;  %s3907_s9 = inlined_call_operand.hbm [shape: bf16[32,128], index: 9, kind: input, shape index: {}]   ;;  %s3908_s10 = inlined_call_operand.hbm [shape: f32[1,128], index: 10, kind: input, shape index: {}]   ;;  %s3909_s11 = inlined_call_operand.hbm [shape: bf16[200,128], index: 11, kind: output, shape index: {}]  }
   0x1   :  { %17 = vsyncpa [#allocation6], 0 }
   0x2   :  { %18 = vsyncpa [#allocation9], 0 }
   0x3   :  { %19 = vsyncpa [#allocation12], 0 }
   0x4   :  { %20 = vsyncpa [#allocation15], 0 }
   0x5   :  { %21 = vsyncpa [#allocation18], 0 }
   0x6   :  { %22 = vsyncpa [#allocation4], 0  ;;  %s2766_s17 = smov [#allocation5]   ;;  %s2767_s19 = smov [#allocation8]  }
   0x7   :  { %s40_s18 = sshll.u32 %s2766_s17, 4  ;;  %s63_s20 = sshll.u32 %s2767_s19, 4  ;;  %s41_s18 = int_to_ptr.vmem [resolvable:$true] %s40_s18  ;;  %s2842_s20 = int_to_ptr.vmem [resolvable:$true] %s63_s20 }
   0x8   :  { %s2488_s23 = scalar_lea.hbm %s3899_s1, 128 }
   0x9   :  { %p2489_p0 = scmp.ne.s32.totalorder %s3899_s1, %s2488_s23  ;;  %p2492_p1 = scmp.lt.u32.totalorder %s2488_s23, %s3899_s1 }
   0xb   :  { %p2494_p2 = pnand %p2492_p1, %p2489_p0 }
   0xd   :  { %2497 = shalt.err (!%p2494_p2)
}
   0xe   :  { %s2498_s28 = scalar_lea.vmem %s41_s18, 128  ;;  %p2503_p4 = scmp.lt.s32.totalorder %s41_s18, %s41_s18 }
   0xf   :  { %p2499_p3 = scmp.ne.s32.totalorder %s41_s18, %s2498_s28  ;;  %p2504_p5 = scmp.lt.s32.totalorder %s2498_s28, %s2498_s28 }
  0x11   :  { %p2505_p6 = por %p2504_p5, %p2503_p4 }
  0x13   :  { %p2506_p7 = pnand %p2505_p6, %p2499_p3 }
  0x15   :  { %2509 = shalt.err (!%p2506_p7)
}
  0x16   :  { %s2768_s29 = smov 64   ;;  %s2769_s30 = smov 4  }
  0x17   :  { %46 = dma.hbm_to_vmem [thread:$0]  %s3899_s1, 128, %s41_s18, [#allocation6], %s2768_s29, %s2768_s29, %s2769_s30  }
  0x18   :  { %s2510_s16 = scalar_lea.hbm %s3901_s3, 16 }
  0x19   :  { %p2511_p8 = scmp.ne.s32.totalorder %s3901_s3, %s2510_s16  ;;  %p2514_p9 = scmp.lt.u32.totalorder %s2510_s16, %s3901_s3 }
  0x1b   :  { %p2516_p10 = pnand %p2514_p9, %p2511_p8 }
  0x1d   :  { %2519 = shalt.err (!%p2516_p10)
}
  0x1e   :  { %s2520_s23 = scalar_lea.vmem %s2842_s20, 16  ;;  %s2524_s1 = scalar_lea.vmem %s2842_s20, 32 }
  0x1f   :  { %p2521_p11 = scmp.ne.s32.totalorder %s2842_s20, %s2520_s23  ;;  %p2525_p12 = scmp.lt.s32.totalorder %s2842_s20, %s2842_s20 }
  0x20   :  { %p2526_p13 = scmp.lt.s32.totalorder %s2524_s1, %s2520_s23 }
  0x22   :  { %p2527_p0 = por %p2526_p13, %p2525_p12 }
  0x24   :  { %p2528_p1 = pnand %p2527_p0, %p2521_p11 }
  0x26   :  { %2531 = shalt.err (!%p2528_p1)
}
  0x27   :  { %66 = dma.hbm_to_vmem [thread:$0]  %s3901_s3, 16, %s2842_s20, [#allocation9]  }
  0x28   :  { %s2770_s25 = smov [#allocation11]   ;;  %s2771_s27 = smov [#allocation14]  }
  0x29   :  { %s82_s26 = sshll.u32 %s2770_s25, 4  ;;  %s105_s28 = sshll.u32 %s2771_s27, 4  ;;  %s83_s26 = int_to_ptr.vmem [resolvable:$true] %s82_s26  ;;  %s106_s28 = int_to_ptr.vmem [resolvable:$true] %s105_s28 }
  0x2a   :  { %s2532_s14 = scalar_lea.hbm %s3903_s5, 512 }
  0x2b   :  { %p2533_p2 = scmp.ne.s32.totalorder %s3903_s5, %s2532_s14  ;;  %p2536_p3 = scmp.lt.u32.totalorder %s2532_s14, %s3903_s5 }
  0x2d   :  { %p2538_p4 = pnand %p2536_p3, %p2533_p2 }
  0x2f   :  { %2541 = shalt.err (!%p2538_p4)
}
  0x30   :  { %s2542_s3 = scalar_lea.vmem %s83_s26, 512  ;;  %p2547_p6 = scmp.lt.s32.totalorder %s83_s26, %s83_s26 }
  0x31   :  { %p2543_p5 = scmp.ne.s32.totalorder %s83_s26, %s2542_s3  ;;  %p2548_p7 = scmp.lt.s32.totalorder %s2542_s3, %s2542_s3 }
  0x33   :  { %p2549_p8 = por %p2548_p7, %p2547_p6 }
  0x35   :  { %p2550_p9 = pnand %p2549_p8, %p2543_p5 }
  0x37   :  { %2553 = shalt.err (!%p2550_p9)
}
  0x38   :  { %88 = dma.hbm_to_vmem [thread:$0]  %s3903_s5, 512, %s83_s26, [#allocation12], %s2768_s29, %s2768_s29, %s2769_s30  }
  0x39   :  { %s2554_s1 = scalar_lea.hbm %s3905_s7, 16 }
  0x3a   :  { %p2555_p10 = scmp.ne.s32.totalorder %s3905_s7, %s2554_s1  ;;  %p2558_p11 = scmp.lt.u32.totalorder %s2554_s1, %s3905_s7 }
  0x3c   :  { %p2560_p12 = pnand %p2558_p11, %p2555_p10 }
  0x3e   :  { %2563 = shalt.err (!%p2560_p12)
}
  0x3f   :  { %s2564_s12 = scalar_lea.vmem %s106_s28, 16  ;;  %s2568_s13 = scalar_lea.vmem %s106_s28, 32 }
  0x40   :  { %p2565_p13 = scmp.ne.s32.totalorder %s106_s28, %s2564_s12  ;;  %p2569_p0 = scmp.lt.s32.totalorder %s106_s28, %s106_s28 }
  0x41   :  { %p2570_p1 = scmp.lt.s32.totalorder %s2568_s13, %s2564_s12 }
  0x43   :  { %p2571_p2 = por %p2570_p1, %p2569_p0 }
  0x45   :  { %p2572_p3 = pnand %p2571_p2, %p2565_p13 }
  0x47   :  { %2575 = shalt.err (!%p2572_p3)
}
  0x48   :  { %108 = dma.hbm_to_vmem [thread:$0]  %s3905_s7, 16, %s106_s28, [#allocation15]  }
  0x49   :  { %s2772_s14 = smov [#allocation17]   ;;  %s2773_s16 = smov [#allocation2]  }
  0x4a   :  { %s124_s15 = sshll.u32 %s2772_s14, 4  ;;  %s28_s17 = sshll.u32 %s2773_s16, 4  ;;  %s125_s15 = int_to_ptr.vmem [resolvable:$true] %s124_s15  ;;  %s2904_s17 = int_to_ptr.vmem [resolvable:$true] %s28_s17 }
  0x4b   :  { %s2576_s20 = scalar_lea.hbm %s3907_s9, 256 }
  0x4c   :  { %p2577_p4 = scmp.ne.s32.totalorder %s3907_s9, %s2576_s20  ;;  %p2580_p5 = scmp.lt.u32.totalorder %s2576_s20, %s3907_s9 }
  0x4e   :  { %p2582_p6 = pnand %p2580_p5, %p2577_p4 }
  0x50   :  { %2585 = shalt.err (!%p2582_p6)
}
  0x51   :  { %s2586_s7 = scalar_lea.vmem %s125_s15, 256  ;;  %p2591_p8 = scmp.lt.s32.totalorder %s125_s15, %s125_s15 }
  0x52   :  { %p2587_p7 = scmp.ne.s32.totalorder %s125_s15, %s2586_s7  ;;  %p2592_p9 = scmp.lt.s32.totalorder %s2586_s7, %s2586_s7 }
  0x54   :  { %p2593_p10 = por %p2592_p9, %p2591_p8 }
  0x56   :  { %p2594_p11 = pnand %p2593_p10, %p2587_p7 }
  0x58   :  { %2597 = shalt.err (!%p2594_p11)
}
  0x59   :  { %130 = dma.hbm_to_vmem [thread:$0]  %s3907_s9, 256, %s125_s15, [#allocation18], %s2768_s29, %s2768_s29, %s2769_s30  }
  0x5a   :  { %s2598_s27 = scalar_lea.hbm %s3898_s0, 1600 }
  0x5b   :  { %p2599_p12 = scmp.ne.s32.totalorder %s3898_s0, %s2598_s27  ;;  %p2602_p13 = scmp.lt.u32.totalorder %s2598_s27, %s3898_s0 }
  0x5d   :  { %p2604_p0 = pnand %p2602_p13, %p2599_p12 }
  0x5f   :  { %2607 = shalt.err (!%p2604_p0)
}
  0x60   :  { %s2608_s14 = scalar_lea.vmem %s2904_s17, 1600  ;;  %p2613_p2 = scmp.lt.s32.totalorder %s2904_s17, %s2904_s17 }
  0x61   :  { %p2609_p1 = scmp.ne.s32.totalorder %s2904_s17, %s2608_s14  ;;  %p2614_p3 = scmp.lt.s32.totalorder %s2608_s14, %s2608_s14 }
  0x63   :  { %p2615_p4 = por %p2614_p3, %p2613_p2 }
  0x65   :  { %p2616_p5 = pnand %p2615_p4, %p2609_p1 }
  0x67   :  { %2619 = shalt.err (!%p2616_p5)
}
  0x68   :  { %34 = dma.hbm_to_vmem [thread:$0]  %s3898_s0, 1600, %s2904_s17, [#allocation3], %s2768_s29, %s2768_s29, %s2769_s30  }
  0x69   :  { %s2774_s16 = smov [#allocation7]   ;;  %s2775_s3 = smov [#allocation10]  }
  0x6a   :  { %s53_s19 = sshll.u32 %s2774_s16, 4  ;;  %s73_s20 = sshll.u32 %s2775_s3, 4  ;;  %s54_s19 = int_to_ptr.vmem [resolvable:$true] %s53_s19  ;;  %s74_s20 = int_to_ptr.vmem [resolvable:$true] %s73_s20 }
  0x6b   :  { %s2620_s23 = scalar_lea.hbm %s3900_s2, 16 }
  0x6c   :  { %p2621_p6 = scmp.ne.s32.totalorder %s3900_s2, %s2620_s23  ;;  %p2624_p7 = scmp.lt.u32.totalorder %s2620_s23, %s3900_s2 }
  0x6e   :  { %p2626_p8 = pnand %p2624_p7, %p2621_p6 }
  0x70   :  { %2629 = shalt.err (!%p2626_p8)
}
  0x71   :  { %s2630_s0 = scalar_lea.vmem %s54_s19, 16  ;;  %s2634_s17 = scalar_lea.vmem %s54_s19, 32 }
  0x72   :  { %p2631_p9 = scmp.ne.s32.totalorder %s54_s19, %s2630_s0  ;;  %p2635_p10 = scmp.lt.s32.totalorder %s54_s19, %s54_s19 }
  0x73   :  { %p2636_p11 = scmp.lt.s32.totalorder %s2634_s17, %s2630_s0 }
  0x75   :  { %p2637_p12 = por %p2636_p11, %p2635_p10 }
  0x77   :  { %p2638_p13 = pnand %p2637_p12, %p2631_p9 }
  0x79   :  { %2641 = shalt.err (!%p2638_p13)
}
  0x7a   :  { %56 = dma.hbm_to_vmem [thread:$0]  %s3900_s2, 16, %s54_s19, [#allocation6]  }
  0x7b   :  { %s2642_s13 = scalar_lea.hbm %s3902_s4, 16 }
  0x7c   :  { %p2643_p0 = scmp.ne.s32.totalorder %s3902_s4, %s2642_s13  ;;  %p2646_p1 = scmp.lt.u32.totalorder %s2642_s13, %s3902_s4 }
  0x7e   :  { %p2648_p2 = pnand %p2646_p1, %p2643_p0 }
  0x80   :  { %2651 = shalt.err (!%p2648_p2)
}
  0x81   :  { %s2652_s15 = scalar_lea.vmem %s74_s20, 16  ;;  %s2656_s16 = scalar_lea.vmem %s74_s20, 32 }
  0x82   :  { %p2653_p3 = scmp.ne.s32.totalorder %s74_s20, %s2652_s15  ;;  %p2657_p4 = scmp.lt.s32.totalorder %s74_s20, %s74_s20 }
  0x83   :  { %p2658_p5 = scmp.lt.s32.totalorder %s2656_s16, %s2652_s15 }
  0x85   :  { %p2659_p6 = por %p2658_p5, %p2657_p4 }
  0x87   :  { %p2660_p7 = pnand %p2659_p6, %p2653_p3 }
  0x89   :  { %2663 = shalt.err (!%p2660_p7)
}
  0x8a   :  { %76 = dma.hbm_to_vmem [thread:$0]  %s3902_s4, 16, %s74_s20, [#allocation9]  }
  0x8b   :  { %s2776_s3 = smov [#allocation13]   ;;  %s2777_s22 = smov [#allocation16]  }
  0x8c   :  { %s95_s21 = sshll.u32 %s2776_s3, 4  ;;  %s115_s23 = sshll.u32 %s2777_s22, 4  ;;  %s96_s21 = int_to_ptr.vmem [resolvable:$true] %s95_s21  ;;  %s116_s23 = int_to_ptr.vmem [resolvable:$true] %s115_s23 }
  0x8d   :  { %s2664_s28 = scalar_lea.hbm %s3904_s6, 16 }
  0x8e   :  { %p2665_p8 = scmp.ne.s32.totalorder %s3904_s6, %s2664_s28  ;;  %p2668_p9 = scmp.lt.u32.totalorder %s2664_s28, %s3904_s6 }
  0x90   :  { %p2670_p10 = pnand %p2668_p9, %p2665_p8 }
  0x92   :  { %2673 = shalt.err (!%p2670_p10)
}
  0x93   :  { %s2674_s4 = scalar_lea.vmem %s96_s21, 16  ;;  %s2678_s20 = scalar_lea.vmem %s96_s21, 32 }
  0x94   :  { %p2675_p11 = scmp.ne.s32.totalorder %s96_s21, %s2674_s4  ;;  %p2679_p12 = scmp.lt.s32.totalorder %s96_s21, %s96_s21 }
  0x95   :  { %p2680_p13 = scmp.lt.s32.totalorder %s2678_s20, %s2674_s4 }
  0x97   :  { %p2681_p0 = por %p2680_p13, %p2679_p12 }
  0x99   :  { %p2682_p1 = pnand %p2681_p0, %p2675_p11 }
  0x9b   :  { %2685 = shalt.err (!%p2682_p1)
}
  0x9c   :  { %98 = dma.hbm_to_vmem [thread:$0]  %s3904_s6, 16, %s96_s21, [#allocation12]  }
  0x9d   :  { %s2686_s5 = scalar_lea.hbm %s3906_s8, 16 }
  0x9e   :  { %p2687_p2 = scmp.ne.s32.totalorder %s3906_s8, %s2686_s5  ;;  %p2690_p3 = scmp.lt.u32.totalorder %s2686_s5, %s3906_s8 }
  0xa0   :  { %p2692_p4 = pnand %p2690_p3, %p2687_p2 }
  0xa2   :  { %2695 = shalt.err (!%p2692_p4)
}
  0xa3   :  { %s2696_s16 = scalar_lea.vmem %s116_s23, 16  ;;  %s2700_s2 = scalar_lea.vmem %s116_s23, 32 }
  0xa4   :  { %p2697_p5 = scmp.ne.s32.totalorder %s116_s23, %s2696_s16  ;;  %p2701_p6 = scmp.lt.s32.totalorder %s116_s23, %s116_s23 }
  0xa5   :  { %p2702_p7 = scmp.lt.s32.totalorder %s2700_s2, %s2696_s16 }
  0xa7   :  { %p2703_p8 = por %p2702_p7, %p2701_p6 }
  0xa9   :  { %p2704_p9 = pnand %p2703_p8, %p2697_p5 }
  0xab   :  { %2707 = shalt.err (!%p2704_p9)
}
  0xac   :  { %118 = dma.hbm_to_vmem [thread:$0]  %s3906_s8, 16, %s116_s23, [#allocation15]  }
  0xad   :  { %s2778_s3 = smov [#allocation19]   ;;  %s2708_s7 = scalar_lea.hbm %s3908_s10, 16 }
  0xae   :  { %s137_s21 = sshll.u32 %s2778_s3, 4  ;;  %p2709_p10 = scmp.ne.s32.totalorder %s3908_s10, %s2708_s7  ;;  %s138_s21 = int_to_ptr.vmem [resolvable:$true] %s137_s21 }
  0xaf   :  { %p2712_p11 = scmp.lt.u32.totalorder %s2708_s7, %s3908_s10 }
  0xb1   :  { %p2714_p12 = pnand %p2712_p11, %p2709_p10 }
  0xb3   :  { %2717 = shalt.err (!%p2714_p12)
}
  0xb4   :  { %s2718_s24 = scalar_lea.vmem %s138_s21, 16  ;;  %s2722_s8 = scalar_lea.vmem %s138_s21, 32 }
  0xb5   :  { %p2719_p13 = scmp.ne.s32.totalorder %s138_s21, %s2718_s24  ;;  %p2723_p0 = scmp.lt.s32.totalorder %s138_s21, %s138_s21 }
  0xb6   :  { %p2724_p1 = scmp.lt.s32.totalorder %s2722_s8, %s2718_s24 }
  0xb8   :  { %p2725_p2 = por %p2724_p1, %p2723_p0 }
  0xba   :  { %p2726_p3 = pnand %p2725_p2, %p2719_p13 }
  0xbc   :  { %2729 = shalt.err (!%p2726_p3)
}
  0xbd   :  { %140 = dma.hbm_to_vmem [thread:$0]  %s3908_s10, 16, %s138_s21, [#allocation18]  }
  0xbe   :  { %2752 = dma.done.wait [#allocation3], 1600  }
  0xbf   :  { %2753 = vsyncadd [#allocation3], 4294965696 }
  0xc0   :  { %2754 = dma.done.wait [#allocation6], 144  }
  0xc1   :  { %2755 = vsyncadd [#allocation6], 4294967152 }
  0xc2   :  { %2756 = dma.done.wait [#allocation9], 32  }
  0xc3   :  { %2757 = vsyncadd [#allocation9], 4294967264 }
  0xc4   :  { %2758 = dma.done.wait [#allocation12], 528  }
  0xc5   :  { %2759 = vsyncadd [#allocation12], 4294966768 }
  0xc6   :  { %2760 = dma.done.wait [#allocation15], 32  }
  0xc7   :  { %2761 = vsyncadd [#allocation15], 4294967264 }
  0xc8   :  { %2762 = dma.done.wait [#allocation18], 272  }
  0xc9   :  { %2763 = vsyncadd [#allocation18], 4294967024  ;;  %v2779_v0 = vmov 0.0   ;;  %vm2780_vm0 = vmmov 0   ;;  %v2318_v1 = vld [vmem:[#allocation5] sm:$0xff]   ;;  %vm278_vm1 = vcmask 130048  }
  0xca   :  { %2130 = vmatprep.subr.bf16.mxu0 %v2779_v0  ;;  %2132 = vmatprep.mubr.msk.bf16.mxu0 %vm2780_vm0, %v2779_v0  ;;  %v2319_v2 = vld [vmem:[#allocation2] sm:$0xff]   ;;  %v2325_v3 = vld [vmem:[#allocation2 + $0x38] sm:$0xff]   ;;  %v2320_v4 = vld [vmem:[#allocation2 + $0x8] sm:$0xff]   ;;  %vm456_vm2 = vcmask 523264   ;;  %vm1099_vm3 = vcmask 261120   ;;  %s2781_s10 = smov [#allocation20]  }
  0xcb   :  { %2300 = vmatprep.subr.bf16.mxu1 %v2779_v0  ;;  %2160 = vmatprep.mubr.msk.bf16.mxu1 %vm2780_vm0, %v2779_v0  ;;  %v2327_v5 = vld [vmem:[#allocation2 + $0x40] sm:$0xff]   ;;  %v2321_v6 = vld [vmem:[#allocation2 + $0x10] sm:$0xff]   ;;  %v2328_v7 = vld [vmem:[#allocation2 + $0x48] sm:$0xff]   ;;  %s1880_s20 = sshll.u32 %s2781_s10, 4  ;;  %s1881_s20 = int_to_ptr.vmem [resolvable:$true] %s1880_s20 }
  0xcc   :  { %2131 = vmatpush3.bf16.msra.mxu0 %v2318_v1  ;;  %2301 = vmatpush3.bf16.msra.mxu1 %v2318_v1  ;;  %v2322_v8 = vld [vmem:[#allocation2 + $0x18] sm:$0xff]   ;;  %v2329_v9 = vld [vmem:[#allocation2 + $0x50] sm:$0xff]   ;;  %v2323_v10 = vld [vmem:[#allocation2 + $0x20] sm:$0xff]   ;;  %s2730_s25 = scalar_lea.vmem %s1881_s20, 1600  ;;  %p2735_p5 = scmp.lt.s32.totalorder %s1881_s20, %s1881_s20 }
  0xcd   :  { %2184 = vmatprep.subr.bf16.mxu1 %v2779_v0  ;;  %2244 = vmatprep.subr.bf16.mxu0 %v2779_v0  ;;  %v2330_v11 = vld [vmem:[#allocation2 + $0x58] sm:$0xff]   ;;  %v2324_v12 = vld [vmem:[#allocation2 + $0x28] sm:$0xff]   ;;  %v2331_v13 = vld [vmem:[#allocation2 + $0x60] ss:$0 sps:$4 sm:$0xff]   ;;  %p2731_p4 = scmp.ne.s32.totalorder %s1881_s20, %s2730_s25  ;;  %p2736_p6 = scmp.lt.s32.totalorder %s2730_s25, %s2730_s25 }
  0xce   :  { %v2326_v14 = vld [vmem:[#allocation2 + $0x30] sm:$0xff]   ;;  %v3048_v15 = vld [vmem:[#allocation7] ss:$0 sm:$0xff] }
  0xcf   :  { %2133 = vmatmul.mubr.msk.bf16.vlgmr.msra.gmra.mrb[0].mxu0 %vm278_vm1, %v2319_v2  ;;  %2161 = vmatmul.mubr.msk.bf16.vlgmr.msra.gmra.mrb[0].mxu1 %vm278_vm1, %v2325_v3  ;;  %p2737_p7 = por %p2736_p6, %p2735_p5 }
  0xd0   :  { %2136 = vmatprep.mubr.msk.bf16.mxu0 %vm2780_vm0, %v2779_v0  ;;  %2164 = vmatprep.mubr.msk.bf16.mxu1 %vm2780_vm0, %v2779_v0 }
  0xd1   :  { %p2738_p8 = pnand %p2737_p7, %p2731_p4 }
  0xd7   :  { %2137 = vmatmul.mubr.msk.bf16.gmra.mrb[4].mxu0 %vm278_vm1, %v2320_v4  ;;  %2165 = vmatmul.mubr.msk.bf16.gmra.mrb[4].mxu1 %vm278_vm1, %v2327_v5 }
  0xd8   :  { %2140 = vmatprep.mubr.msk.bf16.mxu0 %vm2780_vm0, %v2779_v0  ;;  %2168 = vmatprep.mubr.msk.bf16.mxu1 %vm2780_vm0, %v2779_v0 }
  0xdf   :  { %2141 = vmatmul.mubr.msk.bf16.gmra.mrb[8].mxu0 %vm278_vm1, %v2321_v6  ;;  %2169 = vmatmul.mubr.msk.bf16.gmra.mrb[8].mxu1 %vm278_vm1, %v2328_v7 }
  0xe0   :  { %2144 = vmatprep.mubr.msk.bf16.mxu0 %vm2780_vm0, %v2779_v0  ;;  %2172 = vmatprep.mubr.msk.bf16.mxu1 %vm2780_vm0, %v2779_v0 }
  0xe7   :  { %2145 = vmatmul.mubr.msk.bf16.gmra.mrb[12].mxu0 %vm278_vm1, %v2322_v8  ;;  %2173 = vmatmul.mubr.msk.bf16.gmra.mrb[12].mxu1 %vm278_vm1, %v2329_v9 }
  0xe8   :  { %2148 = vmatprep.mubr.msk.bf16.mxu0 %vm2780_vm0, %v2779_v0  ;;  %2176 = vmatprep.mubr.msk.bf16.mxu1 %vm2780_vm0, %v2779_v0 }
  0xef   :  { %2149 = vmatmul.mubr.msk.bf16.gmra.mrb[16].mxu0 %vm278_vm1, %v2323_v10  ;;  %2177 = vmatmul.mubr.msk.bf16.gmra.mrb[16].mxu1 %vm278_vm1, %v2330_v11 }
  0xf0   :  { %2152 = vmatprep.mubr.msk.bf16.mxu0 %vm2780_vm0, %v2779_v0  ;;  %2180 = vmatprep.mubr.msk.bf16.mxu1 %vm2780_vm0, %v2779_v0 }
  0xf7   :  { %2153 = vmatmul.mubr.msk.bf16.gmra.mrb[20].mxu0 %vm278_vm1, %v2324_v12  ;;  %2181 = vmatmul.mubr.msk.bf16.gmra.mrb[20].mxu1 %vm278_vm1, %v2331_v13 }
  0xf8   :  { %2156 = vmatprep.mubr.msk.bf16.mxu0 %vm2780_vm0, %v2779_v0  ;;  %2192 = vmatprep.mubr.msk.bf16.mxu1 %vm2780_vm0, %v2779_v0 }
  0xff   :  { %2157 = vmatmul.mubr.msk.bf16.gmra.mrb[24].mxu0 %vm278_vm1, %v2326_v14 }
 0x100   :  { %2248 = vmatprep.mubr.msk.bf16.mxu0 %vm2780_vm0, %v2779_v0 }
 0x1a2   :  { %v352_v16 = vpop.f32.mrb[0].mxu0  ;;  %v3058_v23 = vpop.f32.mrb[0].mxu1 }
 0x1a3   :  { %v3051_v17 = vadd.f32 %v3048_v15, %v352_v16  ;;  %v2134_v18 = vpop.f32.mrb[1].mxu0  ;;  %v2162_v24 = vpop.f32.mrb[1].mxu1 }
 0x1a4   :  { %v355_v19 = vpop.f32.mrb[2].mxu0  ;;  %v3060_v25 = vpop.f32.mrb[2].mxu1 }
 0x1a5   :  { %v3054_v20 = vadd.f32 %v3048_v15, %v355_v19  ;;  %v2135_v21 = vpop.f32.mrb[3].mxu0  ;;  %v457_v22 = vsel %vm456_vm2, %v3051_v17, 0.0  ;;  %v2163_v27 = vpop.f32.mrb[3].mxu1 }
 0x1a6   :  { %458 = vadd.xlane.f32.xlu0 %v457_v22 }
 0x1a7   :  { %v460_v26 = vsel %vm456_vm2, %v3054_v20, 0.0 }
 0x1aa   :  { %461 = vadd.xlane.f32.xlu0 %v460_v26  ;;  %v360_v28 = vpop.f32.mrb[4].mxu0  ;;  %v3072_v35 = vpop.f32.mrb[4].mxu1 }
 0x1ab   :  { %v3065_v29 = vadd.f32 %v3048_v15, %v360_v28  ;;  %v2138_v30 = vpop.f32.mrb[5].mxu0  ;;  %v2166_v36 = vpop.f32.mrb[5].mxu1 }
 0x1ac   :  { %v363_v31 = vpop.f32.mrb[6].mxu0  ;;  %v3074_v37 = vpop.f32.mrb[6].mxu1 }
 0x1ad   :  { %v3068_v32 = vadd.f32 %v3048_v15, %v363_v31  ;;  %v2139_v33 = vpop.f32.mrb[7].mxu0  ;;  %v463_v34 = vsel %vm456_vm2, %v3065_v29, 0.0  ;;  %v2167_v39 = vpop.f32.mrb[7].mxu1 }
 0x1ae   :  { %464 = vadd.xlane.f32.xlu1 %v463_v34 }
 0x1af   :  { %v466_v38 = vsel %vm456_vm2, %v3068_v32, 0.0 }
 0x1b2   :  { %467 = vadd.xlane.f32.xlu1 %v466_v38  ;;  %v368_v40 = vpop.f32.mrb[8].mxu0  ;;  %v3086_v47 = vpop.f32.mrb[8].mxu1 }
 0x1b3   :  { %v3079_v41 = vadd.f32 %v3048_v15, %v368_v40  ;;  %v2142_v42 = vpop.f32.mrb[9].mxu0  ;;  %v2170_v49 = vpop.f32.mrb[9].mxu1 }
 0x1b4   :  { %v371_v43 = vpop.f32.mrb[10].mxu0  ;;  %v3090_v50 = vpop.f32.mrb[10].mxu1  ;;  %v3151_v49 = vadd.f32 %v3048_v15, %v3060_v25 }
 0x1b5   :  { %v3082_v44 = vadd.f32 %v3048_v15, %v371_v43  ;;  %v469_v45 = vsel %vm456_vm2, %v3079_v41, 0.0  ;;  %v2143_v46 = vpop.f32.mrb[11].mxu0  ;;  %v2171_v51 = vpop.f32.mrb[11].mxu1  ;;  %v3142_v43 = vadd.f32 %v3048_v15, %v3058_v23  ;;  %v3157_v23 = vadd.f32 %v3048_v15, %v3072_v35 }
 0x1b6   :  { %470 = vadd.xlane.f32.xlu0 %v469_v45  ;;  %v502_v25 = vsel %vm456_vm2, %v3151_v49, 0.0 }
 0x1b7   :  { %v472_v48 = vsel %vm456_vm2, %v3082_v44, 0.0  ;;  %v505_v35 = vsel %vm456_vm2, %v3157_v23, 0.0 }
 0x1b8   :  { %473 = vadd.xlane.f32.xlu1 %v472_v48 }
 0x1ba   :  { %v376_v52 = vpop.f32.mrb[12].mxu0  ;;  %v432_v59 = vpop.f32.mrb[12].mxu1 }
 0x1bb   :  { %v3093_v53 = vadd.f32 %v3048_v15, %v376_v52  ;;  %v2146_v54 = vpop.f32.mrb[13].mxu0  ;;  %v3103_v61 = vadd.f32 %v3048_v15, %v432_v59  ;;  %v2174_v62 = vpop.f32.mrb[13].mxu1 }
 0x1bc   :  { %v379_v55 = vpop.f32.mrb[14].mxu0  ;;  %v435_v63 = vpop.f32.mrb[14].mxu1  ;;  %v499_v54 = vsel %vm456_vm2, %v3142_v43, 0.0  ;;  %v2333_v62 = vld [vmem:[#allocation11 + $0x8] sm:$0xff]  }
 0x1bd   :  { %v3096_v56 = vadd.f32 %v3048_v15, %v379_v55  ;;  %v475_v57 = vsel %vm456_vm2, %v3093_v53, 0.0  ;;  %v2147_v58 = vpop.f32.mrb[15].mxu0  ;;  %v3106_v1 = vadd.f32 %v3048_v15, %v435_v63  ;;  %v2175_v2 = vpop.f32.mrb[15].mxu1  ;;  %v3163_v55 = vadd.f32 %v3048_v15, %v3074_v37 }
 0x1be   :  { %476 = vadd.xlane.f32.xlu0 %v475_v57  ;;  %v3169_v57 = vadd.f32 %v3048_v15, %v3086_v47  ;;  %v3175_v58 = vadd.f32 %v3048_v15, %v3090_v50 }
 0x1bf   :  { %v478_v60 = vsel %vm456_vm2, %v3096_v56, 0.0  ;;  %v508_v37 = vsel %vm456_vm2, %v3163_v55, 0.0 }
 0x1c0   :  { %479 = vadd.xlane.f32.xlu1 %v478_v60  ;;  %v511_v59 = vsel %vm456_vm2, %v3169_v57, 0.0  ;;  %v514_v47 = vsel %vm456_vm2, %v3175_v58, 0.0  ;;  %v2332_v60 = vld [vmem:[#allocation11] sm:$0xff]  }
 0x1c1   :  { %2185 = vmatpush3.bf16.msra.mxu1 %v2332_v60 }
 0x1c2   :  { %v384_v3 = vpop.f32.mrb[16].mxu0  ;;  %v440_v10 = vpop.f32.mrb[16].mxu1  ;;  %2186 = vmatprep.subr.bf16.mxu1 %v2779_v0 }
 0x1c3   :  { %v3109_v4 = vadd.f32 %v3048_v15, %v384_v3  ;;  %v2150_v5 = vpop.f32.mrb[17].mxu0  ;;  %v3119_v12 = vadd.f32 %v3048_v15, %v440_v10  ;;  %v2178_v13 = vpop.f32.mrb[17].mxu1 }
 0x1c4   :  { %v387_v6 = vpop.f32.mrb[18].mxu0  ;;  %v443_v14 = vpop.f32.mrb[18].mxu1 }
 0x1c5   :  { %v3112_v7 = vadd.f32 %v3048_v15, %v387_v6  ;;  %v481_v8 = vsel %vm456_vm2, %v3109_v4, 0.0  ;;  %v2151_v9 = vpop.f32.mrb[19].mxu0  ;;  %v3122_v16 = vadd.f32 %v3048_v15, %v443_v14  ;;  %v2179_v18 = vpop.f32.mrb[19].mxu1  ;;  %2187 = vmatpush3.bf16.msra.mxu1 %v2333_v62 }
 0x1c6   :  { %482 = vadd.xlane.f32.xlu0 %v481_v8  ;;  %2188 = vmatprep.subr.bf16.mxu1 %v2779_v0 }
 0x1c7   :  { %v484_v11 = vsel %vm456_vm2, %v3112_v7, 0.0 }
 0x1c8   :  { %485 = vadd.xlane.f32.xlu1 %v484_v11  ;;  %v517_v11 = vsel %vm456_vm2, %v3103_v61, 0.0 }
 0x1ca   :  { %v392_v19 = vpop.f32.mrb[20].mxu0  ;;  %v448_v30 = vpop.f32.mrb[20].mxu1 }
 0x1cb   :  { %v3125_v21 = vadd.f32 %v3048_v15, %v392_v19  ;;  %v2154_v22 = vpop.f32.mrb[21].mxu0  ;;  %v3135_v33 = vadd.f32 %v3048_v15, %v448_v30  ;;  %v2182_v34 = vpop.f32.mrb[21].mxu1  ;;  %v523_v30 = vsel %vm456_vm2, %v3119_v12, 0.0 }
 0x1cc   :  { %v395_v24 = vpop.f32.mrb[22].mxu0  ;;  %v451_v36 = vpop.f32.mrb[22].mxu1 }
 0x1cd   :  { %v3128_v26 = vadd.f32 %v3048_v15, %v395_v24  ;;  %v487_v27 = vsel %vm456_vm2, %v3125_v21, 0.0  ;;  %v2155_v28 = vpop.f32.mrb[23].mxu0  ;;  %v2183_v38 = vpop.f32.mrb[23].mxu1 }
 0x1ce   :  { %488 = vadd.xlane.f32.xlu0 %v487_v27  ;;  %v520_v27 = vsel %vm456_vm2, %v3106_v1, 0.0 }
 0x1cf   :  { %v490_v31 = vsel %vm456_vm2, %v3128_v26, 0.0 }
 0x1d0   :  { %491 = vadd.xlane.f32.xlu1 %v490_v31 }
 0x1d2   :  { %v400_v39 = vpop.f32.mrb[24].mxu0 }
 0x1d3   :  { %v3138_v40 = vadd.f32 %v3048_v15, %v400_v39  ;;  %v2158_v42 = vpop.f32.mrb[25].mxu0 }
 0x1d4   :  { %v403_v45 = vpop.f32.mrb[26].mxu0 }
 0x1d5   :  { %v3145_v46 = vadd.f32 %v3048_v15, %v403_v45  ;;  %v493_v48 = vsel %vm456_vm2, %v3138_v40, 0.0  ;;  %v2159_v51 = vpop.f32.mrb[27].mxu0 }
 0x1d6   :  { %494 = vadd.xlane.f32.xlu0 %v493_v48  ;;  %v526_v48 = vsel %vm456_vm2, %v3122_v16, 0.0 }
 0x1d7   :  { %v496_v52 = vsel %vm456_vm2, %v3145_v46, 0.0 }
 0x1d8   :  { %497 = vadd.xlane.f32.xlu1 %v496_v52 }
 0x1da   :  { %500 = vadd.xlane.f32.xlu0 %v499_v54  ;;  %v529_v54 = vsel %vm456_vm2, %v3135_v33, 0.0 }
 0x1dc   :  { %503 = vadd.xlane.f32.xlu1 %v502_v25 }
 0x1de   :  { %506 = vadd.xlane.f32.xlu0 %v505_v35 }
 0x1e0   :  { %509 = vadd.xlane.f32.xlu1 %v508_v37 }
 0x1e2   :  { %512 = vadd.xlane.f32.xlu0 %v511_v59 }
 0x1e4   :  { %515 = vadd.xlane.f32.xlu1 %v514_v47 }
 0x233   :  { %v459_v15 = vpop.xlane.xlu0 %458 }
 0x234   :  { %v533_v50 = vmul.f32 0.015625, %v459_v15 }
 0x236   :  { %v3186_v63 = vsub.f32 %v3051_v17, %v533_v50 }
 0x237   :  { %v462_v2 = vpop.xlane.xlu0 %461 }
 0x238   :  { %v534_v3 = vmul.f32 0.015625, %v462_v2  ;;  %v583_v5 = vmul.f32 %v3186_v63, %v3186_v63 }
 0x23a   :  { %v3191_v6 = vsub.f32 %v3054_v20, %v534_v3  ;;  %v608_v8 = vsel %vm456_vm2, %v583_v5, 0.0 }
 0x23b   :  { %v465_v9 = vpop.xlane.xlu1 %464  ;;  %609 = vadd.xlane.f32.xlu0 %v608_v8 }
 0x23c   :  { %v535_v10 = vmul.f32 0.015625, %v465_v9  ;;  %v584_v17 = vmul.f32 %v3191_v6, %v3191_v6 }
 0x23e   :  { %v3199_v13 = vsub.f32 %v3065_v29, %v535_v10  ;;  %v611_v14 = vsel %vm456_vm2, %v584_v17, 0.0 }
 0x23f   :  { %v468_v18 = vpop.xlane.xlu1 %467  ;;  %518 = vadd.xlane.f32.xlu0 %v517_v11  ;;  %612 = vadd.xlane.f32.xlu1 %v611_v14 }
 0x240   :  { %v536_v20 = vmul.f32 0.015625, %v468_v18  ;;  %v585_v19 = vmul.f32 %v3199_v13, %v3199_v13 }
 0x242   :  { %v3205_v22 = vsub.f32 %v3068_v32, %v536_v20  ;;  %v614_v24 = vsel %vm456_vm2, %v585_v19, 0.0 }
 0x243   :  { %v471_v28 = vpop.xlane.xlu0 %470  ;;  %615 = vadd.xlane.f32.xlu0 %v614_v24  ;;  %521 = vadd.xlane.f32.xlu1 %v520_v27  ;;  %v2335_v27 = vld [vmem:[#allocation11 + $0x18] sm:$0xff]  }
 0x244   :  { %v537_v29 = vmul.f32 0.015625, %v471_v28  ;;  %v586_v31 = vmul.f32 %v3205_v22, %v3205_v22 }
 0x245   :  { %v474_v34 = vpop.xlane.xlu1 %473 }
 0x246   :  { %v3215_v36 = vsub.f32 %v3079_v41, %v537_v29  ;;  %v538_v32 = vmul.f32 0.015625, %v474_v34  ;;  %v617_v38 = vsel %vm456_vm2, %v586_v31, 0.0 }
 0x247   :  { %524 = vadd.xlane.f32.xlu0 %v523_v30  ;;  %618 = vadd.xlane.f32.xlu1 %v617_v38 }
 0x248   :  { %v3219_v39 = vsub.f32 %v3082_v44, %v538_v32  ;;  %v587_v42 = vmul.f32 %v3215_v36, %v3215_v36 }
 0x24a   :  { %v620_v45 = vsel %vm456_vm2, %v587_v42, 0.0  ;;  %v588_v41 = vmul.f32 %v3219_v39, %v3219_v39 }
 0x24b   :  { %v477_v51 = vpop.xlane.xlu0 %476  ;;  %621 = vadd.xlane.f32.xlu0 %v620_v45  ;;  %527 = vadd.xlane.f32.xlu1 %v526_v48 }
 0x24c   :  { %v539_v52 = vmul.f32 0.015625, %v477_v51  ;;  %v623_v37 = vsel %vm456_vm2, %v588_v41, 0.0 }
 0x24d   :  { %v480_v44 = vpop.xlane.xlu1 %479 }
 0x24e   :  { %v3231_v25 = vsub.f32 %v3093_v53, %v539_v52  ;;  %v540_v35 = vmul.f32 0.015625, %v480_v44 }
 0x24f   :  { %530 = vadd.xlane.f32.xlu0 %v529_v54  ;;  %624 = vadd.xlane.f32.xlu1 %v623_v37 }
 0x250   :  { %v3235_v59 = vsub.f32 %v3096_v56, %v540_v35  ;;  %v589_v47 = vmul.f32 %v3231_v25, %v3231_v25 }
 0x252   :  { %v626_v60 = vsel %vm456_vm2, %v589_v47, 0.0  ;;  %v590_v62 = vmul.f32 %v3235_v59, %v3235_v59 }
 0x253   :  { %v483_v15 = vpop.xlane.xlu0 %482  ;;  %627 = vadd.xlane.f32.xlu1 %v626_v60 }
 0x254   :  { %v541_v53 = vmul.f32 0.015625, %v483_v15  ;;  %v629_v50 = vsel %vm456_vm2, %v590_v62, 0.0 }
 0x255   :  { %v486_v2 = vpop.xlane.xlu1 %485  ;;  %630 = vadd.xlane.f32.xlu0 %v629_v50 }
 0x256   :  { %v3244_v3 = vsub.f32 %v3109_v4, %v541_v53  ;;  %v542_v56 = vmul.f32 0.015625, %v486_v2  ;;  %v2334_v4 = vld [vmem:[#allocation11 + $0x10] sm:$0xff]  }
 0x257   :  { %2189 = vmatpush3.bf16.msra.mxu1 %v2334_v4 }
 0x258   :  { %v3247_v5 = vsub.f32 %v3112_v7, %v542_v56  ;;  %v591_v8 = vmul.f32 %v3244_v3, %v3244_v3  ;;  %2190 = vmatprep.subr.bf16.mxu1 %v2779_v0 }
 0x25a   :  { %v632_v9 = vsel %vm456_vm2, %v591_v8, 0.0  ;;  %v592_v10 = vmul.f32 %v3247_v5, %v3247_v5 }
 0x25b   :  { %v489_v11 = vpop.xlane.xlu0 %488  ;;  %633 = vadd.xlane.f32.xlu1 %v632_v9  ;;  %2191 = vmatpush3.bf16.msra.mxu1 %v2335_v27 }
 0x25c   :  { %v543_v17 = vmul.f32 0.015625, %v489_v11  ;;  %v635_v14 = vsel %vm456_vm2, %v592_v10, 0.0 }
 0x25d   :  { %v492_v18 = vpop.xlane.xlu1 %491  ;;  %636 = vadd.xlane.f32.xlu0 %v635_v14 }
 0x25e   :  { %v3256_v20 = vsub.f32 %v3125_v21, %v543_v17  ;;  %v544_v7 = vmul.f32 0.015625, %v492_v18 }
 0x260   :  { %v3259_v19 = vsub.f32 %v3128_v26, %v544_v7  ;;  %v593_v24 = vmul.f32 %v3256_v20, %v3256_v20 }
 0x262   :  { %v638_v28 = vsel %vm456_vm2, %v593_v24, 0.0  ;;  %v594_v29 = vmul.f32 %v3259_v19, %v3259_v19 }
 0x263   :  { %v495_v30 = vpop.xlane.xlu0 %494  ;;  %639 = vadd.xlane.f32.xlu1 %v638_v28 }
 0x264   :  { %v545_v21 = vmul.f32 0.015625, %v495_v30  ;;  %v641_v31 = vsel %vm456_vm2, %v594_v29, 0.0 }
 0x265   :  { %642 = vadd.xlane.f32.xlu0 %v641_v31  ;;  %v498_v26 = vpop.xlane.xlu1 %497 }
 0x266   :  { %v3269_v34 = vsub.f32 %v3138_v40, %v545_v21  ;;  %v546_v32 = vmul.f32 0.015625, %v498_v26 }
 0x267   :  { %v501_v38 = vpop.xlane.xlu0 %500 }
 0x268   :  { %v3272_v42 = vsub.f32 %v3145_v46, %v546_v32  ;;  %v547_v45 = vmul.f32 0.015625, %v501_v38  ;;  %v595_v48 = vmul.f32 %v3269_v34, %v3269_v34 }
 0x269   :  { %v504_v41 = vpop.xlane.xlu1 %503 }
 0x26a   :  { %v3277_v51 = vsub.f32 %v3142_v43, %v547_v45  ;;  %v548_v52 = vmul.f32 0.015625, %v504_v41  ;;  %v644_v54 = vsel %vm456_vm2, %v595_v48, 0.0  ;;  %v596_v40 = vmul.f32 %v3272_v42, %v3272_v42 }
 0x26b   :  { %v507_v44 = vpop.xlane.xlu0 %506  ;;  %645 = vadd.xlane.f32.xlu1 %v644_v54 }
 0x26c   :  { %v3283_v35 = vsub.f32 %v3151_v49, %v548_v52  ;;  %v549_v46 = vmul.f32 0.015625, %v507_v44  ;;  %v647_v37 = vsel %vm456_vm2, %v596_v40, 0.0  ;;  %v597_v47 = vmul.f32 %v3277_v51, %v3277_v51 }
 0x26d   :  { %648 = vadd.xlane.f32.xlu0 %v647_v37  ;;  %v510_v43 = vpop.xlane.xlu1 %509 }
 0x26e   :  { %v3289_v60 = vsub.f32 %v3157_v23, %v549_v46  ;;  %v550_v62 = vmul.f32 0.015625, %v510_v43  ;;  %v650_v15 = vsel %vm456_vm2, %v597_v47, 0.0  ;;  %v598_v53 = vmul.f32 %v3283_v35, %v3283_v35 }
 0x26f   :  { %v513_v50 = vpop.xlane.xlu0 %512  ;;  %651 = vadd.xlane.f32.xlu1 %v650_v15 }
 0x270   :  { %v3295_v49 = vsub.f32 %v3163_v55, %v550_v62  ;;  %v551_v2 = vmul.f32 0.015625, %v513_v50  ;;  %v653_v56 = vsel %vm456_vm2, %v598_v53, 0.0  ;;  %v599_v8 = vmul.f32 %v3289_v60, %v3289_v60  ;;  %v3327_v62 = vld [vmem:[#allocation8] ss:$0 sm:$0xff] }
 0x271   :  { %654 = vadd.xlane.f32.xlu0 %v653_v56  ;;  %v516_v23 = vpop.xlane.xlu1 %515 }
 0x272   :  { %v3301_v9 = vsub.f32 %v3169_v57, %v551_v2  ;;  %v552_v10 = vmul.f32 0.015625, %v516_v23  ;;  %v656_v11 = vsel %vm456_vm2, %v599_v8, 0.0  ;;  %v600_v17 = vmul.f32 %v3295_v49, %v3295_v49 }
 0x273   :  { %657 = vadd.xlane.f32.xlu1 %v656_v11 }
 0x274   :  { %v3307_v55 = vsub.f32 %v3175_v58, %v552_v10  ;;  %v659_v14 = vsel %vm456_vm2, %v600_v17, 0.0  ;;  %v601_v18 = vmul.f32 %v3301_v9, %v3301_v9 }
 0x275   :  { %660 = vadd.xlane.f32.xlu0 %v659_v14  ;;  %v3337_v14 = vld [vmem:[#allocation10] ss:$0 sm:$0xff] }
 0x276   :  { %v662_v4 = vsel %vm456_vm2, %v601_v18, 0.0  ;;  %v602_v57 = vmul.f32 %v3307_v55, %v3307_v55 }
 0x277   :  { %663 = vadd.xlane.f32.xlu1 %v662_v4 }
 0x278   :  { %v665_v7 = vsel %vm456_vm2, %v602_v57, 0.0 }
 0x279   :  { %666 = vadd.xlane.f32.xlu0 %v665_v7 }
 0x2c8   :  { %v610_v24 = vpop.xlane.xlu0 %609 }
 0x2c9   :  { %v683_v27 = vmul.f32 0.015625, %v610_v24 }
 0x2cb   :  { %v708_v28 = vadd.f32 1e-05, %v683_v27 }
 0x2cc   :  { %v519_v58 = vpop.xlane.xlu0 %518  ;;  %v613_v29 = vpop.xlane.xlu1 %612 }
 0x2cd   :  { %2338 = vrsqrt.f32 %v708_v28  ;;  %v553_v30 = vmul.f32 0.015625, %v519_v58  ;;  %v684_v21 = vmul.f32 0.015625, %v613_v29 }
 0x2cf   :  { %v3317_v31 = vsub.f32 %v3103_v61, %v553_v30  ;;  %v709_v26 = vadd.f32 1e-05, %v684_v21 }
 0x2d0   :  { %v616_v32 = vpop.xlane.xlu0 %615  ;;  %v522_v38 = vpop.xlane.xlu1 %521 }
 0x2d1   :  { %2340 = vrsqrt.f32 %v709_v26  ;;  %v685_v45 = vmul.f32 0.015625, %v616_v32  ;;  %v554_v48 = vmul.f32 0.015625, %v522_v38  ;;  %v603_v41 = vmul.f32 %v3317_v31, %v3317_v31 }
 0x2d3   :  { %v710_v52 = vadd.f32 1e-05, %v685_v45  ;;  %v3322_v54 = vsub.f32 %v3106_v1, %v554_v48  ;;  %v668_v40 = vsel %vm456_vm2, %v603_v41, 0.0 }
 0x2d4   :  { %v525_v44 = vpop.xlane.xlu0 %524  ;;  %669 = vadd.xlane.f32.xlu1 %v668_v40  ;;  %v619_v46 = vpop.xlane.xlu1 %618 }
 0x2d5   :  { %2342 = vrsqrt.f32 %v710_v52  ;;  %v555_v61 = vmul.f32 0.015625, %v525_v44  ;;  %v686_v37 = vmul.f32 0.015625, %v619_v46  ;;  %v604_v47 = vmul.f32 %v3322_v54, %v3322_v54 }
 0x2d7   :  { %v2339_v43 = vpop.eup %2338  ;;  %v3330_v15 = vsub.f32 %v3119_v12, %v555_v61  ;;  %v711_v53 = vadd.f32 1e-05, %v686_v37  ;;  %v671_v1 = vsel %vm456_vm2, %v604_v47, 0.0 }
 0x2d8   :  { %v758_v50 = vmul.f32 %v2339_v43, %v3186_v63  ;;  %v622_v2 = vpop.xlane.xlu0 %621  ;;  %672 = vadd.xlane.f32.xlu0 %v671_v1  ;;  %v528_v56 = vpop.xlane.xlu1 %527 }
 0x2d9   :  { %2344 = vrsqrt.f32 %v711_v53  ;;  %v687_v8 = vmul.f32 0.015625, %v622_v2  ;;  %v556_v23 = vmul.f32 0.015625, %v528_v56  ;;  %v605_v10 = vmul.f32 %v3330_v15, %v3330_v15 }
 0x2da   :  { %v789_v11 = vmul.f32 %v3327_v62, %v758_v50 }
 0x2db   :  { %v2341_v17 = vpop.eup %2340  ;;  %v712_v12 = vadd.f32 1e-05, %v687_v8  ;;  %v3340_v18 = vsub.f32 %v3122_v16, %v556_v23  ;;  %v674_v63 = vsel %vm456_vm2, %v605_v10, 0.0 }
 0x2dc   :  { %v759_v4 = vmul.f32 %v2341_v17, %v3191_v6  ;;  %v531_v57 = vpop.xlane.xlu0 %530  ;;  %675 = vadd.xlane.f32.xlu1 %v674_v63  ;;  %v625_v7 = vpop.xlane.xlu1 %624  ;;  %v820_v58 = vadd.f32 %v3337_v14, %v789_v11 }
 0x2dd   :  { %2346 = vrsqrt.f32 %v712_v12  ;;  %v557_v24 = vmul.f32 0.015625, %v531_v57  ;;  %v688_v27 = vmul.f32 0.015625, %v625_v7  ;;  %v606_v28 = vmul.f32 %v3340_v18, %v3340_v18 }
 0x2de   :  { %v790_v29 = vmul.f32 %v3327_v62, %v759_v4  ;;  %v845_v41 = vmax.f32 %v820_v58, 0.0 }
 0x2df   :  { %v2343_v30 = vpop.eup %2342  ;;  %v3349_v16 = vsub.f32 %v3135_v33, %v557_v24  ;;  %v713_v21 = vadd.f32 1e-05, %v688_v27  ;;  %v677_v6 = vsel %vm456_vm2, %v606_v28, 0.0 }
 0x2e0   :  { %v821_v26 = vadd.f32 %v3337_v14, %v790_v29  ;;  %v760_v32 = vmul.f32 %v2343_v30, %v3199_v13  ;;  %678 = vadd.xlane.f32.xlu0 %v677_v6  ;;  %v628_v38 = vpop.xlane.xlu1 %627 }
 0x2e1   :  { %2348 = vrsqrt.f32 %v713_v21  ;;  %v689_v45 = vmul.f32 0.015625, %v628_v38  ;;  %v607_v48 = vmul.f32 %v3349_v16, %v3349_v16 }
 0x2e2   :  { %v846_v52 = vmax.f32 %v821_v26, 0.0  ;;  %v631_v40 = vpop.xlane.xlu0 %630  ;;  %v791_v33 = vmul.f32 %v3327_v62, %v760_v32 }
 0x2e3   :  { %v2345_v44 = vpop.eup %2344  ;;  %v714_v46 = vadd.f32 1e-05, %v689_v45  ;;  %v690_v61 = vmul.f32 0.015625, %v631_v40  ;;  %v680_v37 = vsel %vm456_vm2, %v607_v48, 0.0 }
 0x2e4   :  { %v761_v47 = vmul.f32 %v2345_v44, %v3205_v22  ;;  %681 = vadd.xlane.f32.xlu1 %v680_v37  ;;  %v870_v13 = vpack.c.bf16 %v846_v52, %v845_v41  ;;  %v822_v1 = vadd.f32 %v3337_v14, %v791_v33 }
 0x2e5   :  { %2350 = vrsqrt.f32 %v714_v46  ;;  %v715_v43 = vadd.f32 1e-05, %v690_v61 }
 0x2e6   :  { %2193 = vmatmul.mubr.msk.bf16.vlgmr.msra.gmra.mrb[24].mxu1 %vm456_vm2, %v870_v13  ;;  %v792_v53 = vmul.f32 %v3327_v62, %v761_v47  ;;  %v847_v10 = vmax.f32 %v822_v1, 0.0 }
 0x2e7   :  { %v2347_v50 = vpop.eup %2346  ;;  %2352 = vrsqrt.f32 %v715_v43  ;;  %2196 = vmatprep.mubr.msk.bf16.mxu1 %vm2780_vm0, %v2779_v0 }
 0x2e8   :  { %v762_v2 = vmul.f32 %v2347_v50, %v3215_v36  ;;  %v634_v56 = vpop.xlane.xlu1 %633  ;;  %v823_v22 = vadd.f32 %v3337_v14, %v792_v53 }
 0x2e9   :  { %v691_v8 = vmul.f32 0.015625, %v634_v56 }
 0x2ea   :  { %v637_v23 = vpop.xlane.xlu0 %636  ;;  %v848_v11 = vmax.f32 %v823_v22, 0.0  ;;  %v793_v17 = vmul.f32 %v3327_v62, %v762_v2 }
 0x2eb   :  { %v2349_v12 = vpop.eup %2348  ;;  %v716_v63 = vadd.f32 1e-05, %v691_v8  ;;  %v692_v4 = vmul.f32 0.015625, %v637_v23 }
 0x2ec   :  { %v763_v57 = vmul.f32 %v2349_v12, %v3219_v39  ;;  %v871_v7 = vpack.c.bf16 %v848_v11, %v847_v10  ;;  %v824_v27 = vadd.f32 %v3337_v14, %v793_v17 }
 0x2ed   :  { %2354 = vrsqrt.f32 %v716_v63  ;;  %v717_v24 = vadd.f32 1e-05, %v692_v4 }
 0x2ee   :  { %2197 = vmatmul.mubr.msk.bf16.gmra.mrb[28].mxu1 %vm456_vm2, %v871_v7  ;;  %v794_v36 = vmul.f32 %v3327_v62, %v763_v57  ;;  %v849_v32 = vmax.f32 %v824_v27, 0.0 }
 0x2ef   :  { %v2351_v28 = vpop.eup %2350  ;;  %2356 = vrsqrt.f32 %v717_v24  ;;  %2200 = vmatprep.mubr.msk.bf16.mxu1 %vm2780_vm0, %v2779_v0 }
 0x2f0   :  { %v764_v58 = vmul.f32 %v2351_v28, %v3231_v25  ;;  %v640_v29 = vpop.xlane.xlu1 %639  ;;  %v825_v30 = vadd.f32 %v3337_v14, %v794_v36 }
 0x2f1   :  { %v2353_v39 = vpop.eup %2352  ;;  %v693_v21 = vmul.f32 0.015625, %v640_v29 }
 0x2f2   :  { %v765_v6 = vmul.f32 %v2353_v39, %v3235_v59  ;;  %v643_v26 = vpop.xlane.xlu0 %642  ;;  %v850_v38 = vmax.f32 %v825_v30, 0.0  ;;  %v795_v45 = vmul.f32 %v3327_v62, %v764_v58 }
 0x2f3   :  { %v718_v48 = vadd.f32 1e-05, %v693_v21  ;;  %v694_v41 = vmul.f32 0.015625, %v643_v26 }
 0x2f4   :  { %v872_v52 = vpack.c.bf16 %v850_v38, %v849_v32  ;;  %v796_v40 = vmul.f32 %v3327_v62, %v765_v6  ;;  %v826_v25 = vadd.f32 %v3337_v14, %v795_v45 }
 0x2f5   :  { %2358 = vrsqrt.f32 %v718_v48  ;;  %v719_v33 = vadd.f32 1e-05, %v694_v41 }
 0x2f6   :  { %2201 = vmatmul.mubr.msk.bf16.gmra.mrb[32].mxu1 %vm456_vm2, %v872_v52  ;;  %v827_v44 = vadd.f32 %v3337_v14, %v796_v40  ;;  %v851_v1 = vmax.f32 %v826_v25, 0.0 }
 0x2f7   :  { %v2355_v46 = vpop.eup %2354  ;;  %2360 = vrsqrt.f32 %v719_v33  ;;  %2204 = vmatprep.mubr.msk.bf16.mxu1 %vm2780_vm0, %v2779_v0 }
 0x2f8   :  { %v766_v59 = vmul.f32 %v2355_v46, %v3244_v3  ;;  %v646_v61 = vpop.xlane.xlu1 %645  ;;  %v852_v37 = vmax.f32 %v827_v44, 0.0 }
 0x2f9   :  { %v2357_v47 = vpop.eup %2356  ;;  %v695_v13 = vmul.f32 0.015625, %v646_v61 }
 0x2fa   :  { %v767_v43 = vmul.f32 %v2357_v47, %v3247_v5  ;;  %v649_v53 = vpop.xlane.xlu0 %648  ;;  %v797_v50 = vmul.f32 %v3327_v62, %v766_v59  ;;  %v873_v8 = vpack.c.bf16 %v852_v37, %v851_v1 }
 0x2fb   :  { %v720_v2 = vadd.f32 1e-05, %v695_v13  ;;  %v696_v56 = vmul.f32 0.015625, %v649_v53 }
 0x2fc   :  { %v652_v22 = vpop.xlane.xlu1 %651  ;;  %v798_v23 = vmul.f32 %v3327_v62, %v767_v43  ;;  %v828_v17 = vadd.f32 %v3337_v14, %v797_v50 }
 0x2fd   :  { %2362 = vrsqrt.f32 %v720_v2  ;;  %v721_v10 = vadd.f32 1e-05, %v696_v56  ;;  %v697_v11 = vmul.f32 0.015625, %v652_v22 }
 0x2fe   :  { %v655_v3 = vpop.xlane.xlu0 %654  ;;  %2205 = vmatmul.mubr.msk.bf16.gmra.mrb[36].mxu1 %vm456_vm2, %v873_v8  ;;  %v829_v5 = vadd.f32 %v3337_v14, %v798_v23  ;;  %v853_v30 = vmax.f32 %v828_v17, 0.0 }
 0x2ff   :  { %v2359_v12 = vpop.eup %2358  ;;  %2364 = vrsqrt.f32 %v721_v10  ;;  %v722_v63 = vadd.f32 1e-05, %v697_v11  ;;  %v698_v4 = vmul.f32 0.015625, %v655_v3  ;;  %2208 = vmatprep.mubr.msk.bf16.mxu1 %vm2780_vm0, %v2779_v0 }
 0x300   :  { %v768_v57 = vmul.f32 %v2359_v12, %v3256_v20  ;;  %v658_v7 = vpop.xlane.xlu1 %657  ;;  %v854_v24 = vmax.f32 %v829_v5, 0.0 }
 0x301   :  { %v2361_v36 = vpop.eup %2360  ;;  %2366 = vrsqrt.f32 %v722_v63  ;;  %v723_v27 = vadd.f32 1e-05, %v698_v4  ;;  %v699_v28 = vmul.f32 0.015625, %v658_v7 }
 0x302   :  { %v769_v58 = vmul.f32 %v2361_v36, %v3259_v19  ;;  %v661_v29 = vpop.xlane.xlu0 %660  ;;  %v799_v39 = vmul.f32 %v3327_v62, %v768_v57  ;;  %v874_v6 = vpack.c.bf16 %v854_v24, %v853_v30 }
 0x303   :  { %2368 = vrsqrt.f32 %v723_v27  ;;  %v700_v21 = vmul.f32 0.015625, %v661_v29  ;;  %v724_v32 = vadd.f32 1e-05, %v699_v28 }
 0x304   :  { %v800_v26 = vmul.f32 %v3327_v62, %v769_v58  ;;  %v664_v20 = vpop.xlane.xlu1 %663  ;;  %v830_v48 = vadd.f32 %v3337_v14, %v799_v39 }
 0x305   :  { %v725_v38 = vadd.f32 1e-05, %v700_v21  ;;  %v701_v44 = vmul.f32 0.015625, %v664_v20 }
 0x306   :  { %v667_v45 = vpop.xlane.xlu0 %666  ;;  %2209 = vmatmul.mubr.msk.bf16.gmra.mrb[40].mxu1 %vm456_vm2, %v874_v6  ;;  %v831_v41 = vadd.f32 %v3337_v14, %v800_v26  ;;  %v855_v59 = vmax.f32 %v830_v48, 0.0 }
 0x307   :  { %v2363_v19 = vpop.eup %2362  ;;  %2370 = vrsqrt.f32 %v725_v38  ;;  %v702_v52 = vmul.f32 0.015625, %v667_v45  ;;  %2212 = vmatprep.mubr.msk.bf16.mxu1 %vm2780_vm0, %v2779_v0  ;;  %v726_v1 = vadd.f32 1e-05, %v701_v44 }
 0x308   :  { %v770_v40 = vmul.f32 %v2363_v19, %v3269_v34  ;;  %v856_v33 = vmax.f32 %v831_v41, 0.0  ;;  %2372 = vrsqrt.f32 %v724_v32 }
 0x309   :  { %v2365_v25 = vpop.eup %2364  ;;  %v727_v47 = vadd.f32 1e-05, %v702_v52 }
 0x30a   :  { %v771_v46 = vmul.f32 %v2365_v25, %v3272_v42  ;;  %v801_v61 = vmul.f32 %v3327_v62, %v770_v40  ;;  %v875_v13 = vpack.c.bf16 %v856_v33, %v855_v59 }
 0x30b   :  { %v2367_v37 = vpop.eup %2366  ;;  %2374 = vrsqrt.f32 %v727_v47 }
 0x30c   :  { %v802_v43 = vmul.f32 %v3327_v62, %v771_v46  ;;  %v772_v50 = vmul.f32 %v2367_v37, %v3277_v51  ;;  %v832_v2 = vadd.f32 %v3337_v14, %v801_v61  ;;  %2376 = vrsqrt.f32 %v726_v1 }
 0x30d   :  { %v2369_v53 = vpop.eup %2368 }
 0x30e   :  { %v773_v34 = vmul.f32 %v2369_v53, %v3283_v35  ;;  %2213 = vmatmul.mubr.msk.bf16.gmra.mrb[44].mxu1 %vm456_vm2, %v875_v13  ;;  %v833_v42 = vadd.f32 %v3337_v14, %v802_v43  ;;  %v857_v23 = vmax.f32 %v832_v2, 0.0  ;;  %v803_v51 = vmul.f32 %v3327_v62, %v772_v50 }
 0x30f   :  { %2216 = vmatprep.mubr.msk.bf16.mxu1 %vm2780_vm0, %v2779_v0 }
 0x310   :  { %v858_v56 = vmax.f32 %v833_v42, 0.0  ;;  %v804_v22 = vmul.f32 %v3327_v62, %v773_v34  ;;  %v834_v5 = vadd.f32 %v3337_v14, %v803_v51 }
 0x311   :  { %v2371_v8 = vpop.eup %2370 }
 0x312   :  { %v2373_v10 = vpop.eup %2372  ;;  %v775_v35 = vmul.f32 %v2371_v8, %v3295_v49  ;;  %v876_v11 = vpack.c.bf16 %v858_v56, %v857_v23  ;;  %v835_v3 = vadd.f32 %v3337_v14, %v804_v22  ;;  %v859_v57 = vmax.f32 %v834_v5, 0.0 }
 0x313   :  { %v774_v17 = vmul.f32 %v2373_v10, %v3289_v60 }
 0x314   :  { %v860_v12 = vmax.f32 %v835_v3, 0.0  ;;  %v806_v63 = vmul.f32 %v3327_v62, %v775_v35 }
 0x315   :  { %v2375_v4 = vpop.eup %2374  ;;  %v805_v7 = vmul.f32 %v3327_v62, %v774_v17 }
 0x316   :  { %2217 = vmatmul.mubr.msk.bf16.gmra.mrb[48].mxu1 %vm456_vm2, %v876_v11  ;;  %v2377_v49 = vpop.eup %2376  ;;  %v777_v24 = vmul.f32 %v2375_v4, %v3307_v55  ;;  %v877_v36 = vpack.c.bf16 %v860_v12, %v859_v57  ;;  %v837_v60 = vadd.f32 %v3337_v14, %v806_v63 }
 0x317   :  { %2220 = vmatprep.mubr.msk.bf16.mxu1 %vm2780_vm0, %v2779_v0  ;;  %v776_v27 = vmul.f32 %v2377_v49, %v3301_v9  ;;  %v836_v28 = vadd.f32 %v3337_v14, %v805_v7  ;;  %v3462_v7 = vld [vmem:[#allocation13] ss:$0 sm:$0xff] }
 0x318   :  { %v862_v58 = vmax.f32 %v837_v60, 0.0  ;;  %v808_v29 = vmul.f32 %v3327_v62, %v777_v24 }
 0x319   :  { %v861_v30 = vmax.f32 %v836_v28, 0.0  ;;  %v807_v39 = vmul.f32 %v3327_v62, %v776_v27 }
 0x31a   :  { %v839_v55 = vadd.f32 %v3337_v14, %v808_v29 }
 0x31b   :  { %v878_v21 = vpack.c.bf16 %v862_v58, %v861_v30  ;;  %v838_v9 = vadd.f32 %v3337_v14, %v807_v39 }
 0x31c   :  { %v864_v6 = vmax.f32 %v839_v55, 0.0 }
 0x31d   :  { %v863_v26 = vmax.f32 %v838_v9, 0.0 }
 0x31e   :  { %2221 = vmatmul.mubr.msk.bf16.gmra.mrb[52].mxu1 %vm456_vm2, %v877_v36 }
 0x31f   :  { %2224 = vmatprep.mubr.msk.bf16.mxu1 %vm2780_vm0, %v2779_v0  ;;  %v879_v32 = vpack.c.bf16 %v864_v6, %v863_v26 }
 0x326   :  { %2225 = vmatmul.mubr.msk.bf16.gmra.mrb[56].mxu1 %vm456_vm2, %v878_v21 }
 0x327   :  { %2228 = vmatprep.mubr.msk.bf16.mxu1 %vm2780_vm0, %v2779_v0 }
 0x32e   :  { %2229 = vmatmul.mubr.msk.bf16.gmra.mrb[60].mxu1 %vm456_vm2, %v879_v32 }
 0x32f   :  { %2232 = vmatprep.mubr.msk.bf16.mxu1 %vm2780_vm0, %v2779_v0 }
 0x361   :  { %v670_v38 = vpop.xlane.xlu1 %669 }
 0x362   :  { %v703_v20 = vmul.f32 0.015625, %v670_v38 }
 0x364   :  { %v728_v45 = vadd.f32 1e-05, %v703_v20 }
 0x365   :  { %v673_v48 = vpop.xlane.xlu0 %672 }
 0x366   :  { %2378 = vrsqrt.f32 %v728_v45  ;;  %v704_v41 = vmul.f32 0.015625, %v673_v48 }
 0x368   :  { %v729_v19 = vadd.f32 1e-05, %v704_v41 }
 0x369   :  { %v676_v52 = vpop.xlane.xlu1 %675 }
 0x36a   :  { %2380 = vrsqrt.f32 %v729_v19  ;;  %v705_v40 = vmul.f32 0.015625, %v676_v52 }
 0x36c   :  { %v730_v33 = vadd.f32 1e-05, %v705_v40 }
 0x36d   :  { %v679_v25 = vpop.xlane.xlu0 %678 }
 0x36e   :  { %2382 = vrsqrt.f32 %v730_v33  ;;  %v706_v44 = vmul.f32 0.015625, %v679_v25 }
 0x370   :  { %v2379_v46 = vpop.eup %2378  ;;  %v731_v59 = vadd.f32 1e-05, %v706_v44 }
 0x371   :  { %v778_v61 = vmul.f32 %v2379_v46, %v3317_v31  ;;  %v682_v37 = vpop.xlane.xlu1 %681 }
 0x372   :  { %2384 = vrsqrt.f32 %v731_v59  ;;  %v707_v47 = vmul.f32 0.015625, %v682_v37 }
 0x373   :  { %v809_v13 = vmul.f32 %v3327_v62, %v778_v61 }
 0x374   :  { %v2381_v43 = vpop.eup %2380  ;;  %v732_v53 = vadd.f32 1e-05, %v707_v47 }
 0x375   :  { %v779_v1 = vmul.f32 %v2381_v43, %v3322_v54  ;;  %v840_v34 = vadd.f32 %v3337_v14, %v809_v13 }
 0x376   :  { %2386 = vrsqrt.f32 %v732_v53 }
 0x377   :  { %v810_v50 = vmul.f32 %v3327_v62, %v779_v1  ;;  %v865_v31 = vmax.f32 %v840_v34, 0.0 }
 0x378   :  { %v2383_v2 = vpop.eup %2382 }
 0x379   :  { %v780_v42 = vmul.f32 %v2383_v2, %v3330_v15  ;;  %v841_v56 = vadd.f32 %v3337_v14, %v810_v50 }
 0x37b   :  { %v866_v22 = vmax.f32 %v841_v56, 0.0  ;;  %v811_v8 = vmul.f32 %v3327_v62, %v780_v42 }
 0x37c   :  { %v2385_v23 = vpop.eup %2384 }
 0x37d   :  { %v781_v51 = vmul.f32 %v2385_v23, %v3340_v18  ;;  %v880_v10 = vpack.c.bf16 %v866_v22, %v865_v31  ;;  %v842_v35 = vadd.f32 %v3337_v14, %v811_v8 }
 0x37f   :  { %2233 = vmatmul.mubr.msk.bf16.gmra.mrb[64].mxu1 %vm456_vm2, %v880_v10  ;;  %v812_v54 = vmul.f32 %v3327_v62, %v781_v51  ;;  %v867_v17 = vmax.f32 %v842_v35, 0.0 }
 0x380   :  { %v2387_v11 = vpop.eup %2386  ;;  %2236 = vmatprep.mubr.msk.bf16.mxu1 %vm2780_vm0, %v2779_v0 }
 0x381   :  { %v843_v15 = vadd.f32 %v3337_v14, %v812_v54  ;;  %v782_v3 = vmul.f32 %v2387_v11, %v3349_v16 }
 0x383   :  { %v868_v5 = vmax.f32 %v843_v15, 0.0  ;;  %v813_v12 = vmul.f32 %v3327_v62, %v782_v3 }
 0x385   :  { %v881_v18 = vpack.c.bf16 %v868_v5, %v867_v17  ;;  %v844_v63 = vadd.f32 %v3337_v14, %v813_v12 }
 0x387   :  { %2237 = vmatmul.mubr.msk.bf16.gmra.mrb[68].mxu1 %vm456_vm2, %v881_v18  ;;  %v869_v4 = vmax.f32 %v844_v63, 0.0 }
 0x388   :  { %2240 = vmatprep.mubr.msk.bf16.mxu1 %vm2780_vm0, %v2779_v0 }
 0x389   :  { %v882_v57 = vpack.c.bf16 %v869_v4, %v869_v4 }
 0x38f   :  { %2241 = vmatmul.mubr.msk.bf16.gmra.mrb[72].mxu1 %vm456_vm2, %v882_v57 }
 0x3b9   :  { %v995_v49 = vpop.f32.mrb[24].mxu1 }
 0x3ba   :  { %v3465_v16 = vadd.f32 %v3462_v7, %v995_v49  ;;  %v2194_v62 = vpop.f32.mrb[25].mxu1 }
 0x3bb   :  { %v998_v24 = vpop.f32.mrb[26].mxu1 }
 0x3bc   :  { %v3468_v14 = vadd.f32 %v3462_v7, %v998_v24  ;;  %v2195_v36 = vpop.f32.mrb[27].mxu1  ;;  %v1100_v60 = vsel %vm1099_vm3, %v3465_v16, 0.0 }
 0x3bd   :  { %1101 = vadd.xlane.f32.xlu0 %v1100_v60 }
 0x3be   :  { %v1103_v27 = vsel %vm1099_vm3, %v3468_v14, 0.0 }
 0x3bf   :  { %1104 = vadd.xlane.f32.xlu1 %v1103_v27 }
 0x3c1   :  { %v1003_v28 = vpop.f32.mrb[28].mxu1 }
 0x3c2   :  { %v3475_v58 = vadd.f32 %v3462_v7, %v1003_v28  ;;  %v2198_v29 = vpop.f32.mrb[29].mxu1 }
 0x3c3   :  { %v1006_v30 = vpop.f32.mrb[30].mxu1 }
 0x3c4   :  { %v3478_v39 = vadd.f32 %v3462_v7, %v1006_v30  ;;  %v2199_v21 = vpop.f32.mrb[31].mxu1  ;;  %v1106_v55 = vsel %vm1099_vm3, %v3475_v58, 0.0 }
 0x3c5   :  { %1107 = vadd.xlane.f32.xlu0 %v1106_v55 }
 0x3c6   :  { %v1109_v9 = vsel %vm1099_vm3, %v3478_v39, 0.0 }
 0x3c7   :  { %1110 = vadd.xlane.f32.xlu1 %v1109_v9 }
 0x3c9   :  { %v1011_v6 = vpop.f32.mrb[32].mxu1 }
 0x3ca   :  { %v3485_v26 = vadd.f32 %v3462_v7, %v1011_v6  ;;  %v2202_v32 = vpop.f32.mrb[33].mxu1 }
 0x3cb   :  { %v1014_v38 = vpop.f32.mrb[34].mxu1 }
 0x3cc   :  { %v3488_v20 = vadd.f32 %v3462_v7, %v1014_v38  ;;  %v2203_v45 = vpop.f32.mrb[35].mxu1  ;;  %v1112_v48 = vsel %vm1099_vm3, %v3485_v26, 0.0 }
 0x3cd   :  { %1113 = vadd.xlane.f32.xlu0 %v1112_v48 }
 0x3ce   :  { %v1115_v41 = vsel %vm1099_vm3, %v3488_v20, 0.0 }
 0x3cf   :  { %1116 = vadd.xlane.f32.xlu1 %v1115_v41 }
 0x3d1   :  { %v1019_v19 = vpop.f32.mrb[36].mxu1 }
 0x3d2   :  { %v3495_v52 = vadd.f32 %v3462_v7, %v1019_v19  ;;  %v2206_v40 = vpop.f32.mrb[37].mxu1 }
 0x3d3   :  { %v1022_v33 = vpop.f32.mrb[38].mxu1 }
 0x3d4   :  { %v3498_v25 = vadd.f32 %v3462_v7, %v1022_v33  ;;  %v2207_v44 = vpop.f32.mrb[39].mxu1  ;;  %v1118_v46 = vsel %vm1099_vm3, %v3495_v52, 0.0 }
 0x3d5   :  { %1119 = vadd.xlane.f32.xlu0 %v1118_v46 }
 0x3d6   :  { %v1121_v59 = vsel %vm1099_vm3, %v3498_v25, 0.0 }
 0x3d7   :  { %1122 = vadd.xlane.f32.xlu1 %v1121_v59 }
 0x3d9   :  { %v1027_v61 = vpop.f32.mrb[40].mxu1 }
 0x3da   :  { %v3505_v37 = vadd.f32 %v3462_v7, %v1027_v61  ;;  %v2210_v47 = vpop.f32.mrb[41].mxu1 }
 0x3db   :  { %v1030_v13 = vpop.f32.mrb[42].mxu1 }
 0x3dc   :  { %v3508_v43 = vadd.f32 %v3462_v7, %v1030_v13  ;;  %v2211_v53 = vpop.f32.mrb[43].mxu1  ;;  %v1124_v1 = vsel %vm1099_vm3, %v3505_v37, 0.0 }
 0x3dd   :  { %1125 = vadd.xlane.f32.xlu0 %v1124_v1 }
 0x3de   :  { %v1127_v50 = vsel %vm1099_vm3, %v3508_v43, 0.0 }
 0x3df   :  { %1128 = vadd.xlane.f32.xlu1 %v1127_v50 }
 0x3e1   :  { %v1035_v34 = vpop.f32.mrb[44].mxu1 }
 0x3e2   :  { %v3515_v2 = vadd.f32 %v3462_v7, %v1035_v34  ;;  %v2214_v42 = vpop.f32.mrb[45].mxu1 }
 0x3e3   :  { %v1038_v56 = vpop.f32.mrb[46].mxu1 }
 0x3e4   :  { %v3518_v31 = vadd.f32 %v3462_v7, %v1038_v56  ;;  %v2215_v22 = vpop.f32.mrb[47].mxu1  ;;  %v1130_v8 = vsel %vm1099_vm3, %v3515_v2, 0.0 }
 0x3e5   :  { %1131 = vadd.xlane.f32.xlu0 %v1130_v8 }
 0x3e6   :  { %v1133_v23 = vsel %vm1099_vm3, %v3518_v31, 0.0 }
 0x3e7   :  { %1134 = vadd.xlane.f32.xlu1 %v1133_v23 }
 0x3e9   :  { %v1043_v51 = vpop.f32.mrb[48].mxu1 }
 0x3ea   :  { %v3525_v10 = vadd.f32 %v3462_v7, %v1043_v51  ;;  %v2218_v54 = vpop.f32.mrb[49].mxu1 }
 0x3eb   :  { %v1046_v35 = vpop.f32.mrb[50].mxu1 }
 0x3ec   :  { %v3528_v11 = vadd.f32 %v3462_v7, %v1046_v35  ;;  %v2219_v15 = vpop.f32.mrb[51].mxu1  ;;  %v1136_v3 = vsel %vm1099_vm3, %v3525_v10, 0.0 }
 0x3ed   :  { %1137 = vadd.xlane.f32.xlu0 %v1136_v3 }
 0x3ee   :  { %v1139_v17 = vsel %vm1099_vm3, %v3528_v11, 0.0 }
 0x3ef   :  { %1140 = vadd.xlane.f32.xlu1 %v1139_v17 }
 0x3f1   :  { %v1051_v5 = vpop.f32.mrb[52].mxu1 }
 0x3f2   :  { %v3535_v12 = vadd.f32 %v3462_v7, %v1051_v5  ;;  %v2222_v18 = vpop.f32.mrb[53].mxu1 }
 0x3f3   :  { %v1054_v63 = vpop.f32.mrb[54].mxu1 }
 0x3f4   :  { %v3538_v4 = vadd.f32 %v3462_v7, %v1054_v63  ;;  %v2223_v57 = vpop.f32.mrb[55].mxu1  ;;  %v1142_v49 = vsel %vm1099_vm3, %v3535_v12, 0.0 }
 0x3f5   :  { %1143 = vadd.xlane.f32.xlu0 %v1142_v49 }
 0x3f6   :  { %v1145_v62 = vsel %vm1099_vm3, %v3538_v4, 0.0 }
 0x3f7   :  { %1146 = vadd.xlane.f32.xlu1 %v1145_v62 }
 0x3f9   :  { %v1059_v24 = vpop.f32.mrb[56].mxu1 }
 0x3fa   :  { %v3545_v36 = vadd.f32 %v3462_v7, %v1059_v24  ;;  %v2226_v60 = vpop.f32.mrb[57].mxu1 }
 0x3fb   :  { %v1062_v27 = vpop.f32.mrb[58].mxu1 }
 0x3fc   :  { %v3548_v28 = vadd.f32 %v3462_v7, %v1062_v27  ;;  %v2227_v29 = vpop.f32.mrb[59].mxu1  ;;  %v1148_v30 = vsel %vm1099_vm3, %v3545_v36, 0.0 }
 0x3fd   :  { %1149 = vadd.xlane.f32.xlu0 %v1148_v30 }
 0x3fe   :  { %v1151_v21 = vsel %vm1099_vm3, %v3548_v28, 0.0 }
 0x3ff   :  { %1152 = vadd.xlane.f32.xlu1 %v1151_v21 }
 0x401   :  { %v1067_v55 = vpop.f32.mrb[60].mxu1 }
 0x402   :  { %v3555_v9 = vadd.f32 %v3462_v7, %v1067_v55  ;;  %v2230_v6 = vpop.f32.mrb[61].mxu1 }
 0x403   :  { %v1070_v32 = vpop.f32.mrb[62].mxu1 }
 0x404   :  { %v3558_v38 = vadd.f32 %v3462_v7, %v1070_v32  ;;  %v2231_v45 = vpop.f32.mrb[63].mxu1  ;;  %v1154_v48 = vsel %vm1099_vm3, %v3555_v9, 0.0 }
 0x405   :  { %1155 = vadd.xlane.f32.xlu0 %v1154_v48 }
 0x406   :  { %v1157_v41 = vsel %vm1099_vm3, %v3558_v38, 0.0 }
 0x407   :  { %1158 = vadd.xlane.f32.xlu1 %v1157_v41 }
 0x44a   :  { %v1102_v19 = vpop.xlane.xlu0 %1101 }
 0x44b   :  { %v1176_v40 = vmul.f32 0.03125, %v1102_v19 }
 0x44c   :  { %v1105_v33 = vpop.xlane.xlu1 %1104 }
 0x44d   :  { %v3565_v44 = vsub.f32 %v3465_v16, %v1176_v40  ;;  %v1177_v46 = vmul.f32 0.03125, %v1105_v33 }
 0x44f   :  { %v3568_v59 = vsub.f32 %v3468_v14, %v1177_v46  ;;  %v1226_v61 = vmul.f32 %v3565_v44, %v3565_v44 }
 0x451   :  { %v1251_v47 = vsel %vm1099_vm3, %v1226_v61, 0.0  ;;  %v1227_v13 = vmul.f32 %v3568_v59, %v3568_v59 }
 0x452   :  { %v1108_v53 = vpop.xlane.xlu0 %1107  ;;  %1252 = vadd.xlane.f32.xlu0 %v1251_v47  ;;  %v1075_v1 = vpop.f32.mrb[64].mxu1 }
 0x453   :  { %v1178_v50 = vmul.f32 0.03125, %v1108_v53  ;;  %v3576_v34 = vadd.f32 %v3462_v7, %v1075_v1  ;;  %v2234_v16 = vpop.f32.mrb[65].mxu1  ;;  %v1254_v42 = vsel %vm1099_vm3, %v1227_v13, 0.0 }
 0x454   :  { %v1078_v14 = vpop.f32.mrb[66].mxu1  ;;  %1255 = vadd.xlane.f32.xlu1 %v1254_v42  ;;  %v1111_v56 = vpop.xlane.xlu1 %1110 }
 0x455   :  { %v3580_v22 = vsub.f32 %v3475_v58, %v1178_v50  ;;  %v3583_v8 = vadd.f32 %v3462_v7, %v1078_v14  ;;  %v1179_v23 = vmul.f32 0.03125, %v1111_v56  ;;  %v2235_v51 = vpop.f32.mrb[67].mxu1  ;;  %v1160_v54 = vsel %vm1099_vm3, %v3576_v34, 0.0 }
 0x456   :  { %1161 = vadd.xlane.f32.xlu0 %v1160_v54 }
 0x457   :  { %v3588_v35 = vsub.f32 %v3478_v39, %v1179_v23  ;;  %v1163_v15 = vsel %vm1099_vm3, %v3583_v8, 0.0  ;;  %v1228_v3 = vmul.f32 %v3580_v22, %v3580_v22 }
 0x458   :  { %1164 = vadd.xlane.f32.xlu1 %v1163_v15 }
 0x459   :  { %v1257_v58 = vsel %vm1099_vm3, %v1228_v3, 0.0  ;;  %v1229_v17 = vmul.f32 %v3588_v35, %v3588_v35 }
 0x45a   :  { %v1114_v5 = vpop.xlane.xlu0 %1113  ;;  %1258 = vadd.xlane.f32.xlu0 %v1257_v58  ;;  %v1083_v18 = vpop.f32.mrb[68].mxu1 }
 0x45b   :  { %v1180_v63 = vmul.f32 0.03125, %v1114_v5  ;;  %v3598_v57 = vadd.f32 %v3462_v7, %v1083_v18  ;;  %v2238_v39 = vpop.f32.mrb[69].mxu1  ;;  %v1260_v49 = vsel %vm1099_vm3, %v1229_v17, 0.0 }
 0x45c   :  { %v1086_v62 = vpop.f32.mrb[70].mxu1  ;;  %1261 = vadd.xlane.f32.xlu1 %v1260_v49  ;;  %v1117_v24 = vpop.xlane.xlu1 %1116 }
 0x45d   :  { %v3602_v60 = vsub.f32 %v3485_v26, %v1180_v63  ;;  %v3605_v27 = vadd.f32 %v3462_v7, %v1086_v62  ;;  %v1181_v29 = vmul.f32 0.03125, %v1117_v24  ;;  %v2239_v30 = vpop.f32.mrb[71].mxu1  ;;  %v1166_v21 = vsel %vm1099_vm3, %v3598_v57, 0.0  ;;  %v2336_v63 = vld [vmem:[#allocation17] sm:$0xff]   ;;  %v2337_v24 = vld [vmem:[#allocation17 + $0x8] sm:$0xff]  }
 0x45e   :  { %1167 = vadd.xlane.f32.xlu0 %v1166_v21  ;;  %2245 = vmatpush3.bf16.msra.mxu0 %v2336_v63 }
 0x45f   :  { %v3610_v55 = vsub.f32 %v3488_v20, %v1181_v29  ;;  %v1169_v6 = vsel %vm1099_vm3, %v3605_v27, 0.0  ;;  %v1230_v32 = vmul.f32 %v3602_v60, %v3602_v60  ;;  %2246 = vmatprep.subr.bf16.mxu0 %v2779_v0 }
 0x460   :  { %1170 = vadd.xlane.f32.xlu1 %v1169_v6 }
 0x461   :  { %v1263_v26 = vsel %vm1099_vm3, %v1230_v32, 0.0  ;;  %v1231_v45 = vmul.f32 %v3610_v55, %v3610_v55 }
 0x462   :  { %v1120_v48 = vpop.xlane.xlu0 %1119  ;;  %1264 = vadd.xlane.f32.xlu0 %v1263_v26  ;;  %v1091_v41 = vpop.f32.mrb[72].mxu1  ;;  %2247 = vmatpush3.bf16.msra.mxu0 %v2337_v24 }
 0x463   :  { %v1182_v19 = vmul.f32 0.03125, %v1120_v48  ;;  %v3620_v40 = vadd.f32 %v3462_v7, %v1091_v41  ;;  %v2242_v20 = vpop.f32.mrb[73].mxu1  ;;  %v1266_v33 = vsel %vm1099_vm3, %v1231_v45, 0.0 }
 0x464   :  { %v1094_v46 = vpop.f32.mrb[74].mxu1  ;;  %1267 = vadd.xlane.f32.xlu1 %v1266_v33  ;;  %v1123_v61 = vpop.xlane.xlu1 %1122 }
 0x465   :  { %v3624_v47 = vsub.f32 %v3495_v52, %v1182_v19  ;;  %v1183_v13 = vmul.f32 0.03125, %v1123_v61  ;;  %v2243_v53 = vpop.f32.mrb[75].mxu1  ;;  %v1172_v1 = vsel %vm1099_vm3, %v3620_v40, 0.0 }
 0x466   :  { %1173 = vadd.xlane.f32.xlu0 %v1172_v1 }
 0x467   :  { %v3629_v50 = vsub.f32 %v3498_v25, %v1183_v13  ;;  %v1232_v7 = vmul.f32 %v3624_v47, %v3624_v47 }
 0x469   :  { %v1269_v16 = vsel %vm1099_vm3, %v1232_v7, 0.0  ;;  %v1233_v42 = vmul.f32 %v3629_v50, %v3629_v50 }
 0x46a   :  { %v1126_v14 = vpop.xlane.xlu0 %1125  ;;  %1270 = vadd.xlane.f32.xlu1 %v1269_v16 }
 0x46b   :  { %v1184_v52 = vmul.f32 0.03125, %v1126_v14  ;;  %v1272_v56 = vsel %vm1099_vm3, %v1233_v42, 0.0 }
 0x46c   :  { %1273 = vadd.xlane.f32.xlu0 %v1272_v56  ;;  %v1129_v23 = vpop.xlane.xlu1 %1128 }
 0x46d   :  { %v3638_v51 = vsub.f32 %v3505_v37, %v1184_v52  ;;  %v1185_v25 = vmul.f32 0.03125, %v1129_v23 }
 0x46f   :  { %v3641_v54 = vsub.f32 %v3508_v43, %v1185_v25  ;;  %v1234_v15 = vmul.f32 %v3638_v51, %v3638_v51 }
 0x471   :  { %v1275_v3 = vsel %vm1099_vm3, %v1234_v15, 0.0  ;;  %v1235_v58 = vmul.f32 %v3641_v54, %v3641_v54 }
 0x472   :  { %v1132_v17 = vpop.xlane.xlu0 %1131  ;;  %1276 = vadd.xlane.f32.xlu1 %v1275_v3 }
 0x473   :  { %v1186_v5 = vmul.f32 0.03125, %v1132_v17  ;;  %v1278_v18 = vsel %vm1099_vm3, %v1235_v58, 0.0 }
 0x474   :  { %1279 = vadd.xlane.f32.xlu0 %v1278_v18  ;;  %v1135_v37 = vpop.xlane.xlu1 %1134 }
 0x475   :  { %v3650_v39 = vsub.f32 %v3515_v2, %v1186_v5  ;;  %v1187_v43 = vmul.f32 0.03125, %v1135_v37 }
 0x477   :  { %v3654_v49 = vsub.f32 %v3518_v31, %v1187_v43  ;;  %v1236_v62 = vmul.f32 %v3650_v39, %v3650_v39 }
 0x479   :  { %v1281_v29 = vsel %vm1099_vm3, %v1236_v62, 0.0  ;;  %v1237_v30 = vmul.f32 %v3654_v49, %v3654_v49 }
 0x47a   :  { %v1138_v21 = vpop.xlane.xlu0 %1137  ;;  %1282 = vadd.xlane.f32.xlu1 %v1281_v29 }
 0x47b   :  { %v1188_v2 = vmul.f32 0.03125, %v1138_v21  ;;  %v1284_v6 = vsel %vm1099_vm3, %v1237_v30, 0.0 }
 0x47c   :  { %1285 = vadd.xlane.f32.xlu0 %v1284_v6  ;;  %v1141_v32 = vpop.xlane.xlu1 %1140 }
 0x47d   :  { %v3663_v31 = vsub.f32 %v3525_v10, %v1188_v2  ;;  %v1189_v26 = vmul.f32 0.03125, %v1141_v32 }
 0x47f   :  { %v3666_v45 = vsub.f32 %v3528_v11, %v1189_v26  ;;  %v1238_v48 = vmul.f32 %v3663_v31, %v3663_v31 }
 0x481   :  { %v1287_v41 = vsel %vm1099_vm3, %v1238_v48, 0.0  ;;  %v1239_v19 = vmul.f32 %v3666_v45, %v3666_v45 }
 0x482   :  { %v1144_v20 = vpop.xlane.xlu0 %1143  ;;  %1288 = vadd.xlane.f32.xlu1 %v1287_v41 }
 0x483   :  { %v1190_v33 = vmul.f32 0.03125, %v1144_v20  ;;  %v1290_v46 = vsel %vm1099_vm3, %v1239_v19, 0.0 }
 0x484   :  { %1291 = vadd.xlane.f32.xlu0 %v1290_v46  ;;  %v1147_v10 = vpop.xlane.xlu1 %1146 }
 0x485   :  { %v3675_v61 = vsub.f32 %v3535_v12, %v1190_v33  ;;  %v1191_v11 = vmul.f32 0.03125, %v1147_v10 }
 0x487   :  { %v3678_v13 = vsub.f32 %v3538_v4, %v1191_v11  ;;  %v1240_v53 = vmul.f32 %v3675_v61, %v3675_v61 }
 0x489   :  { %v1293_v1 = vsel %vm1099_vm3, %v1240_v53, 0.0  ;;  %v1241_v7 = vmul.f32 %v3678_v13, %v3678_v13 }
 0x48a   :  { %v1150_v16 = vpop.xlane.xlu0 %1149  ;;  %1294 = vadd.xlane.f32.xlu1 %v1293_v1 }
 0x48b   :  { %v1192_v42 = vmul.f32 0.03125, %v1150_v16  ;;  %v1296_v14 = vsel %vm1099_vm3, %v1241_v7, 0.0 }
 0x48c   :  { %1297 = vadd.xlane.f32.xlu0 %v1296_v14  ;;  %v1153_v12 = vpop.xlane.xlu1 %1152 }
 0x48d   :  { %v3687_v52 = vsub.f32 %v3545_v36, %v1192_v42  ;;  %v1193_v4 = vmul.f32 0.03125, %v1153_v12  ;;  %v3722_v12 = vld [vmem:[#allocation14] ss:$0 sm:$0xff] }
 0x48f   :  { %v3690_v56 = vsub.f32 %v3548_v28, %v1193_v4  ;;  %v1242_v23 = vmul.f32 %v3687_v52, %v3687_v52 }
 0x491   :  { %v1299_v25 = vsel %vm1099_vm3, %v1242_v23, 0.0  ;;  %v1243_v15 = vmul.f32 %v3690_v56, %v3690_v56 }
 0x492   :  { %v1156_v3 = vpop.xlane.xlu0 %1155  ;;  %1300 = vadd.xlane.f32.xlu1 %v1299_v25 }
 0x493   :  { %v1194_v58 = vmul.f32 0.03125, %v1156_v3  ;;  %v1302_v17 = vsel %vm1099_vm3, %v1243_v15, 0.0 }
 0x494   :  { %1303 = vadd.xlane.f32.xlu0 %v1302_v17  ;;  %v1159_v36 = vpop.xlane.xlu1 %1158 }
 0x495   :  { %v3699_v5 = vsub.f32 %v3555_v9, %v1194_v58  ;;  %v1195_v28 = vmul.f32 0.03125, %v1159_v36  ;;  %v3728_v58 = vld [vmem:[#allocation16] ss:$0 sm:$0xff] }
 0x497   :  { %v3702_v18 = vsub.f32 %v3558_v38, %v1195_v28  ;;  %v1244_v63 = vmul.f32 %v3699_v5, %v3699_v5 }
 0x499   :  { %v1305_v37 = vsel %vm1099_vm3, %v1244_v63, 0.0  ;;  %v1245_v43 = vmul.f32 %v3702_v18, %v3702_v18 }
 0x49a   :  { %1306 = vadd.xlane.f32.xlu1 %v1305_v37 }
 0x49b   :  { %v1308_v62 = vsel %vm1099_vm3, %v1245_v43, 0.0 }
 0x49c   :  { %1309 = vadd.xlane.f32.xlu0 %v1308_v62 }
 0x4df   :  { %v1253_v24 = vpop.xlane.xlu0 %1252 }
 0x4e0   :  { %v1326_v29 = vmul.f32 0.03125, %v1253_v24 }
 0x4e1   :  { %v1256_v9 = vpop.xlane.xlu1 %1255 }
 0x4e2   :  { %v1351_v30 = vadd.f32 1e-05, %v1326_v29  ;;  %v1327_v21 = vmul.f32 0.03125, %v1256_v9 }
 0x4e3   :  { %v1162_v2 = vpop.xlane.xlu0 %1161 }
 0x4e4   :  { %2388 = vrsqrt.f32 %v1351_v30  ;;  %v1352_v38 = vadd.f32 1e-05, %v1327_v21  ;;  %v1196_v6 = vmul.f32 0.03125, %v1162_v2 }
 0x4e5   :  { %v1165_v32 = vpop.xlane.xlu1 %1164 }
 0x4e6   :  { %2390 = vrsqrt.f32 %v1352_v38  ;;  %v3711_v26 = vsub.f32 %v3576_v34, %v1196_v6  ;;  %v1197_v48 = vmul.f32 0.03125, %v1165_v32 }
 0x4e7   :  { %v1259_v41 = vpop.xlane.xlu0 %1258 }
 0x4e8   :  { %v3714_v19 = vsub.f32 %v3583_v8, %v1197_v48  ;;  %v1328_v20 = vmul.f32 0.03125, %v1259_v41  ;;  %v1246_v33 = vmul.f32 %v3711_v26, %v3711_v26 }
 0x4e9   :  { %v1262_v46 = vpop.xlane.xlu1 %1261 }
 0x4ea   :  { %v1353_v10 = vadd.f32 1e-05, %v1328_v20  ;;  %v1329_v11 = vmul.f32 0.03125, %v1262_v46  ;;  %v1311_v53 = vsel %vm1099_vm3, %v1246_v33, 0.0  ;;  %v1247_v1 = vmul.f32 %v3714_v19, %v3714_v19 }
 0x4eb   :  { %v1168_v7 = vpop.xlane.xlu0 %1167  ;;  %1312 = vadd.xlane.f32.xlu1 %v1311_v53 }
 0x4ec   :  { %2392 = vrsqrt.f32 %v1353_v10  ;;  %v1354_v34 = vadd.f32 1e-05, %v1329_v11  ;;  %v1198_v16 = vmul.f32 0.03125, %v1168_v7  ;;  %v1314_v8 = vsel %vm1099_vm3, %v1247_v1, 0.0 }
 0x4ed   :  { %1315 = vadd.xlane.f32.xlu0 %v1314_v8  ;;  %v1171_v42 = vpop.xlane.xlu1 %1170 }
 0x4ee   :  { %v2389_v14 = vpop.eup %2388  ;;  %2394 = vrsqrt.f32 %v1354_v34  ;;  %v3725_v4 = vsub.f32 %v3598_v57, %v1198_v16  ;;  %v1199_v23 = vmul.f32 0.03125, %v1171_v42 }
 0x4ef   :  { %v1401_v25 = vmul.f32 %v2389_v14, %v3565_v44  ;;  %v1265_v15 = vpop.xlane.xlu0 %1264 }
 0x4f0   :  { %v2391_v3 = vpop.eup %2390  ;;  %v3731_v17 = vsub.f32 %v3605_v27, %v1199_v23  ;;  %v1330_v36 = vmul.f32 0.03125, %v1265_v15  ;;  %v1248_v28 = vmul.f32 %v3725_v4, %v3725_v4 }
 0x4f1   :  { %v1432_v63 = vmul.f32 %v3722_v12, %v1401_v25  ;;  %v1402_v37 = vmul.f32 %v2391_v3, %v3568_v59  ;;  %v1268_v57 = vpop.xlane.xlu1 %1267 }
 0x4f2   :  { %v1355_v43 = vadd.f32 1e-05, %v1330_v36  ;;  %v1331_v62 = vmul.f32 0.03125, %v1268_v57  ;;  %v1317_v44 = vsel %vm1099_vm3, %v1248_v28, 0.0  ;;  %v1249_v24 = vmul.f32 %v3731_v17, %v3731_v17 }
 0x4f3   :  { %v1463_v29 = vadd.f32 %v3728_v58, %v1432_v63  ;;  %v1433_v27 = vmul.f32 %v3722_v12, %v1402_v37  ;;  %v1174_v9 = vpop.xlane.xlu0 %1173  ;;  %1318 = vadd.xlane.f32.xlu1 %v1317_v44 }
 0x4f4   :  { %2396 = vrsqrt.f32 %v1355_v43  ;;  %v1356_v30 = vadd.f32 1e-05, %v1331_v62  ;;  %v1200_v21 = vmul.f32 0.03125, %v1174_v9  ;;  %v1320_v2 = vsel %vm1099_vm3, %v1249_v24, 0.0 }
 0x4f5   :  { %v1464_v59 = vadd.f32 %v3728_v58, %v1433_v27  ;;  %1321 = vadd.xlane.f32.xlu0 %v1320_v2  ;;  %v1488_v32 = vmax.f32 %v1463_v29, 0.0 }
 0x4f6   :  { %v2393_v38 = vpop.eup %2392  ;;  %2398 = vrsqrt.f32 %v1356_v30  ;;  %v3745_v6 = vsub.f32 %v3620_v40, %v1200_v21 }
 0x4f7   :  { %v1489_v48 = vmax.f32 %v1464_v59, 0.0  ;;  %v1403_v41 = vmul.f32 %v2393_v38, %v3580_v22  ;;  %v1271_v20 = vpop.xlane.xlu1 %1270 }
 0x4f8   :  { %v2395_v33 = vpop.eup %2394  ;;  %v1332_v46 = vmul.f32 0.03125, %v1271_v20  ;;  %v1250_v10 = vmul.f32 %v3745_v6, %v3745_v6 }
 0x4f9   :  { %v1404_v11 = vmul.f32 %v2395_v33, %v3588_v35  ;;  %v1274_v53 = vpop.xlane.xlu0 %1273  ;;  %v1513_v1 = vpack.c.bf16 %v1489_v48, %v1488_v32  ;;  %v1434_v7 = vmul.f32 %v3722_v12, %v1403_v41 }
 0x4fa   :  { %v1357_v34 = vadd.f32 1e-05, %v1332_v46  ;;  %v1333_v16 = vmul.f32 0.03125, %v1274_v53  ;;  %v1323_v40 = vsel %vm1099_vm3, %v1250_v10, 0.0 }
 0x4fb   :  { %1324 = vadd.xlane.f32.xlu1 %v1323_v40  ;;  %2249 = vmatmul.mubr.msk.bf16.vlgmr.msra.gmra.mrb[28].mxu0 %vm1099_vm3, %v1513_v1  ;;  %v1435_v22 = vmul.f32 %v3722_v12, %v1404_v11  ;;  %v1465_v8 = vadd.f32 %v3728_v58, %v1434_v7 }
 0x4fc   :  { %2400 = vrsqrt.f32 %v1357_v34  ;;  %v1358_v42 = vadd.f32 1e-05, %v1333_v16  ;;  %2252 = vmatprep.mubr.msk.bf16.mxu0 %vm2780_vm0, %v2779_v0 }
 0x4fd   :  { %v1466_v35 = vadd.f32 %v3728_v58, %v1435_v22  ;;  %v1490_v15 = vmax.f32 %v1465_v8, 0.0 }
 0x4fe   :  { %v2397_v14 = vpop.eup %2396  ;;  %2402 = vrsqrt.f32 %v1358_v42 }
 0x4ff   :  { %v1405_v23 = vmul.f32 %v2397_v14, %v3602_v60  ;;  %v1277_v25 = vpop.xlane.xlu1 %1276  ;;  %v1491_v3 = vmax.f32 %v1466_v35, 0.0 }
 0x500   :  { %v2399_v36 = vpop.eup %2398  ;;  %v1334_v28 = vmul.f32 0.03125, %v1277_v25 }
 0x501   :  { %v1406_v63 = vmul.f32 %v2399_v36, %v3610_v55  ;;  %v1280_v37 = vpop.xlane.xlu0 %1279  ;;  %v1514_v57 = vpack.c.bf16 %v1491_v3, %v1490_v15  ;;  %v1436_v43 = vmul.f32 %v3722_v12, %v1405_v23 }
 0x502   :  { %v1359_v62 = vadd.f32 1e-05, %v1334_v28  ;;  %v1335_v44 = vmul.f32 0.03125, %v1280_v37 }
 0x503   :  { %2253 = vmatmul.mubr.msk.bf16.gmra.mrb[32].mxu0 %vm1099_vm3, %v1514_v57  ;;  %v1437_v24 = vmul.f32 %v3722_v12, %v1406_v63  ;;  %v1467_v29 = vadd.f32 %v3728_v58, %v1436_v43 }
 0x504   :  { %2404 = vrsqrt.f32 %v1359_v62  ;;  %v1360_v60 = vadd.f32 1e-05, %v1335_v44  ;;  %2256 = vmatprep.mubr.msk.bf16.mxu0 %vm2780_vm0, %v2779_v0 }
 0x505   :  { %v1468_v27 = vadd.f32 %v3728_v58, %v1437_v24  ;;  %v1492_v21 = vmax.f32 %v1467_v29, 0.0 }
 0x506   :  { %v2401_v55 = vpop.eup %2400  ;;  %2406 = vrsqrt.f32 %v1360_v60 }
 0x507   :  { %v1407_v9 = vmul.f32 %v2401_v55, %v3624_v47  ;;  %v1283_v30 = vpop.xlane.xlu1 %1282  ;;  %v1493_v2 = vmax.f32 %v1468_v27, 0.0 }
 0x508   :  { %v2403_v59 = vpop.eup %2402  ;;  %v1336_v38 = vmul.f32 0.03125, %v1283_v30 }
 0x509   :  { %v1408_v32 = vmul.f32 %v2403_v59, %v3629_v50  ;;  %v1286_v48 = vpop.xlane.xlu0 %1285  ;;  %v1515_v41 = vpack.c.bf16 %v1493_v2, %v1492_v21  ;;  %v1438_v20 = vmul.f32 %v3722_v12, %v1407_v9 }
 0x50a   :  { %v1361_v33 = vadd.f32 1e-05, %v1336_v38  ;;  %v1337_v46 = vmul.f32 0.03125, %v1286_v48 }
 0x50b   :  { %2257 = vmatmul.mubr.msk.bf16.gmra.mrb[36].mxu0 %vm1099_vm3, %v1515_v41  ;;  %v1439_v10 = vmul.f32 %v3722_v12, %v1408_v32  ;;  %v1469_v11 = vadd.f32 %v3728_v58, %v1438_v20 }
 0x50c   :  { %2408 = vrsqrt.f32 %v1361_v33  ;;  %v1362_v47 = vadd.f32 1e-05, %v1337_v46  ;;  %2260 = vmatprep.mubr.msk.bf16.mxu0 %vm2780_vm0, %v2779_v0 }
 0x50d   :  { %v1470_v53 = vadd.f32 %v3728_v58, %v1439_v10  ;;  %v1494_v34 = vmax.f32 %v1469_v11, 0.0 }
 0x50e   :  { %v2405_v50 = vpop.eup %2404  ;;  %2410 = vrsqrt.f32 %v1362_v47 }
 0x50f   :  { %v1409_v1 = vmul.f32 %v2405_v50, %v3638_v51  ;;  %v1289_v7 = vpop.xlane.xlu1 %1288  ;;  %v1495_v16 = vmax.f32 %v1470_v53, 0.0 }
 0x510   :  { %v2407_v40 = vpop.eup %2406  ;;  %v1338_v22 = vmul.f32 0.03125, %v1289_v7 }
 0x511   :  { %v1410_v8 = vmul.f32 %v2407_v40, %v3641_v54  ;;  %v1292_v42 = vpop.xlane.xlu0 %1291  ;;  %v1516_v35 = vpack.c.bf16 %v1495_v16, %v1494_v34  ;;  %v1440_v14 = vmul.f32 %v3722_v12, %v1409_v1 }
 0x512   :  { %v1363_v23 = vadd.f32 1e-05, %v1338_v22  ;;  %v1339_v25 = vmul.f32 0.03125, %v1292_v42 }
 0x513   :  { %2261 = vmatmul.mubr.msk.bf16.gmra.mrb[40].mxu0 %vm1099_vm3, %v1516_v35  ;;  %v1441_v15 = vmul.f32 %v3722_v12, %v1410_v8  ;;  %v1471_v3 = vadd.f32 %v3728_v58, %v1440_v14 }
 0x514   :  { %2412 = vrsqrt.f32 %v1363_v23  ;;  %v1364_v51 = vadd.f32 1e-05, %v1339_v25  ;;  %2264 = vmatprep.mubr.msk.bf16.mxu0 %vm2780_vm0, %v2779_v0 }
 0x515   :  { %v1472_v36 = vadd.f32 %v3728_v58, %v1441_v15  ;;  %v1496_v37 = vmax.f32 %v1471_v3, 0.0 }
 0x516   :  { %v2409_v54 = vpop.eup %2408  ;;  %2414 = vrsqrt.f32 %v1364_v51 }
 0x517   :  { %v1411_v28 = vmul.f32 %v2409_v54, %v3650_v39  ;;  %v1295_v63 = vpop.xlane.xlu1 %1294  ;;  %v1497_v57 = vmax.f32 %v1472_v36, 0.0 }
 0x518   :  { %v2411_v43 = vpop.eup %2410  ;;  %v1340_v62 = vmul.f32 0.03125, %v1295_v63 }
 0x519   :  { %v1412_v44 = vmul.f32 %v2411_v43, %v3654_v49  ;;  %v1298_v24 = vpop.xlane.xlu0 %1297  ;;  %v1517_v29 = vpack.c.bf16 %v1497_v57, %v1496_v37  ;;  %v1442_v60 = vmul.f32 %v3722_v12, %v1411_v28 }
 0x51a   :  { %v1365_v27 = vadd.f32 1e-05, %v1340_v62  ;;  %v1341_v55 = vmul.f32 0.03125, %v1298_v24 }
 0x51b   :  { %2265 = vmatmul.mubr.msk.bf16.gmra.mrb[44].mxu0 %vm1099_vm3, %v1517_v29  ;;  %v1443_v9 = vmul.f32 %v3722_v12, %v1412_v44  ;;  %v1473_v30 = vadd.f32 %v3728_v58, %v1442_v60 }
 0x51c   :  { %2416 = vrsqrt.f32 %v1365_v27  ;;  %v1366_v39 = vadd.f32 1e-05, %v1341_v55  ;;  %2268 = vmatprep.mubr.msk.bf16.mxu0 %vm2780_vm0, %v2779_v0 }
 0x51d   :  { %v1474_v21 = vadd.f32 %v3728_v58, %v1443_v9  ;;  %v1498_v38 = vmax.f32 %v1473_v30, 0.0 }
 0x51e   :  { %v2413_v49 = vpop.eup %2412  ;;  %2418 = vrsqrt.f32 %v1366_v39 }
 0x51f   :  { %v1413_v2 = vmul.f32 %v2413_v49, %v3663_v31  ;;  %v1301_v59 = vpop.xlane.xlu1 %1300  ;;  %v1499_v32 = vmax.f32 %v1474_v21, 0.0 }
 0x520   :  { %v2415_v48 = vpop.eup %2414  ;;  %v1342_v41 = vmul.f32 0.03125, %v1301_v59 }
 0x521   :  { %v1414_v20 = vmul.f32 %v2415_v48, %v3666_v45  ;;  %v1304_v33 = vpop.xlane.xlu0 %1303  ;;  %v1518_v46 = vpack.c.bf16 %v1499_v32, %v1498_v38  ;;  %v1444_v10 = vmul.f32 %v3722_v12, %v1413_v2 }
 0x522   :  { %v1367_v11 = vadd.f32 1e-05, %v1342_v41  ;;  %v1343_v47 = vmul.f32 0.03125, %v1304_v33 }
 0x523   :  { %2269 = vmatmul.mubr.msk.bf16.gmra.mrb[48].mxu0 %vm1099_vm3, %v1518_v46  ;;  %v1445_v53 = vmul.f32 %v3722_v12, %v1414_v20  ;;  %v1475_v50 = vadd.f32 %v3728_v58, %v1444_v10 }
 0x524   :  { %2420 = vrsqrt.f32 %v1367_v11  ;;  %v1368_v31 = vadd.f32 1e-05, %v1343_v47  ;;  %2272 = vmatprep.mubr.msk.bf16.mxu0 %vm2780_vm0, %v2779_v0 }
 0x525   :  { %v1476_v1 = vadd.f32 %v3728_v58, %v1445_v53  ;;  %v1500_v16 = vmax.f32 %v1475_v50, 0.0 }
 0x526   :  { %v2417_v45 = vpop.eup %2416  ;;  %2422 = vrsqrt.f32 %v1368_v31 }
 0x527   :  { %v1415_v7 = vmul.f32 %v2417_v45, %v3675_v61  ;;  %v1307_v34 = vpop.xlane.xlu1 %1306  ;;  %v1501_v40 = vmax.f32 %v1476_v1, 0.0 }
 0x528   :  { %v2419_v22 = vpop.eup %2418  ;;  %v1344_v8 = vmul.f32 0.03125, %v1307_v34 }
 0x529   :  { %v1416_v42 = vmul.f32 %v2419_v22, %v3678_v13  ;;  %v1310_v35 = vpop.xlane.xlu0 %1309  ;;  %v1519_v14 = vpack.c.bf16 %v1501_v40, %v1500_v16  ;;  %v1446_v23 = vmul.f32 %v3722_v12, %v1415_v7 }
 0x52a   :  { %v1369_v25 = vadd.f32 1e-05, %v1344_v8  ;;  %v1345_v15 = vmul.f32 0.03125, %v1310_v35 }
 0x52b   :  { %2273 = vmatmul.mubr.msk.bf16.gmra.mrb[52].mxu0 %vm1099_vm3, %v1519_v14  ;;  %v1447_v3 = vmul.f32 %v3722_v12, %v1416_v42  ;;  %v1477_v51 = vadd.f32 %v3728_v58, %v1446_v23 }
 0x52c   :  { %2424 = vrsqrt.f32 %v1369_v25  ;;  %v1370_v61 = vadd.f32 1e-05, %v1345_v15  ;;  %2276 = vmatprep.mubr.msk.bf16.mxu0 %vm2780_vm0, %v2779_v0 }
 0x52d   :  { %v1478_v36 = vadd.f32 %v3728_v58, %v1447_v3  ;;  %v1502_v28 = vmax.f32 %v1477_v51, 0.0 }
 0x52e   :  { %v2421_v13 = vpop.eup %2420  ;;  %2426 = vrsqrt.f32 %v1370_v61 }
 0x52f   :  { %v1417_v54 = vmul.f32 %v2421_v13, %v3687_v52  ;;  %v1503_v63 = vmax.f32 %v1478_v36, 0.0 }
 0x530   :  { %v2423_v37 = vpop.eup %2422 }
 0x531   :  { %v1418_v57 = vmul.f32 %v2423_v37, %v3690_v56  ;;  %v1520_v43 = vpack.c.bf16 %v1503_v63, %v1502_v28  ;;  %v1448_v62 = vmul.f32 %v3722_v12, %v1417_v54 }
 0x533   :  { %2277 = vmatmul.mubr.msk.bf16.gmra.mrb[56].mxu0 %vm1099_vm3, %v1520_v43  ;;  %v1449_v44 = vmul.f32 %v3722_v12, %v1418_v57  ;;  %v1479_v24 = vadd.f32 %v3728_v58, %v1448_v62 }
 0x534   :  { %2280 = vmatprep.mubr.msk.bf16.mxu0 %vm2780_vm0, %v2779_v0 }
 0x535   :  { %v1480_v29 = vadd.f32 %v3728_v58, %v1449_v44  ;;  %v1504_v27 = vmax.f32 %v1479_v24, 0.0  ;;  %v3856_v44 = vld [vmem:[#allocation19] ss:$0 sm:$0xff] }
 0x536   :  { %v2425_v52 = vpop.eup %2424 }
 0x537   :  { %v1419_v60 = vmul.f32 %v2425_v52, %v3699_v5  ;;  %v1505_v55 = vmax.f32 %v1480_v29, 0.0 }
 0x538   :  { %v2427_v56 = vpop.eup %2426 }
 0x539   :  { %v1420_v9 = vmul.f32 %v2427_v56, %v3702_v18  ;;  %v1521_v30 = vpack.c.bf16 %v1505_v55, %v1504_v27  ;;  %v1450_v39 = vmul.f32 %v3722_v12, %v1419_v60 }
 0x53b   :  { %2281 = vmatmul.mubr.msk.bf16.gmra.mrb[60].mxu0 %vm1099_vm3, %v1521_v30  ;;  %v1451_v21 = vmul.f32 %v3722_v12, %v1420_v9  ;;  %v1481_v49 = vadd.f32 %v3728_v58, %v1450_v39 }
 0x53c   :  { %2284 = vmatprep.mubr.msk.bf16.mxu0 %vm2780_vm0, %v2779_v0 }
 0x53d   :  { %v1482_v2 = vadd.f32 %v3728_v58, %v1451_v21  ;;  %v1506_v5 = vmax.f32 %v1481_v49, 0.0 }
 0x53f   :  { %v1507_v59 = vmax.f32 %v1482_v2, 0.0 }
 0x541   :  { %v1522_v38 = vpack.c.bf16 %v1507_v59, %v1506_v5 }
 0x543   :  { %2285 = vmatmul.mubr.msk.bf16.gmra.mrb[64].mxu0 %vm1099_vm3, %v1522_v38 }
 0x544   :  { %2288 = vmatprep.mubr.msk.bf16.mxu0 %vm2780_vm0, %v2779_v0 }
 0x578   :  { %v1313_v18 = vpop.xlane.xlu1 %1312 }
 0x579   :  { %v1346_v32 = vmul.f32 0.03125, %v1313_v18 }
 0x57a   :  { %v1316_v48 = vpop.xlane.xlu0 %1315 }
 0x57b   :  { %v1371_v41 = vadd.f32 1e-05, %v1346_v32  ;;  %v1347_v20 = vmul.f32 0.03125, %v1316_v48 }
 0x57d   :  { %2428 = vrsqrt.f32 %v1371_v41  ;;  %v1372_v33 = vadd.f32 1e-05, %v1347_v20 }
 0x57f   :  { %2430 = vrsqrt.f32 %v1372_v33 }
 0x580   :  { %v1319_v46 = vpop.xlane.xlu1 %1318 }
 0x581   :  { %v1348_v10 = vmul.f32 0.03125, %v1319_v46 }
 0x582   :  { %v1322_v11 = vpop.xlane.xlu0 %1321 }
 0x583   :  { %v1373_v47 = vadd.f32 1e-05, %v1348_v10  ;;  %v1349_v53 = vmul.f32 0.03125, %v1322_v11 }
 0x585   :  { %2432 = vrsqrt.f32 %v1373_v47  ;;  %v1374_v50 = vadd.f32 1e-05, %v1349_v53 }
 0x587   :  { %v2429_v31 = vpop.eup %2428  ;;  %2434 = vrsqrt.f32 %v1374_v50 }
 0x588   :  { %v1421_v1 = vmul.f32 %v2429_v31, %v3711_v26  ;;  %v1325_v45 = vpop.xlane.xlu1 %1324 }
 0x589   :  { %v2431_v7 = vpop.eup %2430  ;;  %v1350_v34 = vmul.f32 0.03125, %v1325_v45 }
 0x58a   :  { %v1422_v16 = vmul.f32 %v2431_v7, %v3714_v19  ;;  %v1452_v40 = vmul.f32 %v3722_v12, %v1421_v1 }
 0x58b   :  { %v1375_v22 = vadd.f32 1e-05, %v1350_v34 }
 0x58c   :  { %v1453_v8 = vmul.f32 %v3722_v12, %v1422_v16  ;;  %v1483_v42 = vadd.f32 %v3728_v58, %v1452_v40 }
 0x58d   :  { %2436 = vrsqrt.f32 %v1375_v22 }
 0x58e   :  { %v1484_v35 = vadd.f32 %v3728_v58, %v1453_v8  ;;  %v1508_v25 = vmax.f32 %v1483_v42, 0.0 }
 0x58f   :  { %v2433_v14 = vpop.eup %2432 }
 0x590   :  { %v1423_v23 = vmul.f32 %v2433_v14, %v3725_v4  ;;  %v1509_v26 = vmax.f32 %v1484_v35, 0.0 }
 0x591   :  { %v2435_v15 = vpop.eup %2434 }
 0x592   :  { %v1424_v3 = vmul.f32 %v2435_v15, %v3731_v17  ;;  %v1523_v51 = vpack.c.bf16 %v1509_v26, %v1508_v25  ;;  %v1454_v19 = vmul.f32 %v3722_v12, %v1423_v23 }
 0x594   :  { %2289 = vmatmul.mubr.msk.bf16.gmra.mrb[68].mxu0 %vm1099_vm3, %v1523_v51  ;;  %v1455_v61 = vmul.f32 %v3722_v12, %v1424_v3  ;;  %v1485_v36 = vadd.f32 %v3728_v58, %v1454_v19 }
 0x595   :  { %2292 = vmatprep.mubr.msk.bf16.mxu0 %vm2780_vm0, %v2779_v0 }
 0x596   :  { %v1486_v13 = vadd.f32 %v3728_v58, %v1455_v61  ;;  %v1510_v28 = vmax.f32 %v1485_v36, 0.0 }
 0x597   :  { %v2437_v4 = vpop.eup %2436 }
 0x598   :  { %v1425_v54 = vmul.f32 %v2437_v4, %v3745_v6  ;;  %v1511_v63 = vmax.f32 %v1486_v13, 0.0 }
 0x59a   :  { %v1524_v17 = vpack.c.bf16 %v1511_v63, %v1510_v28  ;;  %v1456_v37 = vmul.f32 %v3722_v12, %v1425_v54 }
 0x59c   :  { %2293 = vmatmul.mubr.msk.bf16.gmra.mrb[72].mxu0 %vm1099_vm3, %v1524_v17  ;;  %v1487_v57 = vadd.f32 %v3728_v58, %v1456_v37 }
 0x59d   :  { %2296 = vmatprep.mubr.msk.bf16.mxu0 %vm2780_vm0, %v2779_v0 }
 0x59e   :  { %v1512_v43 = vmax.f32 %v1487_v57, 0.0 }
 0x5a0   :  { %v1525_v62 = vpack.c.bf16 %v1512_v43, %v1512_v43 }
 0x5a4   :  { %2297 = vmatmul.mubr.msk.bf16.gmra.mrb[76].mxu0 %vm1099_vm3, %v1525_v62 }
 0x5ce   :  { %v1622_v24 = vpop.f32.mrb[28].mxu0 }
 0x5cf   :  { %v1623_v6 = vadd.f32 %v3856_v44, %v1622_v24  ;;  %v2250_v29 = vpop.f32.mrb[29].mxu0 }
 0x5d0   :  { %v1625_v52 = vpop.f32.mrb[30].mxu0 }
 0x5d1   :  { %v1626_v12 = vadd.f32 %v3856_v44, %v1625_v52  ;;  %v2251_v60 = vpop.f32.mrb[31].mxu0  ;;  %2438 = vtanh.f32 %v1623_v6 }
 0x5d3   :  { %2440 = vtanh.f32 %v1626_v12 }
 0x5d6   :  { %v1630_v58 = vpop.f32.mrb[32].mxu0 }
 0x5d7   :  { %v1631_v27 = vadd.f32 %v3856_v44, %v1630_v58  ;;  %v2254_v0 = vpop.f32.mrb[33].mxu0 }
 0x5d8   :  { %v1633_v55 = vpop.f32.mrb[34].mxu0 }
 0x5d9   :  { %v1634_v56 = vadd.f32 %v3856_v44, %v1633_v55  ;;  %v2255_v9 = vpop.f32.mrb[35].mxu0  ;;  %2442 = vtanh.f32 %v1631_v27 }
 0x5db   :  { %2444 = vtanh.f32 %v1634_v56  ;;  %v2439_v30 = vpop.eup %2438 }
 0x5dd   :  { %v2441_v39 = vpop.eup %2440 }
 0x5de   :  { %v2016_v21 = vpack.c.bf16 %v2441_v39, %v2439_v30  ;;  %v1638_v49 = vpop.f32.mrb[36].mxu0 }
 0x5df   :  { %v1639_v2 = vadd.f32 %v3856_v44, %v1638_v49  ;;  %v2258_v5 = vpop.f32.mrb[37].mxu0 }
 0x5e0   :  { %2017 = vst [vmem:[#allocation20] sm:$0xff] %v2016_v21   ;;  %v1641_v59 = vpop.f32.mrb[38].mxu0 }
 0x5e1   :  { %v1642_v38 = vadd.f32 %v3856_v44, %v1641_v59  ;;  %v2259_v18 = vpop.f32.mrb[39].mxu0  ;;  %2446 = vtanh.f32 %v1639_v2 }
 0x5e3   :  { %2448 = vtanh.f32 %v1642_v38  ;;  %v2443_v32 = vpop.eup %2442 }
 0x5e5   :  { %v2445_v48 = vpop.eup %2444 }
 0x5e6   :  { %v2021_v41 = vpack.c.bf16 %v2445_v48, %v2443_v32  ;;  %v1646_v20 = vpop.f32.mrb[40].mxu0 }
 0x5e7   :  { %v1647_v33 = vadd.f32 %v3856_v44, %v1646_v20  ;;  %v2262_v46 = vpop.f32.mrb[41].mxu0 }
 0x5e8   :  { %2073 = vst [vmem:[#allocation20 + $0x8] sm:$0xff] %v2021_v41   ;;  %v1649_v10 = vpop.f32.mrb[42].mxu0 }
 0x5e9   :  { %v1650_v11 = vadd.f32 %v3856_v44, %v1649_v10  ;;  %v2263_v47 = vpop.f32.mrb[43].mxu0  ;;  %2450 = vtanh.f32 %v1647_v33 }
 0x5eb   :  { %2452 = vtanh.f32 %v1650_v11  ;;  %v2447_v53 = vpop.eup %2446 }
 0x5ed   :  { %v2449_v50 = vpop.eup %2448 }
 0x5ee   :  { %v2026_v31 = vpack.c.bf16 %v2449_v50, %v2447_v53  ;;  %v1654_v1 = vpop.f32.mrb[44].mxu0 }
 0x5ef   :  { %v1655_v45 = vadd.f32 %v3856_v44, %v1654_v1  ;;  %v2266_v7 = vpop.f32.mrb[45].mxu0 }
 0x5f0   :  { %2074 = vst [vmem:[#allocation20 + $0x10] sm:$0xff] %v2026_v31   ;;  %v1657_v34 = vpop.f32.mrb[46].mxu0 }
 0x5f1   :  { %v1658_v16 = vadd.f32 %v3856_v44, %v1657_v34  ;;  %v2267_v40 = vpop.f32.mrb[47].mxu0  ;;  %2454 = vtanh.f32 %v1655_v45 }
 0x5f3   :  { %2456 = vtanh.f32 %v1658_v16  ;;  %v2451_v22 = vpop.eup %2450 }
 0x5f5   :  { %v2453_v8 = vpop.eup %2452 }
 0x5f6   :  { %v2031_v42 = vpack.c.bf16 %v2453_v8, %v2451_v22  ;;  %v1662_v35 = vpop.f32.mrb[48].mxu0 }
 0x5f7   :  { %v1663_v14 = vadd.f32 %v3856_v44, %v1662_v35  ;;  %v2270_v23 = vpop.f32.mrb[49].mxu0 }
 0x5f8   :  { %2075 = vst [vmem:[#allocation20 + $0x18] sm:$0xff] %v2031_v42   ;;  %v1665_v25 = vpop.f32.mrb[50].mxu0 }
 0x5f9   :  { %v1666_v26 = vadd.f32 %v3856_v44, %v1665_v25  ;;  %v2271_v15 = vpop.f32.mrb[51].mxu0  ;;  %2458 = vtanh.f32 %v1663_v14 }
 0x5fb   :  { %2460 = vtanh.f32 %v1666_v26  ;;  %v2455_v3 = vpop.eup %2454 }
 0x5fd   :  { %v2457_v51 = vpop.eup %2456 }
 0x5fe   :  { %v2036_v19 = vpack.c.bf16 %v2457_v51, %v2455_v3  ;;  %v1670_v61 = vpop.f32.mrb[52].mxu0 }
 0x5ff   :  { %v1671_v36 = vadd.f32 %v3856_v44, %v1670_v61  ;;  %v2274_v13 = vpop.f32.mrb[53].mxu0 }
 0x600   :  { %2076 = vst [vmem:[#allocation20 + $0x20] sm:$0xff] %v2036_v19   ;;  %v1673_v4 = vpop.f32.mrb[54].mxu0 }
 0x601   :  { %v1674_v54 = vadd.f32 %v3856_v44, %v1673_v4  ;;  %v2275_v28 = vpop.f32.mrb[55].mxu0  ;;  %2462 = vtanh.f32 %v1671_v36 }
 0x603   :  { %2464 = vtanh.f32 %v1674_v54  ;;  %v2459_v63 = vpop.eup %2458 }
 0x605   :  { %v2461_v17 = vpop.eup %2460 }
 0x606   :  { %v2041_v37 = vpack.c.bf16 %v2461_v17, %v2459_v63  ;;  %v1678_v57 = vpop.f32.mrb[56].mxu0 }
 0x607   :  { %v1679_v43 = vadd.f32 %v3856_v44, %v1678_v57  ;;  %v2278_v62 = vpop.f32.mrb[57].mxu0 }
 0x608   :  { %2077 = vst [vmem:[#allocation20 + $0x28] sm:$0xff] %v2041_v37   ;;  %v1681_v24 = vpop.f32.mrb[58].mxu0 }
 0x609   :  { %v1682_v6 = vadd.f32 %v3856_v44, %v1681_v24  ;;  %v2279_v29 = vpop.f32.mrb[59].mxu0  ;;  %2466 = vtanh.f32 %v1679_v43 }
 0x60b   :  { %2468 = vtanh.f32 %v1682_v6  ;;  %v2463_v52 = vpop.eup %2462 }
 0x60d   :  { %v2465_v12 = vpop.eup %2464 }
 0x60e   :  { %v2046_v60 = vpack.c.bf16 %v2465_v12, %v2463_v52  ;;  %v1686_v58 = vpop.f32.mrb[60].mxu0 }
 0x60f   :  { %v1687_v27 = vadd.f32 %v3856_v44, %v1686_v58  ;;  %v2282_v0 = vpop.f32.mrb[61].mxu0 }
 0x610   :  { %2078 = vst [vmem:[#allocation20 + $0x30] sm:$0xff] %v2046_v60   ;;  %v1689_v55 = vpop.f32.mrb[62].mxu0 }
 0x611   :  { %v1690_v56 = vadd.f32 %v3856_v44, %v1689_v55  ;;  %v2283_v9 = vpop.f32.mrb[63].mxu0  ;;  %2470 = vtanh.f32 %v1687_v27 }
 0x613   :  { %2472 = vtanh.f32 %v1690_v56  ;;  %v2467_v30 = vpop.eup %2466 }
 0x615   :  { %v2469_v39 = vpop.eup %2468 }
 0x616   :  { %v2051_v21 = vpack.c.bf16 %v2469_v39, %v2467_v30  ;;  %v1694_v49 = vpop.f32.mrb[64].mxu0 }
 0x617   :  { %v1695_v2 = vadd.f32 %v3856_v44, %v1694_v49  ;;  %v2286_v5 = vpop.f32.mrb[65].mxu0 }
 0x618   :  { %2079 = vst [vmem:[#allocation20 + $0x38] sm:$0xff] %v2051_v21   ;;  %v1697_v59 = vpop.f32.mrb[66].mxu0 }
 0x619   :  { %v1698_v38 = vadd.f32 %v3856_v44, %v1697_v59  ;;  %v2287_v18 = vpop.f32.mrb[67].mxu0  ;;  %2474 = vtanh.f32 %v1695_v2 }
 0x61b   :  { %2476 = vtanh.f32 %v1698_v38  ;;  %v2471_v32 = vpop.eup %2470 }
 0x61d   :  { %v2473_v48 = vpop.eup %2472 }
 0x61e   :  { %v2056_v41 = vpack.c.bf16 %v2473_v48, %v2471_v32 }
 0x620   :  { %2080 = vst [vmem:[#allocation20 + $0x40] sm:$0xff] %v2056_v41  }
 0x623   :  { %v2475_v20 = vpop.eup %2474 }
 0x625   :  { %v2477_v33 = vpop.eup %2476 }
 0x626   :  { %v2061_v46 = vpack.c.bf16 %v2477_v33, %v2475_v20 }
 0x628   :  { %2081 = vst [vmem:[#allocation20 + $0x48] sm:$0xff] %v2061_v46  }
 0x667   :  { %v1702_v10 = vpop.f32.mrb[68].mxu0 }
 0x668   :  { %v1703_v11 = vadd.f32 %v3856_v44, %v1702_v10  ;;  %v2290_v47 = vpop.f32.mrb[69].mxu0 }
 0x669   :  { %v1705_v53 = vpop.f32.mrb[70].mxu0 }
 0x66a   :  { %v1706_v50 = vadd.f32 %v3856_v44, %v1705_v53  ;;  %v2291_v31 = vpop.f32.mrb[71].mxu0  ;;  %2478 = vtanh.f32 %v1703_v11 }
 0x66c   :  { %2480 = vtanh.f32 %v1706_v50 }
 0x66f   :  { %v1710_v1 = vpop.f32.mrb[72].mxu0 }
 0x670   :  { %v1711_v45 = vadd.f32 %v3856_v44, %v1710_v1  ;;  %v2294_v7 = vpop.f32.mrb[73].mxu0 }
 0x671   :  { %v1713_v34 = vpop.f32.mrb[74].mxu0 }
 0x672   :  { %v1714_v16 = vadd.f32 %v3856_v44, %v1713_v34  ;;  %v2295_v40 = vpop.f32.mrb[75].mxu0  ;;  %2482 = vtanh.f32 %v1711_v45 }
 0x674   :  { %2484 = vtanh.f32 %v1714_v16  ;;  %v2479_v22 = vpop.eup %2478 }
 0x676   :  { %v2481_v8 = vpop.eup %2480 }
 0x677   :  { %v2066_v42 = vpack.c.bf16 %v2481_v8, %v2479_v22  ;;  %v1718_v35 = vpop.f32.mrb[76].mxu0 }
 0x678   :  { %v1719_v14 = vadd.f32 %v3856_v44, %v1718_v35  ;;  %v2298_v23 = vpop.f32.mrb[77].mxu0 }
 0x679   :  { %2082 = vst [vmem:[#allocation20 + $0x50] sm:$0xff] %v2066_v42   ;;  %v1721_v25 = vpop.f32.mrb[78].mxu0 }
 0x67a   :  { %2486 = vtanh.f32 %v1719_v14  ;;  %v2299_v26 = vpop.f32.mrb[79].mxu0 }
 0x67c   :  { %v2483_v15 = vpop.eup %2482 }
 0x67e   :  { %v2485_v3 = vpop.eup %2484 }
 0x67f   :  { %v2071_v51 = vpack.c.bf16 %v2485_v3, %v2483_v15 }
 0x681   :  { %2083 = vst [vmem:[#allocation20 + $0x58] sm:$0xff] %v2071_v51  }
 0x684   :  { %v2487_v19 = vpop.eup %2486 }
 0x685   :  { %v2012_v61 = vpack.c.bf16 %v2487_v19, %v2487_v19 }
 0x687   :  { %1874 = vst [vmem:[#allocation20 + $0x60] sm:$0xf] %v2012_v61 }
 0x688   :  { %2741 = shalt.err (!%p2738_p8)
}
 0x689   :  { %s2742_s13 = scalar_lea.hbm %s3909_s11, 1600 }
 0x68a   :  { %p2743_p9 = scmp.ne.s32.totalorder %s3909_s11, %s2742_s13  ;;  %p2746_p10 = scmp.lt.u32.totalorder %s2742_s13, %s3909_s11 }
 0x68c   :  { %p2748_p11 = pnand %p2746_p10, %p2743_p9 }
 0x68e   :  { %2751 = shalt.err (!%p2748_p11)
}
 0x68f   :  { %1886 = dma.vmem_to_hbm [thread:$0]  %s1881_s20, 1600, %s3909_s11, [#allocation4], %s2768_s29, %s2768_s29, %s2769_s30  }
 0x690   :  { %2764 = dma.done.wait [#allocation4], 1600  }
 0x691   :  { %2765 = vsyncadd [#allocation4], 4294965696 }
 0x692   :  { %1890 = vsyncpa [#allocation3], 1 }
 0x693   :  { %1891 = vsyncpa [#allocation6], 1 }
 0x694   :  { %1892 = vsyncpa [#allocation9], 1 }
 0x695   :  { %1893 = vsyncpa [#allocation12], 1 }
 0x696   :  { %1894 = vsyncpa [#allocation15], 1 }
 0x697   :  { %1895 = vsyncpa [#allocation18], 1 }
 0x698   :  { %1896 = vsyncpa [#allocation4], 1 }

// kernel: tpu_custom_call.1
= control target key start
LH: loop header
LB: loop body
LE: loop exit
PB: predicated region body
PF: predicated region fallthrough
CT: control target
= control target key end

     0   :  { %16 = vsyncpa [#allocation3], 0  ;;  %s3898_s0 = inlined_call_operand.hbm [shape: bf16[200,16], index: 0, kind: input, shape index: {}]   ;;  %s3899_s1 = inlined_call_operand.hbm [shape: bf16[16,64], index: 1, kind: input, shape index: {}]   ;;  %s3900_s2 = inlined_call_operand.hbm [shape: f32[1,64], index: 2, kind: input, shape index: {}]   ;;  %s3901_s3 = inlined_call_operand.hbm [shape: f32[1,64], index: 3, kind: input, shape index: {}]   ;;  %s3902_s4 = inlined_call_operand.hbm [shape: f32[1,64], index: 4, kind: input, shape index: {}]   ;;  %s3903_s5 = inlined_call_operand.hbm [shape: bf16[64,32], index: 5, kind: input, shape index: {}]   ;;  %s3904_s6 = inlined_call_operand.hbm [shape: f32[1,32], index: 6, kind: input, shape index: {}]   ;;  %s3905_s7 = inlined_call_operand.hbm [shape: f32[1,32], index: 7, kind: input, shape index: {}]   ;;  %s3906_s8 = inlined_call_operand.hbm [shape: f32[1,32], index: 8, kind: input, shape index: {}]   ;;  %s3907_s9 = inlined_call_operand.hbm [shape: bf16[32,128], index: 9, kind: input, shape index: {}]   ;;  %s3908_s10 = inlined_call_operand.hbm [shape: f32[1,128], index: 10, kind: input, shape index: {}]   ;;  %s3909_s11 = inlined_call_operand.hbm [shape: bf16[200,128], index: 11, kind: output, shape index: {}]  }
   0x1   :  { %17 = vsyncpa [#allocation6], 0 }
   0x2   :  { %18 = vsyncpa [#allocation9], 0 }
   0x3   :  { %19 = vsyncpa [#allocation12], 0 }
   0x4   :  { %20 = vsyncpa [#allocation15], 0 }
   0x5   :  { %21 = vsyncpa [#allocation18], 0 }
   0x6   :  { %22 = vsyncpa [#allocation4], 0  ;;  %s2766_s17 = smov [#allocation5]   ;;  %s2767_s19 = smov [#allocation8]  }
   0x7   :  { %s40_s18 = sshll.u32 %s2766_s17, 4  ;;  %s63_s20 = sshll.u32 %s2767_s19, 4  ;;  %s41_s18 = int_to_ptr.vmem [resolvable:$true] %s40_s18  ;;  %s2842_s20 = int_to_ptr.vmem [resolvable:$true] %s63_s20 }
   0x8   :  { %s2488_s23 = scalar_lea.hbm %s3899_s1, 128 }
   0x9   :  { %p2489_p0 = scmp.ne.s32.totalorder %s3899_s1, %s2488_s23  ;;  %p2492_p1 = scmp.lt.u32.totalorder %s2488_s23, %s3899_s1 }
   0xb   :  { %p2494_p2 = pnand %p2492_p1, %p2489_p0 }
   0xd   :  { %2497 = shalt.err (!%p2494_p2)
}
   0xe   :  { %s2498_s28 = scalar_lea.vmem %s41_s18, 128  ;;  %p2503_p4 = scmp.lt.s32.totalorder %s41_s18, %s41_s18 }
   0xf   :  { %p2499_p3 = scmp.ne.s32.totalorder %s41_s18, %s2498_s28  ;;  %p2504_p5 = scmp.lt.s32.totalorder %s2498_s28, %s2498_s28 }
  0x11   :  { %p2505_p6 = por %p2504_p5, %p2503_p4 }
  0x13   :  { %p2506_p7 = pnand %p2505_p6, %p2499_p3 }
  0x15   :  { %2509 = shalt.err (!%p2506_p7)
}
  0x16   :  { %s2768_s29 = smov 64   ;;  %s2769_s30 = smov 4  }
  0x17   :  { %46 = dma.hbm_to_vmem [thread:$0]  %s3899_s1, 128, %s41_s18, [#allocation6], %s2768_s29, %s2768_s29, %s2769_s30  }
  0x18   :  { %s2510_s16 = scalar_lea.hbm %s3901_s3, 16 }
  0x19   :  { %p2511_p8 = scmp.ne.s32.totalorder %s3901_s3, %s2510_s16  ;;  %p2514_p9 = scmp.lt.u32.totalorder %s2510_s16, %s3901_s3 }
  0x1b   :  { %p2516_p10 = pnand %p2514_p9, %p2511_p8 }
  0x1d   :  { %2519 = shalt.err (!%p2516_p10)
}
  0x1e   :  { %s2520_s23 = scalar_lea.vmem %s2842_s20, 16  ;;  %s2524_s1 = scalar_lea.vmem %s2842_s20, 32 }
  0x1f   :  { %p2521_p11 = scmp.ne.s32.totalorder %s2842_s20, %s2520_s23  ;;  %p2525_p12 = scmp.lt.s32.totalorder %s2842_s20, %s2842_s20 }
  0x20   :  { %p2526_p13 = scmp.lt.s32.totalorder %s2524_s1, %s2520_s23 }
  0x22   :  { %p2527_p0 = por %p2526_p13, %p2525_p12 }
  0x24   :  { %p2528_p1 = pnand %p2527_p0, %p2521_p11 }
  0x26   :  { %2531 = shalt.err (!%p2528_p1)
}
  0x27   :  { %66 = dma.hbm_to_vmem [thread:$0]  %s3901_s3, 16, %s2842_s20, [#allocation9]  }
  0x28   :  { %s2770_s25 = smov [#allocation11]   ;;  %s2771_s27 = smov [#allocation14]  }
  0x29   :  { %s82_s26 = sshll.u32 %s2770_s25, 4  ;;  %s105_s28 = sshll.u32 %s2771_s27, 4  ;;  %s83_s26 = int_to_ptr.vmem [resolvable:$true] %s82_s26  ;;  %s106_s28 = int_to_ptr.vmem [resolvable:$true] %s105_s28 }
  0x2a   :  { %s2532_s14 = scalar_lea.hbm %s3903_s5, 512 }
  0x2b   :  { %p2533_p2 = scmp.ne.s32.totalorder %s3903_s5, %s2532_s14  ;;  %p2536_p3 = scmp.lt.u32.totalorder %s2532_s14, %s3903_s5 }
  0x2d   :  { %p2538_p4 = pnand %p2536_p3, %p2533_p2 }
  0x2f   :  { %2541 = shalt.err (!%p2538_p4)
}
  0x30   :  { %s2542_s3 = scalar_lea.vmem %s83_s26, 512  ;;  %p2547_p6 = scmp.lt.s32.totalorder %s83_s26, %s83_s26 }
  0x31   :  { %p2543_p5 = scmp.ne.s32.totalorder %s83_s26, %s2542_s3  ;;  %p2548_p7 = scmp.lt.s32.totalorder %s2542_s3, %s2542_s3 }
  0x33   :  { %p2549_p8 = por %p2548_p7, %p2547_p6 }
  0x35   :  { %p2550_p9 = pnand %p2549_p8, %p2543_p5 }
  0x37   :  { %2553 = shalt.err (!%p2550_p9)
}
  0x38   :  { %88 = dma.hbm_to_vmem [thread:$0]  %s3903_s5, 512, %s83_s26, [#allocation12], %s2768_s29, %s2768_s29, %s2769_s30  }
  0x39   :  { %s2554_s1 = scalar_lea.hbm %s3905_s7, 16 }
  0x3a   :  { %p2555_p10 = scmp.ne.s32.totalorder %s3905_s7, %s2554_s1  ;;  %p2558_p11 = scmp.lt.u32.totalorder %s2554_s1, %s3905_s7 }
  0x3c   :  { %p2560_p12 = pnand %p2558_p11, %p2555_p10 }
  0x3e   :  { %2563 = shalt.err (!%p2560_p12)
}
  0x3f   :  { %s2564_s12 = scalar_lea.vmem %s106_s28, 16  ;;  %s2568_s13 = scalar_lea.vmem %s106_s28, 32 }
  0x40   :  { %p2565_p13 = scmp.ne.s32.totalorder %s106_s28, %s2564_s12  ;;  %p2569_p0 = scmp.lt.s32.totalorder %s106_s28, %s106_s28 }
  0x41   :  { %p2570_p1 = scmp.lt.s32.totalorder %s2568_s13, %s2564_s12 }
  0x43   :  { %p2571_p2 = por %p2570_p1, %p2569_p0 }
  0x45   :  { %p2572_p3 = pnand %p2571_p2, %p2565_p13 }
  0x47   :  { %2575 = shalt.err (!%p2572_p3)
}
  0x48   :  { %108 = dma.hbm_to_vmem [thread:$0]  %s3905_s7, 16, %s106_s28, [#allocation15]  }
  0x49   :  { %s2772_s14 = smov [#allocation17]   ;;  %s2773_s16 = smov [#allocation2]  }
  0x4a   :  { %s124_s15 = sshll.u32 %s2772_s14, 4  ;;  %s28_s17 = sshll.u32 %s2773_s16, 4  ;;  %s125_s15 = int_to_ptr.vmem [resolvable:$true] %s124_s15  ;;  %s2904_s17 = int_to_ptr.vmem [resolvable:$true] %s28_s17 }
  0x4b   :  { %s2576_s20 = scalar_lea.hbm %s3907_s9, 256 }
  0x4c   :  { %p2577_p4 = scmp.ne.s32.totalorder %s3907_s9, %s2576_s20  ;;  %p2580_p5 = scmp.lt.u32.totalorder %s2576_s20, %s3907_s9 }
  0x4e   :  { %p2582_p6 = pnand %p2580_p5, %p2577_p4 }
  0x50   :  { %2585 = shalt.err (!%p2582_p6)
}
  0x51   :  { %s2586_s7 = scalar_lea.vmem %s125_s15, 256  ;;  %p2591_p8 = scmp.lt.s32.totalorder %s125_s15, %s125_s15 }
  0x52   :  { %p2587_p7 = scmp.ne.s32.totalorder %s125_s15, %s2586_s7  ;;  %p2592_p9 = scmp.lt.s32.totalorder %s2586_s7, %s2586_s7 }
  0x54   :  { %p2593_p10 = por %p2592_p9, %p2591_p8 }
  0x56   :  { %p2594_p11 = pnand %p2593_p10, %p2587_p7 }
  0x58   :  { %2597 = shalt.err (!%p2594_p11)
}
  0x59   :  { %130 = dma.hbm_to_vmem [thread:$0]  %s3907_s9, 256, %s125_s15, [#allocation18], %s2768_s29, %s2768_s29, %s2769_s30  }
  0x5a   :  { %s2598_s27 = scalar_lea.hbm %s3898_s0, 1600 }
  0x5b   :  { %p2599_p12 = scmp.ne.s32.totalorder %s3898_s0, %s2598_s27  ;;  %p2602_p13 = scmp.lt.u32.totalorder %s2598_s27, %s3898_s0 }
  0x5d   :  { %p2604_p0 = pnand %p2602_p13, %p2599_p12 }
  0x5f   :  { %2607 = shalt.err (!%p2604_p0)
}
  0x60   :  { %s2608_s14 = scalar_lea.vmem %s2904_s17, 1600  ;;  %p2613_p2 = scmp.lt.s32.totalorder %s2904_s17, %s2904_s17 }
  0x61   :  { %p2609_p1 = scmp.ne.s32.totalorder %s2904_s17, %s2608_s14  ;;  %p2614_p3 = scmp.lt.s32.totalorder %s2608_s14, %s2608_s14 }
  0x63   :  { %p2615_p4 = por %p2614_p3, %p2613_p2 }
  0x65   :  { %p2616_p5 = pnand %p2615_p4, %p2609_p1 }
  0x67   :  { %2619 = shalt.err (!%p2616_p5)
}
  0x68   :  { %34 = dma.hbm_to_vmem [thread:$0]  %s3898_s0, 1600, %s2904_s17, [#allocation3], %s2768_s29, %s2768_s29, %s2769_s30  }
  0x69   :  { %s2774_s16 = smov [#allocation7]   ;;  %s2775_s3 = smov [#allocation10]  }
  0x6a   :  { %s53_s19 = sshll.u32 %s2774_s16, 4  ;;  %s73_s20 = sshll.u32 %s2775_s3, 4  ;;  %s54_s19 = int_to_ptr.vmem [resolvable:$true] %s53_s19  ;;  %s74_s20 = int_to_ptr.vmem [resolvable:$true] %s73_s20 }
  0x6b   :  { %s2620_s23 = scalar_lea.hbm %s3900_s2, 16 }
  0x6c   :  { %p2621_p6 = scmp.ne.s32.totalorder %s3900_s2, %s2620_s23  ;;  %p2624_p7 = scmp.lt.u32.totalorder %s2620_s23, %s3900_s2 }
  0x6e   :  { %p2626_p8 = pnand %p2624_p7, %p2621_p6 }
  0x70   :  { %2629 = shalt.err (!%p2626_p8)
}
  0x71   :  { %s2630_s0 = scalar_lea.vmem %s54_s19, 16  ;;  %s2634_s17 = scalar_lea.vmem %s54_s19, 32 }
  0x72   :  { %p2631_p9 = scmp.ne.s32.totalorder %s54_s19, %s2630_s0  ;;  %p2635_p10 = scmp.lt.s32.totalorder %s54_s19, %s54_s19 }
  0x73   :  { %p2636_p11 = scmp.lt.s32.totalorder %s2634_s17, %s2630_s0 }
  0x75   :  { %p2637_p12 = por %p2636_p11, %p2635_p10 }
  0x77   :  { %p2638_p13 = pnand %p2637_p12, %p2631_p9 }
  0x79   :  { %2641 = shalt.err (!%p2638_p13)
}
  0x7a   :  { %56 = dma.hbm_to_vmem [thread:$0]  %s3900_s2, 16, %s54_s19, [#allocation6]  }
  0x7b   :  { %s2642_s13 = scalar_lea.hbm %s3902_s4, 16 }
  0x7c   :  { %p2643_p0 = scmp.ne.s32.totalorder %s3902_s4, %s2642_s13  ;;  %p2646_p1 = scmp.lt.u32.totalorder %s2642_s13, %s3902_s4 }
  0x7e   :  { %p2648_p2 = pnand %p2646_p1, %p2643_p0 }
  0x80   :  { %2651 = shalt.err (!%p2648_p2)
}
  0x81   :  { %s2652_s15 = scalar_lea.vmem %s74_s20, 16  ;;  %s2656_s16 = scalar_lea.vmem %s74_s20, 32 }
  0x82   :  { %p2653_p3 = scmp.ne.s32.totalorder %s74_s20, %s2652_s15  ;;  %p2657_p4 = scmp.lt.s32.totalorder %s74_s20, %s74_s20 }
  0x83   :  { %p2658_p5 = scmp.lt.s32.totalorder %s2656_s16, %s2652_s15 }
  0x85   :  { %p2659_p6 = por %p2658_p5, %p2657_p4 }
  0x87   :  { %p2660_p7 = pnand %p2659_p6, %p2653_p3 }
  0x89   :  { %2663 = shalt.err (!%p2660_p7)
}
  0x8a   :  { %76 = dma.hbm_to_vmem [thread:$0]  %s3902_s4, 16, %s74_s20, [#allocation9]  }
  0x8b   :  { %s2776_s3 = smov [#allocation13]   ;;  %s2777_s22 = smov [#allocation16]  }
  0x8c   :  { %s95_s21 = sshll.u32 %s2776_s3, 4  ;;  %s115_s23 = sshll.u32 %s2777_s22, 4  ;;  %s96_s21 = int_to_ptr.vmem [resolvable:$true] %s95_s21  ;;  %s116_s23 = int_to_ptr.vmem [resolvable:$true] %s115_s23 }
  0x8d   :  { %s2664_s28 = scalar_lea.hbm %s3904_s6, 16 }
  0x8e   :  { %p2665_p8 = scmp.ne.s32.totalorder %s3904_s6, %s2664_s28  ;;  %p2668_p9 = scmp.lt.u32.totalorder %s2664_s28, %s3904_s6 }
  0x90   :  { %p2670_p10 = pnand %p2668_p9, %p2665_p8 }
  0x92   :  { %2673 = shalt.err (!%p2670_p10)
}
  0x93   :  { %s2674_s4 = scalar_lea.vmem %s96_s21, 16  ;;  %s2678_s20 = scalar_lea.vmem %s96_s21, 32 }
  0x94   :  { %p2675_p11 = scmp.ne.s32.totalorder %s96_s21, %s2674_s4  ;;  %p2679_p12 = scmp.lt.s32.totalorder %s96_s21, %s96_s21 }
  0x95   :  { %p2680_p13 = scmp.lt.s32.totalorder %s2678_s20, %s2674_s4 }
  0x97   :  { %p2681_p0 = por %p2680_p13, %p2679_p12 }
  0x99   :  { %p2682_p1 = pnand %p2681_p0, %p2675_p11 }
  0x9b   :  { %2685 = shalt.err (!%p2682_p1)
}
  0x9c   :  { %98 = dma.hbm_to_vmem [thread:$0]  %s3904_s6, 16, %s96_s21, [#allocation12]  }
  0x9d   :  { %s2686_s5 = scalar_lea.hbm %s3906_s8, 16 }
  0x9e   :  { %p2687_p2 = scmp.ne.s32.totalorder %s3906_s8, %s2686_s5  ;;  %p2690_p3 = scmp.lt.u32.totalorder %s2686_s5, %s3906_s8 }
  0xa0   :  { %p2692_p4 = pnand %p2690_p3, %p2687_p2 }
  0xa2   :  { %2695 = shalt.err (!%p2692_p4)
}
  0xa3   :  { %s2696_s16 = scalar_lea.vmem %s116_s23, 16  ;;  %s2700_s2 = scalar_lea.vmem %s116_s23, 32 }
  0xa4   :  { %p2697_p5 = scmp.ne.s32.totalorder %s116_s23, %s2696_s16  ;;  %p2701_p6 = scmp.lt.s32.totalorder %s116_s23, %s116_s23 }
  0xa5   :  { %p2702_p7 = scmp.lt.s32.totalorder %s2700_s2, %s2696_s16 }
  0xa7   :  { %p2703_p8 = por %p2702_p7, %p2701_p6 }
  0xa9   :  { %p2704_p9 = pnand %p2703_p8, %p2697_p5 }
  0xab   :  { %2707 = shalt.err (!%p2704_p9)
}
  0xac   :  { %118 = dma.hbm_to_vmem [thread:$0]  %s3906_s8, 16, %s116_s23, [#allocation15]  }
  0xad   :  { %s2778_s3 = smov [#allocation19]   ;;  %s2708_s7 = scalar_lea.hbm %s3908_s10, 16 }
  0xae   :  { %s137_s21 = sshll.u32 %s2778_s3, 4  ;;  %p2709_p10 = scmp.ne.s32.totalorder %s3908_s10, %s2708_s7  ;;  %s138_s21 = int_to_ptr.vmem [resolvable:$true] %s137_s21 }
  0xaf   :  { %p2712_p11 = scmp.lt.u32.totalorder %s2708_s7, %s3908_s10 }
  0xb1   :  { %p2714_p12 = pnand %p2712_p11, %p2709_p10 }
  0xb3   :  { %2717 = shalt.err (!%p2714_p12)
}
  0xb4   :  { %s2718_s24 = scalar_lea.vmem %s138_s21, 16  ;;  %s2722_s8 = scalar_lea.vmem %s138_s21, 32 }
  0xb5   :  { %p2719_p13 = scmp.ne.s32.totalorder %s138_s21, %s2718_s24  ;;  %p2723_p0 = scmp.lt.s32.totalorder %s138_s21, %s138_s21 }
  0xb6   :  { %p2724_p1 = scmp.lt.s32.totalorder %s2722_s8, %s2718_s24 }
  0xb8   :  { %p2725_p2 = por %p2724_p1, %p2723_p0 }
  0xba   :  { %p2726_p3 = pnand %p2725_p2, %p2719_p13 }
  0xbc   :  { %2729 = shalt.err (!%p2726_p3)
}
  0xbd   :  { %140 = dma.hbm_to_vmem [thread:$0]  %s3908_s10, 16, %s138_s21, [#allocation18]  }
  0xbe   :  { %2752 = dma.done.wait [#allocation3], 1600  }
  0xbf   :  { %2753 = vsyncadd [#allocation3], 4294965696 }
  0xc0   :  { %2754 = dma.done.wait [#allocation6], 144  }
  0xc1   :  { %2755 = vsyncadd [#allocation6], 4294967152 }
  0xc2   :  { %2756 = dma.done.wait [#allocation9], 32  }
  0xc3   :  { %2757 = vsyncadd [#allocation9], 4294967264 }
  0xc4   :  { %2758 = dma.done.wait [#allocation12], 528  }
  0xc5   :  { %2759 = vsyncadd [#allocation12], 4294966768 }
  0xc6   :  { %2760 = dma.done.wait [#allocation15], 32  }
  0xc7   :  { %2761 = vsyncadd [#allocation15], 4294967264 }
  0xc8   :  { %2762 = dma.done.wait [#allocation18], 272  }
  0xc9   :  { %2763 = vsyncadd [#allocation18], 4294967024  ;;  %v2779_v0 = vmov 0.0   ;;  %vm2780_vm0 = vmmov 0   ;;  %v2318_v1 = vld [vmem:[#allocation5] sm:$0xff]   ;;  %vm278_vm1 = vcmask 130048  }
  0xca   :  { %2130 = vmatprep.subr.bf16.mxu0 %v2779_v0  ;;  %2132 = vmatprep.mubr.msk.bf16.mxu0 %vm2780_vm0, %v2779_v0  ;;  %v2319_v2 = vld [vmem:[#allocation2] sm:$0xff]   ;;  %v2325_v3 = vld [vmem:[#allocation2 + $0x38] sm:$0xff]   ;;  %v2320_v4 = vld [vmem:[#allocation2 + $0x8] sm:$0xff]   ;;  %vm456_vm2 = vcmask 523264   ;;  %vm1099_vm3 = vcmask 261120   ;;  %s2781_s10 = smov [#allocation20]  }
  0xcb   :  { %2300 = vmatprep.subr.bf16.mxu1 %v2779_v0  ;;  %2160 = vmatprep.mubr.msk.bf16.mxu1 %vm2780_vm0, %v2779_v0  ;;  %v2327_v5 = vld [vmem:[#allocation2 + $0x40] sm:$0xff]   ;;  %v2321_v6 = vld [vmem:[#allocation2 + $0x10] sm:$0xff]   ;;  %v2328_v7 = vld [vmem:[#allocation2 + $0x48] sm:$0xff]   ;;  %s1880_s20 = sshll.u32 %s2781_s10, 4  ;;  %s1881_s20 = int_to_ptr.vmem [resolvable:$true] %s1880_s20 }
  0xcc   :  { %2131 = vmatpush3.bf16.msra.mxu0 %v2318_v1  ;;  %2301 = vmatpush3.bf16.msra.mxu1 %v2318_v1  ;;  %v2322_v8 = vld [vmem:[#allocation2 + $0x18] sm:$0xff]   ;;  %v2329_v9 = vld [vmem:[#allocation2 + $0x50] sm:$0xff]   ;;  %v2323_v10 = vld [vmem:[#allocation2 + $0x20] sm:$0xff]   ;;  %s2730_s25 = scalar_lea.vmem %s1881_s20, 1600  ;;  %p2735_p5 = scmp.lt.s32.totalorder %s1881_s20, %s1881_s20 }
  0xcd   :  { %2184 = vmatprep.subr.bf16.mxu1 %v2779_v0  ;;  %2244 = vmatprep.subr.bf16.mxu0 %v2779_v0  ;;  %v2330_v11 = vld [vmem:[#allocation2 + $0x58] sm:$0xff]   ;;  %v2324_v12 = vld [vmem:[#allocation2 + $0x28] sm:$0xff]   ;;  %v2331_v13 = vld [vmem:[#allocation2 + $0x60] ss:$0 sps:$4 sm:$0xff]   ;;  %p2731_p4 = scmp.ne.s32.totalorder %s1881_s20, %s2730_s25  ;;  %p2736_p6 = scmp.lt.s32.totalorder %s2730_s25, %s2730_s25 }
  0xce   :  { %v2326_v14 = vld [vmem:[#allocation2 + $0x30] sm:$0xff]   ;;  %v3048_v15 = vld [vmem:[#allocation7] ss:$0 sm:$0xff] }
  0xcf   :  { %2133 = vmatmul.mubr.msk.bf16.vlgmr.msra.gmra.mrb[0].mxu0 %vm278_vm1, %v2319_v2  ;;  %2161 = vmatmul.mubr.msk.bf16.vlgmr.msra.gmra.mrb[0].mxu1 %vm278_vm1, %v2325_v3  ;;  %p2737_p7 = por %p2736_p6, %p2735_p5 }
  0xd0   :  { %2136 = vmatprep.mubr.msk.bf16.mxu0 %vm2780_vm0, %v2779_v0  ;;  %2164 = vmatprep.mubr.msk.bf16.mxu1 %vm2780_vm0, %v2779_v0 }
  0xd1   :  { %p2738_p8 = pnand %p2737_p7, %p2731_p4 }
  0xd7   :  { %2137 = vmatmul.mubr.msk.bf16.gmra.mrb[4].mxu0 %vm278_vm1, %v2320_v4  ;;  %2165 = vmatmul.mubr.msk.bf16.gmra.mrb[4].mxu1 %vm278_vm1, %v2327_v5 }
  0xd8   :  { %2140 = vmatprep.mubr.msk.bf16.mxu0 %vm2780_vm0, %v2779_v0  ;;  %2168 = vmatprep.mubr.msk.bf16.mxu1 %vm2780_vm0, %v2779_v0 }
  0xdf   :  { %2141 = vmatmul.mubr.msk.bf16.gmra.mrb[8].mxu0 %vm278_vm1, %v2321_v6  ;;  %2169 = vmatmul.mubr.msk.bf16.gmra.mrb[8].mxu1 %vm278_vm1, %v2328_v7 }
  0xe0   :  { %2144 = vmatprep.mubr.msk.bf16.mxu0 %vm2780_vm0, %v2779_v0  ;;  %2172 = vmatprep.mubr.msk.bf16.mxu1 %vm2780_vm0, %v2779_v0 }
  0xe7   :  { %2145 = vmatmul.mubr.msk.bf16.gmra.mrb[12].mxu0 %vm278_vm1, %v2322_v8  ;;  %2173 = vmatmul.mubr.msk.bf16.gmra.mrb[12].mxu1 %vm278_vm1, %v2329_v9 }
  0xe8   :  { %2148 = vmatprep.mubr.msk.bf16.mxu0 %vm2780_vm0, %v2779_v0  ;;  %2176 = vmatprep.mubr.msk.bf16.mxu1 %vm2780_vm0, %v2779_v0 }
  0xef   :  { %2149 = vmatmul.mubr.msk.bf16.gmra.mrb[16].mxu0 %vm278_vm1, %v2323_v10  ;;  %2177 = vmatmul.mubr.msk.bf16.gmra.mrb[16].mxu1 %vm278_vm1, %v2330_v11 }
  0xf0   :  { %2152 = vmatprep.mubr.msk.bf16.mxu0 %vm2780_vm0, %v2779_v0  ;;  %2180 = vmatprep.mubr.msk.bf16.mxu1 %vm2780_vm0, %v2779_v0 }
  0xf7   :  { %2153 = vmatmul.mubr.msk.bf16.gmra.mrb[20].mxu0 %vm278_vm1, %v2324_v12  ;;  %2181 = vmatmul.mubr.msk.bf16.gmra.mrb[20].mxu1 %vm278_vm1, %v2331_v13 }
  0xf8   :  { %2156 = vmatprep.mubr.msk.bf16.mxu0 %vm2780_vm0, %v2779_v0  ;;  %2192 = vmatprep.mubr.msk.bf16.mxu1 %vm2780_vm0, %v2779_v0 }
  0xff   :  { %2157 = vmatmul.mubr.msk.bf16.gmra.mrb[24].mxu0 %vm278_vm1, %v2326_v14 }
 0x100   :  { %2248 = vmatprep.mubr.msk.bf16.mxu0 %vm2780_vm0, %v2779_v0 }
 0x1a2   :  { %v352_v16 = vpop.f32.mrb[0].mxu0  ;;  %v3058_v23 = vpop.f32.mrb[0].mxu1 }
 0x1a3   :  { %v3051_v17 = vadd.f32 %v3048_v15, %v352_v16  ;;  %v2134_v18 = vpop.f32.mrb[1].mxu0  ;;  %v2162_v24 = vpop.f32.mrb[1].mxu1 }
 0x1a4   :  { %v355_v19 = vpop.f32.mrb[2].mxu0  ;;  %v3060_v25 = vpop.f32.mrb[2].mxu1 }
 0x1a5   :  { %v3054_v20 = vadd.f32 %v3048_v15, %v355_v19  ;;  %v2135_v21 = vpop.f32.mrb[3].mxu0  ;;  %v457_v22 = vsel %vm456_vm2, %v3051_v17, 0.0  ;;  %v2163_v27 = vpop.f32.mrb[3].mxu1 }
 0x1a6   :  { %458 = vadd.xlane.f32.xlu0 %v457_v22 }
 0x1a7   :  { %v460_v26 = vsel %vm456_vm2, %v3054_v20, 0.0 }
 0x1aa   :  { %461 = vadd.xlane.f32.xlu0 %v460_v26  ;;  %v360_v28 = vpop.f32.mrb[4].mxu0  ;;  %v3072_v35 = vpop.f32.mrb[4].mxu1 }
 0x1ab   :  { %v3065_v29 = vadd.f32 %v3048_v15, %v360_v28  ;;  %v2138_v30 = vpop.f32.mrb[5].mxu0  ;;  %v2166_v36 = vpop.f32.mrb[5].mxu1 }
 0x1ac   :  { %v363_v31 = vpop.f32.mrb[6].mxu0  ;;  %v3074_v37 = vpop.f32.mrb[6].mxu1 }
 0x1ad   :  { %v3068_v32 = vadd.f32 %v3048_v15, %v363_v31  ;;  %v2139_v33 = vpop.f32.mrb[7].mxu0  ;;  %v463_v34 = vsel %vm456_vm2, %v3065_v29, 0.0  ;;  %v2167_v39 = vpop.f32.mrb[7].mxu1 }
 0x1ae   :  { %464 = vadd.xlane.f32.xlu1 %v463_v34 }
 0x1af   :  { %v466_v38 = vsel %vm456_vm2, %v3068_v32, 0.0 }
 0x1b2   :  { %467 = vadd.xlane.f32.xlu1 %v466_v38  ;;  %v368_v40 = vpop.f32.mrb[8].mxu0  ;;  %v3086_v47 = vpop.f32.mrb[8].mxu1 }
 0x1b3   :  { %v3079_v41 = vadd.f32 %v3048_v15, %v368_v40  ;;  %v2142_v42 = vpop.f32.mrb[9].mxu0  ;;  %v2170_v49 = vpop.f32.mrb[9].mxu1 }
 0x1b4   :  { %v371_v43 = vpop.f32.mrb[10].mxu0  ;;  %v3090_v50 = vpop.f32.mrb[10].mxu1  ;;  %v3151_v49 = vadd.f32 %v3048_v15, %v3060_v25 }
 0x1b5   :  { %v3082_v44 = vadd.f32 %v3048_v15, %v371_v43  ;;  %v469_v45 = vsel %vm456_vm2, %v3079_v41, 0.0  ;;  %v2143_v46 = vpop.f32.mrb[11].mxu0  ;;  %v2171_v51 = vpop.f32.mrb[11].mxu1  ;;  %v3142_v43 = vadd.f32 %v3048_v15, %v3058_v23  ;;  %v3157_v23 = vadd.f32 %v3048_v15, %v3072_v35 }
 0x1b6   :  { %470 = vadd.xlane.f32.xlu0 %v469_v45  ;;  %v502_v25 = vsel %vm456_vm2, %v3151_v49, 0.0 }
 0x1b7   :  { %v472_v48 = vsel %vm456_vm2, %v3082_v44, 0.0  ;;  %v505_v35 = vsel %vm456_vm2, %v3157_v23, 0.0 }
 0x1b8   :  { %473 = vadd.xlane.f32.xlu1 %v472_v48 }
 0x1ba   :  { %v376_v52 = vpop.f32.mrb[12].mxu0  ;;  %v432_v59 = vpop.f32.mrb[12].mxu1 }
 0x1bb   :  { %v3093_v53 = vadd.f32 %v3048_v15, %v376_v52  ;;  %v2146_v54 = vpop.f32.mrb[13].mxu0  ;;  %v3103_v61 = vadd.f32 %v3048_v15, %v432_v59  ;;  %v2174_v62 = vpop.f32.mrb[13].mxu1 }
 0x1bc   :  { %v379_v55 = vpop.f32.mrb[14].mxu0  ;;  %v435_v63 = vpop.f32.mrb[14].mxu1  ;;  %v499_v54 = vsel %vm456_vm2, %v3142_v43, 0.0  ;;  %v2333_v62 = vld [vmem:[#allocation11 + $0x8] sm:$0xff]  }
 0x1bd   :  { %v3096_v56 = vadd.f32 %v3048_v15, %v379_v55  ;;  %v475_v57 = vsel %vm456_vm2, %v3093_v53, 0.0  ;;  %v2147_v58 = vpop.f32.mrb[15].mxu0  ;;  %v3106_v1 = vadd.f32 %v3048_v15, %v435_v63  ;;  %v2175_v2 = vpop.f32.mrb[15].mxu1  ;;  %v3163_v55 = vadd.f32 %v3048_v15, %v3074_v37 }
 0x1be   :  { %476 = vadd.xlane.f32.xlu0 %v475_v57  ;;  %v3169_v57 = vadd.f32 %v3048_v15, %v3086_v47  ;;  %v3175_v58 = vadd.f32 %v3048_v15, %v3090_v50 }
 0x1bf   :  { %v478_v60 = vsel %vm456_vm2, %v3096_v56, 0.0  ;;  %v508_v37 = vsel %vm456_vm2, %v3163_v55, 0.0 }
 0x1c0   :  { %479 = vadd.xlane.f32.xlu1 %v478_v60  ;;  %v511_v59 = vsel %vm456_vm2, %v3169_v57, 0.0  ;;  %v514_v47 = vsel %vm456_vm2, %v3175_v58, 0.0  ;;  %v2332_v60 = vld [vmem:[#allocation11] sm:$0xff]  }
 0x1c1   :  { %2185 = vmatpush3.bf16.msra.mxu1 %v2332_v60 }
 0x1c2   :  { %v384_v3 = vpop.f32.mrb[16].mxu0  ;;  %v440_v10 = vpop.f32.mrb[16].mxu1  ;;  %2186 = vmatprep.subr.bf16.mxu1 %v2779_v0 }
 0x1c3   :  { %v3109_v4 = vadd.f32 %v3048_v15, %v384_v3  ;;  %v2150_v5 = vpop.f32.mrb[17].mxu0  ;;  %v3119_v12 = vadd.f32 %v3048_v15, %v440_v10  ;;  %v2178_v13 = vpop.f32.mrb[17].mxu1 }
 0x1c4   :  { %v387_v6 = vpop.f32.mrb[18].mxu0  ;;  %v443_v14 = vpop.f32.mrb[18].mxu1 }
 0x1c5   :  { %v3112_v7 = vadd.f32 %v3048_v15, %v387_v6  ;;  %v481_v8 = vsel %vm456_vm2, %v3109_v4, 0.0  ;;  %v2151_v9 = vpop.f32.mrb[19].mxu0  ;;  %v3122_v16 = vadd.f32 %v3048_v15, %v443_v14  ;;  %v2179_v18 = vpop.f32.mrb[19].mxu1  ;;  %2187 = vmatpush3.bf16.msra.mxu1 %v2333_v62 }
 0x1c6   :  { %482 = vadd.xlane.f32.xlu0 %v481_v8  ;;  %2188 = vmatprep.subr.bf16.mxu1 %v2779_v0 }
 0x1c7   :  { %v484_v11 = vsel %vm456_vm2, %v3112_v7, 0.0 }
 0x1c8   :  { %485 = vadd.xlane.f32.xlu1 %v484_v11  ;;  %v517_v11 = vsel %vm456_vm2, %v3103_v61, 0.0 }
 0x1ca   :  { %v392_v19 = vpop.f32.mrb[20].mxu0  ;;  %v448_v30 = vpop.f32.mrb[20].mxu1 }
 0x1cb   :  { %v3125_v21 = vadd.f32 %v3048_v15, %v392_v19  ;;  %v2154_v22 = vpop.f32.mrb[21].mxu0  ;;  %v3135_v33 = vadd.f32 %v3048_v15, %v448_v30  ;;  %v2182_v34 = vpop.f32.mrb[21].mxu1  ;;  %v523_v30 = vsel %vm456_vm2, %v3119_v12, 0.0 }
 0x1cc   :  { %v395_v24 = vpop.f32.mrb[22].mxu0  ;;  %v451_v36 = vpop.f32.mrb[22].mxu1 }
 0x1cd   :  { %v3128_v26 = vadd.f32 %v3048_v15, %v395_v24  ;;  %v487_v27 = vsel %vm456_vm2, %v3125_v21, 0.0  ;;  %v2155_v28 = vpop.f32.mrb[23].mxu0  ;;  %v2183_v38 = vpop.f32.mrb[23].mxu1 }
 0x1ce   :  { %488 = vadd.xlane.f32.xlu0 %v487_v27  ;;  %v520_v27 = vsel %vm456_vm2, %v3106_v1, 0.0 }
 0x1cf   :  { %v490_v31 = vsel %vm456_vm2, %v3128_v26, 0.0 }
 0x1d0   :  { %491 = vadd.xlane.f32.xlu1 %v490_v31 }
 0x1d2   :  { %v400_v39 = vpop.f32.mrb[24].mxu0 }
 0x1d3   :  { %v3138_v40 = vadd.f32 %v3048_v15, %v400_v39  ;;  %v2158_v42 = vpop.f32.mrb[25].mxu0 }
 0x1d4   :  { %v403_v45 = vpop.f32.mrb[26].mxu0 }
 0x1d5   :  { %v3145_v46 = vadd.f32 %v3048_v15, %v403_v45  ;;  %v493_v48 = vsel %vm456_vm2, %v3138_v40, 0.0  ;;  %v2159_v51 = vpop.f32.mrb[27].mxu0 }
 0x1d6   :  { %494 = vadd.xlane.f32.xlu0 %v493_v48  ;;  %v526_v48 = vsel %vm456_vm2, %v3122_v16, 0.0 }
 0x1d7   :  { %v496_v52 = vsel %vm456_vm2, %v3145_v46, 0.0 }
 0x1d8   :  { %497 = vadd.xlane.f32.xlu1 %v496_v52 }
 0x1da   :  { %500 = vadd.xlane.f32.xlu0 %v499_v54  ;;  %v529_v54 = vsel %vm456_vm2, %v3135_v33, 0.0 }
 0x1dc   :  { %503 = vadd.xlane.f32.xlu1 %v502_v25 }
 0x1de   :  { %506 = vadd.xlane.f32.xlu0 %v505_v35 }
 0x1e0   :  { %509 = vadd.xlane.f32.xlu1 %v508_v37 }
 0x1e2   :  { %512 = vadd.xlane.f32.xlu0 %v511_v59 }
 0x1e4   :  { %515 = vadd.xlane.f32.xlu1 %v514_v47 }
 0x233   :  { %v459_v15 = vpop.xlane.xlu0 %458 }
 0x234   :  { %v533_v50 = vmul.f32 0.015625, %v459_v15 }
 0x236   :  { %v3186_v63 = vsub.f32 %v3051_v17, %v533_v50 }
 0x237   :  { %v462_v2 = vpop.xlane.xlu0 %461 }
 0x238   :  { %v534_v3 = vmul.f32 0.015625, %v462_v2  ;;  %v583_v5 = vmul.f32 %v3186_v63, %v3186_v63 }
 0x23a   :  { %v3191_v6 = vsub.f32 %v3054_v20, %v534_v3  ;;  %v608_v8 = vsel %vm456_vm2, %v583_v5, 0.0 }
 0x23b   :  { %v465_v9 = vpop.xlane.xlu1 %464  ;;  %609 = vadd.xlane.f32.xlu0 %v608_v8 }
 0x23c   :  { %v535_v10 = vmul.f32 0.015625, %v465_v9  ;;  %v584_v17 = vmul.f32 %v3191_v6, %v3191_v6 }
 0x23e   :  { %v3199_v13 = vsub.f32 %v3065_v29, %v535_v10  ;;  %v611_v14 = vsel %vm456_vm2, %v584_v17, 0.0 }
 0x23f   :  { %v468_v18 = vpop.xlane.xlu1 %467  ;;  %518 = vadd.xlane.f32.xlu0 %v517_v11  ;;  %612 = vadd.xlane.f32.xlu1 %v611_v14 }
 0x240   :  { %v536_v20 = vmul.f32 0.015625, %v468_v18  ;;  %v585_v19 = vmul.f32 %v3199_v13, %v3199_v13 }
 0x242   :  { %v3205_v22 = vsub.f32 %v3068_v32, %v536_v20  ;;  %v614_v24 = vsel %vm456_vm2, %v585_v19, 0.0 }
 0x243   :  { %v471_v28 = vpop.xlane.xlu0 %470  ;;  %615 = vadd.xlane.f32.xlu0 %v614_v24  ;;  %521 = vadd.xlane.f32.xlu1 %v520_v27  ;;  %v2335_v27 = vld [vmem:[#allocation11 + $0x18] sm:$0xff]  }
 0x244   :  { %v537_v29 = vmul.f32 0.015625, %v471_v28  ;;  %v586_v31 = vmul.f32 %v3205_v22, %v3205_v22 }
 0x245   :  { %v474_v34 = vpop.xlane.xlu1 %473 }
 0x246   :  { %v3215_v36 = vsub.f32 %v3079_v41, %v537_v29  ;;  %v538_v32 = vmul.f32 0.015625, %v474_v34  ;;  %v617_v38 = vsel %vm456_vm2, %v586_v31, 0.0 }
 0x247   :  { %524 = vadd.xlane.f32.xlu0 %v523_v30  ;;  %618 = vadd.xlane.f32.xlu1 %v617_v38 }
 0x248   :  { %v3219_v39 = vsub.f32 %v3082_v44, %v538_v32  ;;  %v587_v42 = vmul.f32 %v3215_v36, %v3215_v36 }
 0x24a   :  { %v620_v45 = vsel %vm456_vm2, %v587_v42, 0.0  ;;  %v588_v41 = vmul.f32 %v3219_v39, %v3219_v39 }
 0x24b   :  { %v477_v51 = vpop.xlane.xlu0 %476  ;;  %621 = vadd.xlane.f32.xlu0 %v620_v45  ;;  %527 = vadd.xlane.f32.xlu1 %v526_v48 }
 0x24c   :  { %v539_v52 = vmul.f32 0.015625, %v477_v51  ;;  %v623_v37 = vsel %vm456_vm2, %v588_v41, 0.0 }
 0x24d   :  { %v480_v44 = vpop.xlane.xlu1 %479 }
 0x24e   :  { %v3231_v25 = vsub.f32 %v3093_v53, %v539_v52  ;;  %v540_v35 = vmul.f32 0.015625, %v480_v44 }
 0x24f   :  { %530 = vadd.xlane.f32.xlu0 %v529_v54  ;;  %624 = vadd.xlane.f32.xlu1 %v623_v37 }
 0x250   :  { %v3235_v59 = vsub.f32 %v3096_v56, %v540_v35  ;;  %v589_v47 = vmul.f32 %v3231_v25, %v3231_v25 }
 0x252   :  { %v626_v60 = vsel %vm456_vm2, %v589_v47, 0.0  ;;  %v590_v62 = vmul.f32 %v3235_v59, %v3235_v59 }
 0x253   :  { %v483_v15 = vpop.xlane.xlu0 %482  ;;  %627 = vadd.xlane.f32.xlu1 %v626_v60 }
 0x254   :  { %v541_v53 = vmul.f32 0.015625, %v483_v15  ;;  %v629_v50 = vsel %vm456_vm2, %v590_v62, 0.0 }
 0x255   :  { %v486_v2 = vpop.xlane.xlu1 %485  ;;  %630 = vadd.xlane.f32.xlu0 %v629_v50 }
 0x256   :  { %v3244_v3 = vsub.f32 %v3109_v4, %v541_v53  ;;  %v542_v56 = vmul.f32 0.015625, %v486_v2  ;;  %v2334_v4 = vld [vmem:[#allocation11 + $0x10] sm:$0xff]  }
 0x257   :  { %2189 = vmatpush3.bf16.msra.mxu1 %v2334_v4 }
 0x258   :  { %v3247_v5 = vsub.f32 %v3112_v7, %v542_v56  ;;  %v591_v8 = vmul.f32 %v3244_v3, %v3244_v3  ;;  %2190 = vmatprep.subr.bf16.mxu1 %v2779_v0 }
 0x25a   :  { %v632_v9 = vsel %vm456_vm2, %v591_v8, 0.0  ;;  %v592_v10 = vmul.f32 %v3247_v5, %v3247_v5 }
 0x25b   :  { %v489_v11 = vpop.xlane.xlu0 %488  ;;  %633 = vadd.xlane.f32.xlu1 %v632_v9  ;;  %2191 = vmatpush3.bf16.msra.mxu1 %v2335_v27 }
 0x25c   :  { %v543_v17 = vmul.f32 0.015625, %v489_v11  ;;  %v635_v14 = vsel %vm456_vm2, %v592_v10, 0.0 }
 0x25d   :  { %v492_v18 = vpop.xlane.xlu1 %491  ;;  %636 = vadd.xlane.f32.xlu0 %v635_v14 }
 0x25e   :  { %v3256_v20 = vsub.f32 %v3125_v21, %v543_v17  ;;  %v544_v7 = vmul.f32 0.015625, %v492_v18 }
 0x260   :  { %v3259_v19 = vsub.f32 %v3128_v26, %v544_v7  ;;  %v593_v24 = vmul.f32 %v3256_v20, %v3256_v20 }
 0x262   :  { %v638_v28 = vsel %vm456_vm2, %v593_v24, 0.0  ;;  %v594_v29 = vmul.f32 %v3259_v19, %v3259_v19 }
 0x263   :  { %v495_v30 = vpop.xlane.xlu0 %494  ;;  %639 = vadd.xlane.f32.xlu1 %v638_v28 }
 0x264   :  { %v545_v21 = vmul.f32 0.015625, %v495_v30  ;;  %v641_v31 = vsel %vm456_vm2, %v594_v29, 0.0 }
 0x265   :  { %642 = vadd.xlane.f32.xlu0 %v641_v31  ;;  %v498_v26 = vpop.xlane.xlu1 %497 }
 0x266   :  { %v3269_v34 = vsub.f32 %v3138_v40, %v545_v21  ;;  %v546_v32 = vmul.f32 0.015625, %v498_v26 }
 0x267   :  { %v501_v38 = vpop.xlane.xlu0 %500 }
 0x268   :  { %v3272_v42 = vsub.f32 %v3145_v46, %v546_v32  ;;  %v547_v45 = vmul.f32 0.015625, %v501_v38  ;;  %v595_v48 = vmul.f32 %v3269_v34, %v3269_v34 }
 0x269   :  { %v504_v41 = vpop.xlane.xlu1 %503 }
 0x26a   :  { %v3277_v51 = vsub.f32 %v3142_v43, %v547_v45  ;;  %v548_v52 = vmul.f32 0.015625, %v504_v41  ;;  %v644_v54 = vsel %vm456_vm2, %v595_v48, 0.0  ;;  %v596_v40 = vmul.f32 %v3272_v42, %v3272_v42 }
 0x26b   :  { %v507_v44 = vpop.xlane.xlu0 %506  ;;  %645 = vadd.xlane.f32.xlu1 %v644_v54 }
 0x26c   :  { %v3283_v35 = vsub.f32 %v3151_v49, %v548_v52  ;;  %v549_v46 = vmul.f32 0.015625, %v507_v44  ;;  %v647_v37 = vsel %vm456_vm2, %v596_v40, 0.0  ;;  %v597_v47 = vmul.f32 %v3277_v51, %v3277_v51 }
 0x26d   :  { %648 = vadd.xlane.f32.xlu0 %v647_v37  ;;  %v510_v43 = vpop.xlane.xlu1 %509 }
 0x26e   :  { %v3289_v60 = vsub.f32 %v3157_v23, %v549_v46  ;;  %v550_v62 = vmul.f32 0.015625, %v510_v43  ;;  %v650_v15 = vsel %vm456_vm2, %v597_v47, 0.0  ;;  %v598_v53 = vmul.f32 %v3283_v35, %v3283_v35 }
 0x26f   :  { %v513_v50 = vpop.xlane.xlu0 %512  ;;  %651 = vadd.xlane.f32.xlu1 %v650_v15 }
 0x270   :  { %v3295_v49 = vsub.f32 %v3163_v55, %v550_v62  ;;  %v551_v2 = vmul.f32 0.015625, %v513_v50  ;;  %v653_v56 = vsel %vm456_vm2, %v598_v53, 0.0  ;;  %v599_v8 = vmul.f32 %v3289_v60, %v3289_v60  ;;  %v3327_v62 = vld [vmem:[#allocation8] ss:$0 sm:$0xff] }
 0x271   :  { %654 = vadd.xlane.f32.xlu0 %v653_v56  ;;  %v516_v23 = vpop.xlane.xlu1 %515 }
 0x272   :  { %v3301_v9 = vsub.f32 %v3169_v57, %v551_v2  ;;  %v552_v10 = vmul.f32 0.015625, %v516_v23  ;;  %v656_v11 = vsel %vm456_vm2, %v599_v8, 0.0  ;;  %v600_v17 = vmul.f32 %v3295_v49, %v3295_v49 }
 0x273   :  { %657 = vadd.xlane.f32.xlu1 %v656_v11 }
 0x274   :  { %v3307_v55 = vsub.f32 %v3175_v58, %v552_v10  ;;  %v659_v14 = vsel %vm456_vm2, %v600_v17, 0.0  ;;  %v601_v18 = vmul.f32 %v3301_v9, %v3301_v9 }
 0x275   :  { %660 = vadd.xlane.f32.xlu0 %v659_v14  ;;  %v3337_v14 = vld [vmem:[#allocation10] ss:$0 sm:$0xff] }
 0x276   :  { %v662_v4 = vsel %vm456_vm2, %v601_v18, 0.0  ;;  %v602_v57 = vmul.f32 %v3307_v55, %v3307_v55 }
 0x277   :  { %663 = vadd.xlane.f32.xlu1 %v662_v4 }
 0x278   :  { %v665_v7 = vsel %vm456_vm2, %v602_v57, 0.0 }
 0x279   :  { %666 = vadd.xlane.f32.xlu0 %v665_v7 }
 0x2c8   :  { %v610_v24 = vpop.xlane.xlu0 %609 }
 0x2c9   :  { %v683_v27 = vmul.f32 0.015625, %v610_v24 }
 0x2cb   :  { %v708_v28 = vadd.f32 1e-05, %v683_v27 }
 0x2cc   :  { %v519_v58 = vpop.xlane.xlu0 %518  ;;  %v613_v29 = vpop.xlane.xlu1 %612 }
 0x2cd   :  { %2338 = vrsqrt.f32 %v708_v28  ;;  %v553_v30 = vmul.f32 0.015625, %v519_v58  ;;  %v684_v21 = vmul.f32 0.015625, %v613_v29 }
 0x2cf   :  { %v3317_v31 = vsub.f32 %v3103_v61, %v553_v30  ;;  %v709_v26 = vadd.f32 1e-05, %v684_v21 }
 0x2d0   :  { %v616_v32 = vpop.xlane.xlu0 %615  ;;  %v522_v38 = vpop.xlane.xlu1 %521 }
 0x2d1   :  { %2340 = vrsqrt.f32 %v709_v26  ;;  %v685_v45 = vmul.f32 0.015625, %v616_v32  ;;  %v554_v48 = vmul.f32 0.015625, %v522_v38  ;;  %v603_v41 = vmul.f32 %v3317_v31, %v3317_v31 }
 0x2d3   :  { %v710_v52 = vadd.f32 1e-05, %v685_v45  ;;  %v3322_v54 = vsub.f32 %v3106_v1, %v554_v48  ;;  %v668_v40 = vsel %vm456_vm2, %v603_v41, 0.0 }
 0x2d4   :  { %v525_v44 = vpop.xlane.xlu0 %524  ;;  %669 = vadd.xlane.f32.xlu1 %v668_v40  ;;  %v619_v46 = vpop.xlane.xlu1 %618 }
 0x2d5   :  { %2342 = vrsqrt.f32 %v710_v52  ;;  %v555_v61 = vmul.f32 0.015625, %v525_v44  ;;  %v686_v37 = vmul.f32 0.015625, %v619_v46  ;;  %v604_v47 = vmul.f32 %v3322_v54, %v3322_v54 }
 0x2d7   :  { %v2339_v43 = vpop.eup %2338  ;;  %v3330_v15 = vsub.f32 %v3119_v12, %v555_v61  ;;  %v711_v53 = vadd.f32 1e-05, %v686_v37  ;;  %v671_v1 = vsel %vm456_vm2, %v604_v47, 0.0 }
 0x2d8   :  { %v758_v50 = vmul.f32 %v2339_v43, %v3186_v63  ;;  %v622_v2 = vpop.xlane.xlu0 %621  ;;  %672 = vadd.xlane.f32.xlu0 %v671_v1  ;;  %v528_v56 = vpop.xlane.xlu1 %527 }
 0x2d9   :  { %2344 = vrsqrt.f32 %v711_v53  ;;  %v687_v8 = vmul.f32 0.015625, %v622_v2  ;;  %v556_v23 = vmul.f32 0.015625, %v528_v56  ;;  %v605_v10 = vmul.f32 %v3330_v15, %v3330_v15 }
 0x2da   :  { %v789_v11 = vmul.f32 %v3327_v62, %v758_v50 }
 0x2db   :  { %v2341_v17 = vpop.eup %2340  ;;  %v712_v12 = vadd.f32 1e-05, %v687_v8  ;;  %v3340_v18 = vsub.f32 %v3122_v16, %v556_v23  ;;  %v674_v63 = vsel %vm456_vm2, %v605_v10, 0.0 }
 0x2dc   :  { %v759_v4 = vmul.f32 %v2341_v17, %v3191_v6  ;;  %v531_v57 = vpop.xlane.xlu0 %530  ;;  %675 = vadd.xlane.f32.xlu1 %v674_v63  ;;  %v625_v7 = vpop.xlane.xlu1 %624  ;;  %v820_v58 = vadd.f32 %v3337_v14, %v789_v11 }
 0x2dd   :  { %2346 = vrsqrt.f32 %v712_v12  ;;  %v557_v24 = vmul.f32 0.015625, %v531_v57  ;;  %v688_v27 = vmul.f32 0.015625, %v625_v7  ;;  %v606_v28 = vmul.f32 %v3340_v18, %v3340_v18 }
 0x2de   :  { %v790_v29 = vmul.f32 %v3327_v62, %v759_v4  ;;  %v845_v41 = vmax.f32 %v820_v58, 0.0 }
 0x2df   :  { %v2343_v30 = vpop.eup %2342  ;;  %v3349_v16 = vsub.f32 %v3135_v33, %v557_v24  ;;  %v713_v21 = vadd.f32 1e-05, %v688_v27  ;;  %v677_v6 = vsel %vm456_vm2, %v606_v28, 0.0 }
 0x2e0   :  { %v821_v26 = vadd.f32 %v3337_v14, %v790_v29  ;;  %v760_v32 = vmul.f32 %v2343_v30, %v3199_v13  ;;  %678 = vadd.xlane.f32.xlu0 %v677_v6  ;;  %v628_v38 = vpop.xlane.xlu1 %627 }
 0x2e1   :  { %2348 = vrsqrt.f32 %v713_v21  ;;  %v689_v45 = vmul.f32 0.015625, %v628_v38  ;;  %v607_v48 = vmul.f32 %v3349_v16, %v3349_v16 }
 0x2e2   :  { %v846_v52 = vmax.f32 %v821_v26, 0.0  ;;  %v631_v40 = vpop.xlane.xlu0 %630  ;;  %v791_v33 = vmul.f32 %v3327_v62, %v760_v32 }
 0x2e3   :  { %v2345_v44 = vpop.eup %2344  ;;  %v714_v46 = vadd.f32 1e-05, %v689_v45  ;;  %v690_v61 = vmul.f32 0.015625, %v631_v40  ;;  %v680_v37 = vsel %vm456_vm2, %v607_v48, 0.0 }
 0x2e4   :  { %v761_v47 = vmul.f32 %v2345_v44, %v3205_v22  ;;  %681 = vadd.xlane.f32.xlu1 %v680_v37  ;;  %v870_v13 = vpack.c.bf16 %v846_v52, %v845_v41  ;;  %v822_v1 = vadd.f32 %v3337_v14, %v791_v33 }
 0x2e5   :  { %2350 = vrsqrt.f32 %v714_v46  ;;  %v715_v43 = vadd.f32 1e-05, %v690_v61 }
 0x2e6   :  { %2193 = vmatmul.mubr.msk.bf16.vlgmr.msra.gmra.mrb[24].mxu1 %vm456_vm2, %v870_v13  ;;  %v792_v53 = vmul.f32 %v3327_v62, %v761_v47  ;;  %v847_v10 = vmax.f32 %v822_v1, 0.0 }
 0x2e7   :  { %v2347_v50 = vpop.eup %2346  ;;  %2352 = vrsqrt.f32 %v715_v43  ;;  %2196 = vmatprep.mubr.msk.bf16.mxu1 %vm2780_vm0, %v2779_v0 }
 0x2e8   :  { %v762_v2 = vmul.f32 %v2347_v50, %v3215_v36  ;;  %v634_v56 = vpop.xlane.xlu1 %633  ;;  %v823_v22 = vadd.f32 %v3337_v14, %v792_v53 }
 0x2e9   :  { %v691_v8 = vmul.f32 0.015625, %v634_v56 }
 0x2ea   :  { %v637_v23 = vpop.xlane.xlu0 %636  ;;  %v848_v11 = vmax.f32 %v823_v22, 0.0  ;;  %v793_v17 = vmul.f32 %v3327_v62, %v762_v2 }
 0x2eb   :  { %v2349_v12 = vpop.eup %2348  ;;  %v716_v63 = vadd.f32 1e-05, %v691_v8  ;;  %v692_v4 = vmul.f32 0.015625, %v637_v23 }
 0x2ec   :  { %v763_v57 = vmul.f32 %v2349_v12, %v3219_v39  ;;  %v871_v7 = vpack.c.bf16 %v848_v11, %v847_v10  ;;  %v824_v27 = vadd.f32 %v3337_v14, %v793_v17 }
 0x2ed   :  { %2354 = vrsqrt.f32 %v716_v63  ;;  %v717_v24 = vadd.f32 1e-05, %v692_v4 }
 0x2ee   :  { %2197 = vmatmul.mubr.msk.bf16.gmra.mrb[28].mxu1 %vm456_vm2, %v871_v7  ;;  %v794_v36 = vmul.f32 %v3327_v62, %v763_v57  ;;  %v849_v32 = vmax.f32 %v824_v27, 0.0 }
 0x2ef   :  { %v2351_v28 = vpop.eup %2350  ;;  %2356 = vrsqrt.f32 %v717_v24  ;;  %2200 = vmatprep.mubr.msk.bf16.mxu1 %vm2780_vm0, %v2779_v0 }
 0x2f0   :  { %v764_v58 = vmul.f32 %v2351_v28, %v3231_v25  ;;  %v640_v29 = vpop.xlane.xlu1 %639  ;;  %v825_v30 = vadd.f32 %v3337_v14, %v794_v36 }
 0x2f1   :  { %v2353_v39 = vpop.eup %2352  ;;  %v693_v21 = vmul.f32 0.015625, %v640_v29 }
 0x2f2   :  { %v765_v6 = vmul.f32 %v2353_v39, %v3235_v59  ;;  %v643_v26 = vpop.xlane.xlu0 %642  ;;  %v850_v38 = vmax.f32 %v825_v30, 0.0  ;;  %v795_v45 = vmul.f32 %v3327_v62, %v764_v58 }
 0x2f3   :  { %v718_v48 = vadd.f32 1e-05, %v693_v21  ;;  %v694_v41 = vmul.f32 0.015625, %v643_v26 }
 0x2f4   :  { %v872_v52 = vpack.c.bf16 %v850_v38, %v849_v32  ;;  %v796_v40 = vmul.f32 %v3327_v62, %v765_v6  ;;  %v826_v25 = vadd.f32 %v3337_v14, %v795_v45 }
 0x2f5   :  { %2358 = vrsqrt.f32 %v718_v48  ;;  %v719_v33 = vadd.f32 1e-05, %v694_v41 }
 0x2f6   :  { %2201 = vmatmul.mubr.msk.bf16.gmra.mrb[32].mxu1 %vm456_vm2, %v872_v52  ;;  %v827_v44 = vadd.f32 %v3337_v14, %v796_v40  ;;  %v851_v1 = vmax.f32 %v826_v25, 0.0 }
 0x2f7   :  { %v2355_v46 = vpop.eup %2354  ;;  %2360 = vrsqrt.f32 %v719_v33  ;;  %2204 = vmatprep.mubr.msk.bf16.mxu1 %vm2780_vm0, %v2779_v0 }
 0x2f8   :  { %v766_v59 = vmul.f32 %v2355_v46, %v3244_v3  ;;  %v646_v61 = vpop.xlane.xlu1 %645  ;;  %v852_v37 = vmax.f32 %v827_v44, 0.0 }
 0x2f9   :  { %v2357_v47 = vpop.eup %2356  ;;  %v695_v13 = vmul.f32 0.015625, %v646_v61 }
 0x2fa   :  { %v767_v43 = vmul.f32 %v2357_v47, %v3247_v5  ;;  %v649_v53 = vpop.xlane.xlu0 %648  ;;  %v797_v50 = vmul.f32 %v3327_v62, %v766_v59  ;;  %v873_v8 = vpack.c.bf16 %v852_v37, %v851_v1 }
 0x2fb   :  { %v720_v2 = vadd.f32 1e-05, %v695_v13  ;;  %v696_v56 = vmul.f32 0.015625, %v649_v53 }
 0x2fc   :  { %v652_v22 = vpop.xlane.xlu1 %651  ;;  %v798_v23 = vmul.f32 %v3327_v62, %v767_v43  ;;  %v828_v17 = vadd.f32 %v3337_v14, %v797_v50 }
 0x2fd   :  { %2362 = vrsqrt.f32 %v720_v2  ;;  %v721_v10 = vadd.f32 1e-05, %v696_v56  ;;  %v697_v11 = vmul.f32 0.015625, %v652_v22 }
 0x2fe   :  { %v655_v3 = vpop.xlane.xlu0 %654  ;;  %2205 = vmatmul.mubr.msk.bf16.gmra.mrb[36].mxu1 %vm456_vm2, %v873_v8  ;;  %v829_v5 = vadd.f32 %v3337_v14, %v798_v23  ;;  %v853_v30 = vmax.f32 %v828_v17, 0.0 }
 0x2ff   :  { %v2359_v12 = vpop.eup %2358  ;;  %2364 = vrsqrt.f32 %v721_v10  ;;  %v722_v63 = vadd.f32 1e-05, %v697_v11  ;;  %v698_v4 = vmul.f32 0.015625, %v655_v3  ;;  %2208 = vmatprep.mubr.msk.bf16.mxu1 %vm2780_vm0, %v2779_v0 }
 0x300   :  { %v768_v57 = vmul.f32 %v2359_v12, %v3256_v20  ;;  %v658_v7 = vpop.xlane.xlu1 %657  ;;  %v854_v24 = vmax.f32 %v829_v5, 0.0 }
 0x301   :  { %v2361_v36 = vpop.eup %2360  ;;  %2366 = vrsqrt.f32 %v722_v63  ;;  %v723_v27 = vadd.f32 1e-05, %v698_v4  ;;  %v699_v28 = vmul.f32 0.015625, %v658_v7 }
 0x302   :  { %v769_v58 = vmul.f32 %v2361_v36, %v3259_v19  ;;  %v661_v29 = vpop.xlane.xlu0 %660  ;;  %v799_v39 = vmul.f32 %v3327_v62, %v768_v57  ;;  %v874_v6 = vpack.c.bf16 %v854_v24, %v853_v30 }
 0x303   :  { %2368 = vrsqrt.f32 %v723_v27  ;;  %v700_v21 = vmul.f32 0.015625, %v661_v29  ;;  %v724_v32 = vadd.f32 1e-05, %v699_v28 }
 0x304   :  { %v800_v26 = vmul.f32 %v3327_v62, %v769_v58  ;;  %v664_v20 = vpop.xlane.xlu1 %663  ;;  %v830_v48 = vadd.f32 %v3337_v14, %v799_v39 }
 0x305   :  { %v725_v38 = vadd.f32 1e-05, %v700_v21  ;;  %v701_v44 = vmul.f32 0.015625, %v664_v20 }
 0x306   :  { %v667_v45 = vpop.xlane.xlu0 %666  ;;  %2209 = vmatmul.mubr.msk.bf16.gmra.mrb[40].mxu1 %vm456_vm2, %v874_v6  ;;  %v831_v41 = vadd.f32 %v3337_v14, %v800_v26  ;;  %v855_v59 = vmax.f32 %v830_v48, 0.0 }
 0x307   :  { %v2363_v19 = vpop.eup %2362  ;;  %2370 = vrsqrt.f32 %v725_v38  ;;  %v702_v52 = vmul.f32 0.015625, %v667_v45  ;;  %2212 = vmatprep.mubr.msk.bf16.mxu1 %vm2780_vm0, %v2779_v0  ;;  %v726_v1 = vadd.f32 1e-05, %v701_v44 }
 0x308   :  { %v770_v40 = vmul.f32 %v2363_v19, %v3269_v34  ;;  %v856_v33 = vmax.f32 %v831_v41, 0.0  ;;  %2372 = vrsqrt.f32 %v724_v32 }
 0x309   :  { %v2365_v25 = vpop.eup %2364  ;;  %v727_v47 = vadd.f32 1e-05, %v702_v52 }
 0x30a   :  { %v771_v46 = vmul.f32 %v2365_v25, %v3272_v42  ;;  %v801_v61 = vmul.f32 %v3327_v62, %v770_v40  ;;  %v875_v13 = vpack.c.bf16 %v856_v33, %v855_v59 }
 0x30b   :  { %v2367_v37 = vpop.eup %2366  ;;  %2374 = vrsqrt.f32 %v727_v47 }
 0x30c   :  { %v802_v43 = vmul.f32 %v3327_v62, %v771_v46  ;;  %v772_v50 = vmul.f32 %v2367_v37, %v3277_v51  ;;  %v832_v2 = vadd.f32 %v3337_v14, %v801_v61  ;;  %2376 = vrsqrt.f32 %v726_v1 }
 0x30d   :  { %v2369_v53 = vpop.eup %2368 }
 0x30e   :  { %v773_v34 = vmul.f32 %v2369_v53, %v3283_v35  ;;  %2213 = vmatmul.mubr.msk.bf16.gmra.mrb[44].mxu1 %vm456_vm2, %v875_v13  ;;  %v833_v42 = vadd.f32 %v3337_v14, %v802_v43  ;;  %v857_v23 = vmax.f32 %v832_v2, 0.0  ;;  %v803_v51 = vmul.f32 %v3327_v62, %v772_v50 }
 0x30f   :  { %2216 = vmatprep.mubr.msk.bf16.mxu1 %vm2780_vm0, %v2779_v0 }
 0x310   :  { %v858_v56 = vmax.f32 %v833_v42, 0.0  ;;  %v804_v22 = vmul.f32 %v3327_v62, %v773_v34  ;;  %v834_v5 = vadd.f32 %v3337_v14, %v803_v51 }
 0x311   :  { %v2371_v8 = vpop.eup %2370 }
 0x312   :  { %v2373_v10 = vpop.eup %2372  ;;  %v775_v35 = vmul.f32 %v2371_v8, %v3295_v49  ;;  %v876_v11 = vpack.c.bf16 %v858_v56, %v857_v23  ;;  %v835_v3 = vadd.f32 %v3337_v14, %v804_v22  ;;  %v859_v57 = vmax.f32 %v834_v5, 0.0 }
 0x313   :  { %v774_v17 = vmul.f32 %v2373_v10, %v3289_v60 }
 0x314   :  { %v860_v12 = vmax.f32 %v835_v3, 0.0  ;;  %v806_v63 = vmul.f32 %v3327_v62, %v775_v35 }
 0x315   :  { %v2375_v4 = vpop.eup %2374  ;;  %v805_v7 = vmul.f32 %v3327_v62, %v774_v17 }
 0x316   :  { %2217 = vmatmul.mubr.msk.bf16.gmra.mrb[48].mxu1 %vm456_vm2, %v876_v11  ;;  %v2377_v49 = vpop.eup %2376  ;;  %v777_v24 = vmul.f32 %v2375_v4, %v3307_v55  ;;  %v877_v36 = vpack.c.bf16 %v860_v12, %v859_v57  ;;  %v837_v60 = vadd.f32 %v3337_v14, %v806_v63 }
 0x317   :  { %2220 = vmatprep.mubr.msk.bf16.mxu1 %vm2780_vm0, %v2779_v0  ;;  %v776_v27 = vmul.f32 %v2377_v49, %v3301_v9  ;;  %v836_v28 = vadd.f32 %v3337_v14, %v805_v7  ;;  %v3462_v7 = vld [vmem:[#allocation13] ss:$0 sm:$0xff] }
 0x318   :  { %v862_v58 = vmax.f32 %v837_v60, 0.0  ;;  %v808_v29 = vmul.f32 %v3327_v62, %v777_v24 }
 0x319   :  { %v861_v30 = vmax.f32 %v836_v28, 0.0  ;;  %v807_v39 = vmul.f32 %v3327_v62, %v776_v27 }
 0x31a   :  { %v839_v55 = vadd.f32 %v3337_v14, %v808_v29 }
 0x31b   :  { %v878_v21 = vpack.c.bf16 %v862_v58, %v861_v30  ;;  %v838_v9 = vadd.f32 %v3337_v14, %v807_v39 }
 0x31c   :  { %v864_v6 = vmax.f32 %v839_v55, 0.0 }
 0x31d   :  { %v863_v26 = vmax.f32 %v838_v9, 0.0 }
 0x31e   :  { %2221 = vmatmul.mubr.msk.bf16.gmra.mrb[52].mxu1 %vm456_vm2, %v877_v36 }
 0x31f   :  { %2224 = vmatprep.mubr.msk.bf16.mxu1 %vm2780_vm0, %v2779_v0  ;;  %v879_v32 = vpack.c.bf16 %v864_v6, %v863_v26 }
 0x326   :  { %2225 = vmatmul.mubr.msk.bf16.gmra.mrb[56].mxu1 %vm456_vm2, %v878_v21 }
 0x327   :  { %2228 = vmatprep.mubr.msk.bf16.mxu1 %vm2780_vm0, %v2779_v0 }
 0x32e   :  { %2229 = vmatmul.mubr.msk.bf16.gmra.mrb[60].mxu1 %vm456_vm2, %v879_v32 }
 0x32f   :  { %2232 = vmatprep.mubr.msk.bf16.mxu1 %vm2780_vm0, %v2779_v0 }
 0x361   :  { %v670_v38 = vpop.xlane.xlu1 %669 }
 0x362   :  { %v703_v20 = vmul.f32 0.015625, %v670_v38 }
 0x364   :  { %v728_v45 = vadd.f32 1e-05, %v703_v20 }
 0x365   :  { %v673_v48 = vpop.xlane.xlu0 %672 }
 0x366   :  { %2378 = vrsqrt.f32 %v728_v45  ;;  %v704_v41 = vmul.f32 0.015625, %v673_v48 }
 0x368   :  { %v729_v19 = vadd.f32 1e-05, %v704_v41 }
 0x369   :  { %v676_v52 = vpop.xlane.xlu1 %675 }
 0x36a   :  { %2380 = vrsqrt.f32 %v729_v19  ;;  %v705_v40 = vmul.f32 0.015625, %v676_v52 }
 0x36c   :  { %v730_v33 = vadd.f32 1e-05, %v705_v40 }
 0x36d   :  { %v679_v25 = vpop.xlane.xlu0 %678 }
 0x36e   :  { %2382 = vrsqrt.f32 %v730_v33  ;;  %v706_v44 = vmul.f32 0.015625, %v679_v25 }
 0x370   :  { %v2379_v46 = vpop.eup %2378  ;;  %v731_v59 = vadd.f32 1e-05, %v706_v44 }
 0x371   :  { %v778_v61 = vmul.f32 %v2379_v46, %v3317_v31  ;;  %v682_v37 = vpop.xlane.xlu1 %681 }
 0x372   :  { %2384 = vrsqrt.f32 %v731_v59  ;;  %v707_v47 = vmul.f32 0.015625, %v682_v37 }
 0x373   :  { %v809_v13 = vmul.f32 %v3327_v62, %v778_v61 }
 0x374   :  { %v2381_v43 = vpop.eup %2380  ;;  %v732_v53 = vadd.f32 1e-05, %v707_v47 }
 0x375   :  { %v779_v1 = vmul.f32 %v2381_v43, %v3322_v54  ;;  %v840_v34 = vadd.f32 %v3337_v14, %v809_v13 }
 0x376   :  { %2386 = vrsqrt.f32 %v732_v53 }
 0x377   :  { %v810_v50 = vmul.f32 %v3327_v62, %v779_v1  ;;  %v865_v31 = vmax.f32 %v840_v34, 0.0 }
 0x378   :  { %v2383_v2 = vpop.eup %2382 }
 0x379   :  { %v780_v42 = vmul.f32 %v2383_v2, %v3330_v15  ;;  %v841_v56 = vadd.f32 %v3337_v14, %v810_v50 }
 0x37b   :  { %v866_v22 = vmax.f32 %v841_v56, 0.0  ;;  %v811_v8 = vmul.f32 %v3327_v62, %v780_v42 }
 0x37c   :  { %v2385_v23 = vpop.eup %2384 }
 0x37d   :  { %v781_v51 = vmul.f32 %v2385_v23, %v3340_v18  ;;  %v880_v10 = vpack.c.bf16 %v866_v22, %v865_v31  ;;  %v842_v35 = vadd.f32 %v3337_v14, %v811_v8 }
 0x37f   :  { %2233 = vmatmul.mubr.msk.bf16.gmra.mrb[64].mxu1 %vm456_vm2, %v880_v10  ;;  %v812_v54 = vmul.f32 %v3327_v62, %v781_v51  ;;  %v867_v17 = vmax.f32 %v842_v35, 0.0 }
 0x380   :  { %v2387_v11 = vpop.eup %2386  ;;  %2236 = vmatprep.mubr.msk.bf16.mxu1 %vm2780_vm0, %v2779_v0 }
 0x381   :  { %v843_v15 = vadd.f32 %v3337_v14, %v812_v54  ;;  %v782_v3 = vmul.f32 %v2387_v11, %v3349_v16 }
 0x383   :  { %v868_v5 = vmax.f32 %v843_v15, 0.0  ;;  %v813_v12 = vmul.f32 %v3327_v62, %v782_v3 }
 0x385   :  { %v881_v18 = vpack.c.bf16 %v868_v5, %v867_v17  ;;  %v844_v63 = vadd.f32 %v3337_v14, %v813_v12 }
 0x387   :  { %2237 = vmatmul.mubr.msk.bf16.gmra.mrb[68].mxu1 %vm456_vm2, %v881_v18  ;;  %v869_v4 = vmax.f32 %v844_v63, 0.0 }
 0x388   :  { %2240 = vmatprep.mubr.msk.bf16.mxu1 %vm2780_vm0, %v2779_v0 }
 0x389   :  { %v882_v57 = vpack.c.bf16 %v869_v4, %v869_v4 }
 0x38f   :  { %2241 = vmatmul.mubr.msk.bf16.gmra.mrb[72].mxu1 %vm456_vm2, %v882_v57 }
 0x3b9   :  { %v995_v49 = vpop.f32.mrb[24].mxu1 }
 0x3ba   :  { %v3465_v16 = vadd.f32 %v3462_v7, %v995_v49  ;;  %v2194_v62 = vpop.f32.mrb[25].mxu1 }
 0x3bb   :  { %v998_v24 = vpop.f32.mrb[26].mxu1 }
 0x3bc   :  { %v3468_v14 = vadd.f32 %v3462_v7, %v998_v24  ;;  %v2195_v36 = vpop.f32.mrb[27].mxu1  ;;  %v1100_v60 = vsel %vm1099_vm3, %v3465_v16, 0.0 }
 0x3bd   :  { %1101 = vadd.xlane.f32.xlu0 %v1100_v60 }
 0x3be   :  { %v1103_v27 = vsel %vm1099_vm3, %v3468_v14, 0.0 }
 0x3bf   :  { %1104 = vadd.xlane.f32.xlu1 %v1103_v27 }
 0x3c1   :  { %v1003_v28 = vpop.f32.mrb[28].mxu1 }
 0x3c2   :  { %v3475_v58 = vadd.f32 %v3462_v7, %v1003_v28  ;;  %v2198_v29 = vpop.f32.mrb[29].mxu1 }
 0x3c3   :  { %v1006_v30 = vpop.f32.mrb[30].mxu1 }
 0x3c4   :  { %v3478_v39 = vadd.f32 %v3462_v7, %v1006_v30  ;;  %v2199_v21 = vpop.f32.mrb[31].mxu1  ;;  %v1106_v55 = vsel %vm1099_vm3, %v3475_v58, 0.0 }
 0x3c5   :  { %1107 = vadd.xlane.f32.xlu0 %v1106_v55 }
 0x3c6   :  { %v1109_v9 = vsel %vm1099_vm3, %v3478_v39, 0.0 }
 0x3c7   :  { %1110 = vadd.xlane.f32.xlu1 %v1109_v9 }
 0x3c9   :  { %v1011_v6 = vpop.f32.mrb[32].mxu1 }
 0x3ca   :  { %v3485_v26 = vadd.f32 %v3462_v7, %v1011_v6  ;;  %v2202_v32 = vpop.f32.mrb[33].mxu1 }
 0x3cb   :  { %v1014_v38 = vpop.f32.mrb[34].mxu1 }
 0x3cc   :  { %v3488_v20 = vadd.f32 %v3462_v7, %v1014_v38  ;;  %v2203_v45 = vpop.f32.mrb[35].mxu1  ;;  %v1112_v48 = vsel %vm1099_vm3, %v3485_v26, 0.0 }
 0x3cd   :  { %1113 = vadd.xlane.f32.xlu0 %v1112_v48 }
 0x3ce   :  { %v1115_v41 = vsel %vm1099_vm3, %v3488_v20, 0.0 }
 0x3cf   :  { %1116 = vadd.xlane.f32.xlu1 %v1115_v41 }
 0x3d1   :  { %v1019_v19 = vpop.f32.mrb[36].mxu1 }
 0x3d2   :  { %v3495_v52 = vadd.f32 %v3462_v7, %v1019_v19  ;;  %v2206_v40 = vpop.f32.mrb[37].mxu1 }
 0x3d3   :  { %v1022_v33 = vpop.f32.mrb[38].mxu1 }
 0x3d4   :  { %v3498_v25 = vadd.f32 %v3462_v7, %v1022_v33  ;;  %v2207_v44 = vpop.f32.mrb[39].mxu1  ;;  %v1118_v46 = vsel %vm1099_vm3, %v3495_v52, 0.0 }
 0x3d5   :  { %1119 = vadd.xlane.f32.xlu0 %v1118_v46 }
 0x3d6   :  { %v1121_v59 = vsel %vm1099_vm3, %v3498_v25, 0.0 }
 0x3d7   :  { %1122 = vadd.xlane.f32.xlu1 %v1121_v59 }
 0x3d9   :  { %v1027_v61 = vpop.f32.mrb[40].mxu1 }
 0x3da   :  { %v3505_v37 = vadd.f32 %v3462_v7, %v1027_v61  ;;  %v2210_v47 = vpop.f32.mrb[41].mxu1 }
 0x3db   :  { %v1030_v13 = vpop.f32.mrb[42].mxu1 }
 0x3dc   :  { %v3508_v43 = vadd.f32 %v3462_v7, %v1030_v13  ;;  %v2211_v53 = vpop.f32.mrb[43].mxu1  ;;  %v1124_v1 = vsel %vm1099_vm3, %v3505_v37, 0.0 }
 0x3dd   :  { %1125 = vadd.xlane.f32.xlu0 %v1124_v1 }
 0x3de   :  { %v1127_v50 = vsel %vm1099_vm3, %v3508_v43, 0.0 }
 0x3df   :  { %1128 = vadd.xlane.f32.xlu1 %v1127_v50 }
 0x3e1   :  { %v1035_v34 = vpop.f32.mrb[44].mxu1 }
 0x3e2   :  { %v3515_v2 = vadd.f32 %v3462_v7, %v1035_v34  ;;  %v2214_v42 = vpop.f32.mrb[45].mxu1 }
 0x3e3   :  { %v1038_v56 = vpop.f32.mrb[46].mxu1 }
 0x3e4   :  { %v3518_v31 = vadd.f32 %v3462_v7, %v1038_v56  ;;  %v2215_v22 = vpop.f32.mrb[47].mxu1  ;;  %v1130_v8 = vsel %vm1099_vm3, %v3515_v2, 0.0 }
 0x3e5   :  { %1131 = vadd.xlane.f32.xlu0 %v1130_v8 }
 0x3e6   :  { %v1133_v23 = vsel %vm1099_vm3, %v3518_v31, 0.0 }
 0x3e7   :  { %1134 = vadd.xlane.f32.xlu1 %v1133_v23 }
 0x3e9   :  { %v1043_v51 = vpop.f32.mrb[48].mxu1 }
 0x3ea   :  { %v3525_v10 = vadd.f32 %v3462_v7, %v1043_v51  ;;  %v2218_v54 = vpop.f32.mrb[49].mxu1 }
 0x3eb   :  { %v1046_v35 = vpop.f32.mrb[50].mxu1 }
 0x3ec   :  { %v3528_v11 = vadd.f32 %v3462_v7, %v1046_v35  ;;  %v2219_v15 = vpop.f32.mrb[51].mxu1  ;;  %v1136_v3 = vsel %vm1099_vm3, %v3525_v10, 0.0 }
 0x3ed   :  { %1137 = vadd.xlane.f32.xlu0 %v1136_v3 }
 0x3ee   :  { %v1139_v17 = vsel %vm1099_vm3, %v3528_v11, 0.0 }
 0x3ef   :  { %1140 = vadd.xlane.f32.xlu1 %v1139_v17 }
 0x3f1   :  { %v1051_v5 = vpop.f32.mrb[52].mxu1 }
 0x3f2   :  { %v3535_v12 = vadd.f32 %v3462_v7, %v1051_v5  ;;  %v2222_v18 = vpop.f32.mrb[53].mxu1 }
 0x3f3   :  { %v1054_v63 = vpop.f32.mrb[54].mxu1 }
 0x3f4   :  { %v3538_v4 = vadd.f32 %v3462_v7, %v1054_v63  ;;  %v2223_v57 = vpop.f32.mrb[55].mxu1  ;;  %v1142_v49 = vsel %vm1099_vm3, %v3535_v12, 0.0 }
 0x3f5   :  { %1143 = vadd.xlane.f32.xlu0 %v1142_v49 }
 0x3f6   :  { %v1145_v62 = vsel %vm1099_vm3, %v3538_v4, 0.0 }
 0x3f7   :  { %1146 = vadd.xlane.f32.xlu1 %v1145_v62 }
 0x3f9   :  { %v1059_v24 = vpop.f32.mrb[56].mxu1 }
 0x3fa   :  { %v3545_v36 = vadd.f32 %v3462_v7, %v1059_v24  ;;  %v2226_v60 = vpop.f32.mrb[57].mxu1 }
 0x3fb   :  { %v1062_v27 = vpop.f32.mrb[58].mxu1 }
 0x3fc   :  { %v3548_v28 = vadd.f32 %v3462_v7, %v1062_v27  ;;  %v2227_v29 = vpop.f32.mrb[59].mxu1  ;;  %v1148_v30 = vsel %vm1099_vm3, %v3545_v36, 0.0 }
 0x3fd   :  { %1149 = vadd.xlane.f32.xlu0 %v1148_v30 }
 0x3fe   :  { %v1151_v21 = vsel %vm1099_vm3, %v3548_v28, 0.0 }
 0x3ff   :  { %1152 = vadd.xlane.f32.xlu1 %v1151_v21 }
 0x401   :  { %v1067_v55 = vpop.f32.mrb[60].mxu1 }
 0x402   :  { %v3555_v9 = vadd.f32 %v3462_v7, %v1067_v55  ;;  %v2230_v6 = vpop.f32.mrb[61].mxu1 }
 0x403   :  { %v1070_v32 = vpop.f32.mrb[62].mxu1 }
 0x404   :  { %v3558_v38 = vadd.f32 %v3462_v7, %v1070_v32  ;;  %v2231_v45 = vpop.f32.mrb[63].mxu1  ;;  %v1154_v48 = vsel %vm1099_vm3, %v3555_v9, 0.0 }
 0x405   :  { %1155 = vadd.xlane.f32.xlu0 %v1154_v48 }
 0x406   :  { %v1157_v41 = vsel %vm1099_vm3, %v3558_v38, 0.0 }
 0x407   :  { %1158 = vadd.xlane.f32.xlu1 %v1157_v41 }
 0x44a   :  { %v1102_v19 = vpop.xlane.xlu0 %1101 }
 0x44b   :  { %v1176_v40 = vmul.f32 0.03125, %v1102_v19 }
 0x44c   :  { %v1105_v33 = vpop.xlane.xlu1 %1104 }
 0x44d   :  { %v3565_v44 = vsub.f32 %v3465_v16, %v1176_v40  ;;  %v1177_v46 = vmul.f32 0.03125, %v1105_v33 }
 0x44f   :  { %v3568_v59 = vsub.f32 %v3468_v14, %v1177_v46  ;;  %v1226_v61 = vmul.f32 %v3565_v44, %v3565_v44 }
 0x451   :  { %v1251_v47 = vsel %vm1099_vm3, %v1226_v61, 0.0  ;;  %v1227_v13 = vmul.f32 %v3568_v59, %v3568_v59 }
 0x452   :  { %v1108_v53 = vpop.xlane.xlu0 %1107  ;;  %1252 = vadd.xlane.f32.xlu0 %v1251_v47  ;;  %v1075_v1 = vpop.f32.mrb[64].mxu1 }
 0x453   :  { %v1178_v50 = vmul.f32 0.03125, %v1108_v53  ;;  %v3576_v34 = vadd.f32 %v3462_v7, %v1075_v1  ;;  %v2234_v16 = vpop.f32.mrb[65].mxu1  ;;  %v1254_v42 = vsel %vm1099_vm3, %v1227_v13, 0.0 }
 0x454   :  { %v1078_v14 = vpop.f32.mrb[66].mxu1  ;;  %1255 = vadd.xlane.f32.xlu1 %v1254_v42  ;;  %v1111_v56 = vpop.xlane.xlu1 %1110 }
 0x455   :  { %v3580_v22 = vsub.f32 %v3475_v58, %v1178_v50  ;;  %v3583_v8 = vadd.f32 %v3462_v7, %v1078_v14  ;;  %v1179_v23 = vmul.f32 0.03125, %v1111_v56  ;;  %v2235_v51 = vpop.f32.mrb[67].mxu1  ;;  %v1160_v54 = vsel %vm1099_vm3, %v3576_v34, 0.0 }
 0x456   :  { %1161 = vadd.xlane.f32.xlu0 %v1160_v54 }
 0x457   :  { %v3588_v35 = vsub.f32 %v3478_v39, %v1179_v23  ;;  %v1163_v15 = vsel %vm1099_vm3, %v3583_v8, 0.0  ;;  %v1228_v3 = vmul.f32 %v3580_v22, %v3580_v22 }
 0x458   :  { %1164 = vadd.xlane.f32.xlu1 %v1163_v15 }
 0x459   :  { %v1257_v58 = vsel %vm1099_vm3, %v1228_v3, 0.0  ;;  %v1229_v17 = vmul.f32 %v3588_v35, %v3588_v35 }
 0x45a   :  { %v1114_v5 = vpop.xlane.xlu0 %1113  ;;  %1258 = vadd.xlane.f32.xlu0 %v1257_v58  ;;  %v1083_v18 = vpop.f32.mrb[68].mxu1 }
 0x45b   :  { %v1180_v63 = vmul.f32 0.03125, %v1114_v5  ;;  %v3598_v57 = vadd.f32 %v3462_v7, %v1083_v18  ;;  %v2238_v39 = vpop.f32.mrb[69].mxu1  ;;  %v1260_v49 = vsel %vm1099_vm3, %v1229_v17, 0.0 }
 0x45c   :  { %v1086_v62 = vpop.f32.mrb[70].mxu1  ;;  %1261 = vadd.xlane.f32.xlu1 %v1260_v49  ;;  %v1117_v24 = vpop.xlane.xlu1 %1116 }
 0x45d   :  { %v3602_v60 = vsub.f32 %v3485_v26, %v1180_v63  ;;  %v3605_v27 = vadd.f32 %v3462_v7, %v1086_v62  ;;  %v1181_v29 = vmul.f32 0.03125, %v1117_v24  ;;  %v2239_v30 = vpop.f32.mrb[71].mxu1  ;;  %v1166_v21 = vsel %vm1099_vm3, %v3598_v57, 0.0  ;;  %v2336_v63 = vld [vmem:[#allocation17] sm:$0xff]   ;;  %v2337_v24 = vld [vmem:[#allocation17 + $0x8] sm:$0xff]  }
 0x45e   :  { %1167 = vadd.xlane.f32.xlu0 %v1166_v21  ;;  %2245 = vmatpush3.bf16.msra.mxu0 %v2336_v63 }
 0x45f   :  { %v3610_v55 = vsub.f32 %v3488_v20, %v1181_v29  ;;  %v1169_v6 = vsel %vm1099_vm3, %v3605_v27, 0.0  ;;  %v1230_v32 = vmul.f32 %v3602_v60, %v3602_v60  ;;  %2246 = vmatprep.subr.bf16.mxu0 %v2779_v0 }
 0x460   :  { %1170 = vadd.xlane.f32.xlu1 %v1169_v6 }
 0x461   :  { %v1263_v26 = vsel %vm1099_vm3, %v1230_v32, 0.0  ;;  %v1231_v45 = vmul.f32 %v3610_v55, %v3610_v55 }
 0x462   :  { %v1120_v48 = vpop.xlane.xlu0 %1119  ;;  %1264 = vadd.xlane.f32.xlu0 %v1263_v26  ;;  %v1091_v41 = vpop.f32.mrb[72].mxu1  ;;  %2247 = vmatpush3.bf16.msra.mxu0 %v2337_v24 }
 0x463   :  { %v1182_v19 = vmul.f32 0.03125, %v1120_v48  ;;  %v3620_v40 = vadd.f32 %v3462_v7, %v1091_v41  ;;  %v2242_v20 = vpop.f32.mrb[73].mxu1  ;;  %v1266_v33 = vsel %vm1099_vm3, %v1231_v45, 0.0 }
 0x464   :  { %v1094_v46 = vpop.f32.mrb[74].mxu1  ;;  %1267 = vadd.xlane.f32.xlu1 %v1266_v33  ;;  %v1123_v61 = vpop.xlane.xlu1 %1122 }
 0x465   :  { %v3624_v47 = vsub.f32 %v3495_v52, %v1182_v19  ;;  %v1183_v13 = vmul.f32 0.03125, %v1123_v61  ;;  %v2243_v53 = vpop.f32.mrb[75].mxu1  ;;  %v1172_v1 = vsel %vm1099_vm3, %v3620_v40, 0.0 }
 0x466   :  { %1173 = vadd.xlane.f32.xlu0 %v1172_v1 }
 0x467   :  { %v3629_v50 = vsub.f32 %v3498_v25, %v1183_v13  ;;  %v1232_v7 = vmul.f32 %v3624_v47, %v3624_v47 }
 0x469   :  { %v1269_v16 = vsel %vm1099_vm3, %v1232_v7, 0.0  ;;  %v1233_v42 = vmul.f32 %v3629_v50, %v3629_v50 }
 0x46a   :  { %v1126_v14 = vpop.xlane.xlu0 %1125  ;;  %1270 = vadd.xlane.f32.xlu1 %v1269_v16 }
 0x46b   :  { %v1184_v52 = vmul.f32 0.03125, %v1126_v14  ;;  %v1272_v56 = vsel %vm1099_vm3, %v1233_v42, 0.0 }
 0x46c   :  { %1273 = vadd.xlane.f32.xlu0 %v1272_v56  ;;  %v1129_v23 = vpop.xlane.xlu1 %1128 }
 0x46d   :  { %v3638_v51 = vsub.f32 %v3505_v37, %v1184_v52  ;;  %v1185_v25 = vmul.f32 0.03125, %v1129_v23 }
 0x46f   :  { %v3641_v54 = vsub.f32 %v3508_v43, %v1185_v25  ;;  %v1234_v15 = vmul.f32 %v3638_v51, %v3638_v51 }
 0x471   :  { %v1275_v3 = vsel %vm1099_vm3, %v1234_v15, 0.0  ;;  %v1235_v58 = vmul.f32 %v3641_v54, %v3641_v54 }
 0x472   :  { %v1132_v17 = vpop.xlane.xlu0 %1131  ;;  %1276 = vadd.xlane.f32.xlu1 %v1275_v3 }
 0x473   :  { %v1186_v5 = vmul.f32 0.03125, %v1132_v17  ;;  %v1278_v18 = vsel %vm1099_vm3, %v1235_v58, 0.0 }
 0x474   :  { %1279 = vadd.xlane.f32.xlu0 %v1278_v18  ;;  %v1135_v37 = vpop.xlane.xlu1 %1134 }
 0x475   :  { %v3650_v39 = vsub.f32 %v3515_v2, %v1186_v5  ;;  %v1187_v43 = vmul.f32 0.03125, %v1135_v37 }
 0x477   :  { %v3654_v49 = vsub.f32 %v3518_v31, %v1187_v43  ;;  %v1236_v62 = vmul.f32 %v3650_v39, %v3650_v39 }
 0x479   :  { %v1281_v29 = vsel %vm1099_vm3, %v1236_v62, 0.0  ;;  %v1237_v30 = vmul.f32 %v3654_v49, %v3654_v49 }
 0x47a   :  { %v1138_v21 = vpop.xlane.xlu0 %1137  ;;  %1282 = vadd.xlane.f32.xlu1 %v1281_v29 }
 0x47b   :  { %v1188_v2 = vmul.f32 0.03125, %v1138_v21  ;;  %v1284_v6 = vsel %vm1099_vm3, %v1237_v30, 0.0 }
 0x47c   :  { %1285 = vadd.xlane.f32.xlu0 %v1284_v6  ;;  %v1141_v32 = vpop.xlane.xlu1 %1140 }
 0x47d   :  { %v3663_v31 = vsub.f32 %v3525_v10, %v1188_v2  ;;  %v1189_v26 = vmul.f32 0.03125, %v1141_v32 }
 0x47f   :  { %v3666_v45 = vsub.f32 %v3528_v11, %v1189_v26  ;;  %v1238_v48 = vmul.f32 %v3663_v31, %v3663_v31 }
 0x481   :  { %v1287_v41 = vsel %vm1099_vm3, %v1238_v48, 0.0  ;;  %v1239_v19 = vmul.f32 %v3666_v45, %v3666_v45 }
 0x482   :  { %v1144_v20 = vpop.xlane.xlu0 %1143  ;;  %1288 = vadd.xlane.f32.xlu1 %v1287_v41 }
 0x483   :  { %v1190_v33 = vmul.f32 0.03125, %v1144_v20  ;;  %v1290_v46 = vsel %vm1099_vm3, %v1239_v19, 0.0 }
 0x484   :  { %1291 = vadd.xlane.f32.xlu0 %v1290_v46  ;;  %v1147_v10 = vpop.xlane.xlu1 %1146 }
 0x485   :  { %v3675_v61 = vsub.f32 %v3535_v12, %v1190_v33  ;;  %v1191_v11 = vmul.f32 0.03125, %v1147_v10 }
 0x487   :  { %v3678_v13 = vsub.f32 %v3538_v4, %v1191_v11  ;;  %v1240_v53 = vmul.f32 %v3675_v61, %v3675_v61 }
 0x489   :  { %v1293_v1 = vsel %vm1099_vm3, %v1240_v53, 0.0  ;;  %v1241_v7 = vmul.f32 %v3678_v13, %v3678_v13 }
 0x48a   :  { %v1150_v16 = vpop.xlane.xlu0 %1149  ;;  %1294 = vadd.xlane.f32.xlu1 %v1293_v1 }
 0x48b   :  { %v1192_v42 = vmul.f32 0.03125, %v1150_v16  ;;  %v1296_v14 = vsel %vm1099_vm3, %v1241_v7, 0.0 }
 0x48c   :  { %1297 = vadd.xlane.f32.xlu0 %v1296_v14  ;;  %v1153_v12 = vpop.xlane.xlu1 %1152 }
 0x48d   :  { %v3687_v52 = vsub.f32 %v3545_v36, %v1192_v42  ;;  %v1193_v4 = vmul.f32 0.03125, %v1153_v12  ;;  %v3722_v12 = vld [vmem:[#allocation14] ss:$0 sm:$0xff] }
 0x48f   :  { %v3690_v56 = vsub.f32 %v3548_v28, %v1193_v4  ;;  %v1242_v23 = vmul.f32 %v3687_v52, %v3687_v52 }
 0x491   :  { %v1299_v25 = vsel %vm1099_vm3, %v1242_v23, 0.0  ;;  %v1243_v15 = vmul.f32 %v3690_v56, %v3690_v56 }
 0x492   :  { %v1156_v3 = vpop.xlane.xlu0 %1155  ;;  %1300 = vadd.xlane.f32.xlu1 %v1299_v25 }
 0x493   :  { %v1194_v58 = vmul.f32 0.03125, %v1156_v3  ;;  %v1302_v17 = vsel %vm1099_vm3, %v1243_v15, 0.0 }
 0x494   :  { %1303 = vadd.xlane.f32.xlu0 %v1302_v17  ;;  %v1159_v36 = vpop.xlane.xlu1 %1158 }
 0x495   :  { %v3699_v5 = vsub.f32 %v3555_v9, %v1194_v58  ;;  %v1195_v28 = vmul.f32 0.03125, %v1159_v36  ;;  %v3728_v58 = vld [vmem:[#allocation16] ss:$0 sm:$0xff] }
 0x497   :  { %v3702_v18 = vsub.f32 %v3558_v38, %v1195_v28  ;;  %v1244_v63 = vmul.f32 %v3699_v5, %v3699_v5 }
 0x499   :  { %v1305_v37 = vsel %vm1099_vm3, %v1244_v63, 0.0  ;;  %v1245_v43 = vmul.f32 %v3702_v18, %v3702_v18 }
 0x49a   :  { %1306 = vadd.xlane.f32.xlu1 %v1305_v37 }
 0x49b   :  { %v1308_v62 = vsel %vm1099_vm3, %v1245_v43, 0.0 }
 0x49c   :  { %1309 = vadd.xlane.f32.xlu0 %v1308_v62 }
 0x4df   :  { %v1253_v24 = vpop.xlane.xlu0 %1252 }
 0x4e0   :  { %v1326_v29 = vmul.f32 0.03125, %v1253_v24 }
 0x4e1   :  { %v1256_v9 = vpop.xlane.xlu1 %1255 }
 0x4e2   :  { %v1351_v30 = vadd.f32 1e-05, %v1326_v29  ;;  %v1327_v21 = vmul.f32 0.03125, %v1256_v9 }
 0x4e3   :  { %v1162_v2 = vpop.xlane.xlu0 %1161 }
 0x4e4   :  { %2388 = vrsqrt.f32 %v1351_v30  ;;  %v1352_v38 = vadd.f32 1e-05, %v1327_v21  ;;  %v1196_v6 = vmul.f32 0.03125, %v1162_v2 }
 0x4e5   :  { %v1165_v32 = vpop.xlane.xlu1 %1164 }
 0x4e6   :  { %2390 = vrsqrt.f32 %v1352_v38  ;;  %v3711_v26 = vsub.f32 %v3576_v34, %v1196_v6  ;;  %v1197_v48 = vmul.f32 0.03125, %v1165_v32 }
 0x4e7   :  { %v1259_v41 = vpop.xlane.xlu0 %1258 }
 0x4e8   :  { %v3714_v19 = vsub.f32 %v3583_v8, %v1197_v48  ;;  %v1328_v20 = vmul.f32 0.03125, %v1259_v41  ;;  %v1246_v33 = vmul.f32 %v3711_v26, %v3711_v26 }
 0x4e9   :  { %v1262_v46 = vpop.xlane.xlu1 %1261 }
 0x4ea   :  { %v1353_v10 = vadd.f32 1e-05, %v1328_v20  ;;  %v1329_v11 = vmul.f32 0.03125, %v1262_v46  ;;  %v1311_v53 = vsel %vm1099_vm3, %v1246_v33, 0.0  ;;  %v1247_v1 = vmul.f32 %v3714_v19, %v3714_v19 }
 0x4eb   :  { %v1168_v7 = vpop.xlane.xlu0 %1167  ;;  %1312 = vadd.xlane.f32.xlu1 %v1311_v53 }
 0x4ec   :  { %2392 = vrsqrt.f32 %v1353_v10  ;;  %v1354_v34 = vadd.f32 1e-05, %v1329_v11  ;;  %v1198_v16 = vmul.f32 0.03125, %v1168_v7  ;;  %v1314_v8 = vsel %vm1099_vm3, %v1247_v1, 0.0 }
 0x4ed   :  { %1315 = vadd.xlane.f32.xlu0 %v1314_v8  ;;  %v1171_v42 = vpop.xlane.xlu1 %1170 }
 0x4ee   :  { %v2389_v14 = vpop.eup %2388  ;;  %2394 = vrsqrt.f32 %v1354_v34  ;;  %v3725_v4 = vsub.f32 %v3598_v57, %v1198_v16  ;;  %v1199_v23 = vmul.f32 0.03125, %v1171_v42 }
 0x4ef   :  { %v1401_v25 = vmul.f32 %v2389_v14, %v3565_v44  ;;  %v1265_v15 = vpop.xlane.xlu0 %1264 }
 0x4f0   :  { %v2391_v3 = vpop.eup %2390  ;;  %v3731_v17 = vsub.f32 %v3605_v27, %v1199_v23  ;;  %v1330_v36 = vmul.f32 0.03125, %v1265_v15  ;;  %v1248_v28 = vmul.f32 %v3725_v4, %v3725_v4 }
 0x4f1   :  { %v1432_v63 = vmul.f32 %v3722_v12, %v1401_v25  ;;  %v1402_v37 = vmul.f32 %v2391_v3, %v3568_v59  ;;  %v1268_v57 = vpop.xlane.xlu1 %1267 }
 0x4f2   :  { %v1355_v43 = vadd.f32 1e-05, %v1330_v36  ;;  %v1331_v62 = vmul.f32 0.03125, %v1268_v57  ;;  %v1317_v44 = vsel %vm1099_vm3, %v1248_v28, 0.0  ;;  %v1249_v24 = vmul.f32 %v3731_v17, %v3731_v17 }
 0x4f3   :  { %v1463_v29 = vadd.f32 %v3728_v58, %v1432_v63  ;;  %v1433_v27 = vmul.f32 %v3722_v12, %v1402_v37  ;;  %v1174_v9 = vpop.xlane.xlu0 %1173  ;;  %1318 = vadd.xlane.f32.xlu1 %v1317_v44 }
 0x4f4   :  { %2396 = vrsqrt.f32 %v1355_v43  ;;  %v1356_v30 = vadd.f32 1e-05, %v1331_v62  ;;  %v1200_v21 = vmul.f32 0.03125, %v1174_v9  ;;  %v1320_v2 = vsel %vm1099_vm3, %v1249_v24, 0.0 }
 0x4f5   :  { %v1464_v59 = vadd.f32 %v3728_v58, %v1433_v27  ;;  %1321 = vadd.xlane.f32.xlu0 %v1320_v2  ;;  %v1488_v32 = vmax.f32 %v1463_v29, 0.0 }
 0x4f6   :  { %v2393_v38 = vpop.eup %2392  ;;  %2398 = vrsqrt.f32 %v1356_v30  ;;  %v3745_v6 = vsub.f32 %v3620_v40, %v1200_v21 }
 0x4f7   :  { %v1489_v48 = vmax.f32 %v1464_v59, 0.0  ;;  %v1403_v41 = vmul.f32 %v2393_v38, %v3580_v22  ;;  %v1271_v20 = vpop.xlane.xlu1 %1270 }
 0x4f8   :  { %v2395_v33 = vpop.eup %2394  ;;  %v1332_v46 = vmul.f32 0.03125, %v1271_v20  ;;  %v1250_v10 = vmul.f32 %v3745_v6, %v3745_v6 }
 0x4f9   :  { %v1404_v11 = vmul.f32 %v2395_v33, %v3588_v35  ;;  %v1274_v53 = vpop.xlane.xlu0 %1273  ;;  %v1513_v1 = vpack.c.bf16 %v1489_v48, %v1488_v32  ;;  %v1434_v7 = vmul.f32 %v3722_v12, %v1403_v41 }
 0x4fa   :  { %v1357_v34 = vadd.f32 1e-05, %v1332_v46  ;;  %v1333_v16 = vmul.f32 0.03125, %v1274_v53  ;;  %v1323_v40 = vsel %vm1099_vm3, %v1250_v10, 0.0 }
 0x4fb   :  { %1324 = vadd.xlane.f32.xlu1 %v1323_v40  ;;  %2249 = vmatmul.mubr.msk.bf16.vlgmr.msra.gmra.mrb[28].mxu0 %vm1099_vm3, %v1513_v1  ;;  %v1435_v22 = vmul.f32 %v3722_v12, %v1404_v11  ;;  %v1465_v8 = vadd.f32 %v3728_v58, %v1434_v7 }
 0x4fc   :  { %2400 = vrsqrt.f32 %v1357_v34  ;;  %v1358_v42 = vadd.f32 1e-05, %v1333_v16  ;;  %2252 = vmatprep.mubr.msk.bf16.mxu0 %vm2780_vm0, %v2779_v0 }
 0x4fd   :  { %v1466_v35 = vadd.f32 %v3728_v58, %v1435_v22  ;;  %v1490_v15 = vmax.f32 %v1465_v8, 0.0 }
 0x4fe   :  { %v2397_v14 = vpop.eup %2396  ;;  %2402 = vrsqrt.f32 %v1358_v42 }
 0x4ff   :  { %v1405_v23 = vmul.f32 %v2397_v14, %v3602_v60  ;;  %v1277_v25 = vpop.xlane.xlu1 %1276  ;;  %v1491_v3 = vmax.f32 %v1466_v35, 0.0 }
 0x500   :  { %v2399_v36 = vpop.eup %2398  ;;  %v1334_v28 = vmul.f32 0.03125, %v1277_v25 }
 0x501   :  { %v1406_v63 = vmul.f32 %v2399_v36, %v3610_v55  ;;  %v1280_v37 = vpop.xlane.xlu0 %1279  ;;  %v1514_v57 = vpack.c.bf16 %v1491_v3, %v1490_v15  ;;  %v1436_v43 = vmul.f32 %v3722_v12, %v1405_v23 }
 0x502   :  { %v1359_v62 = vadd.f32 1e-05, %v1334_v28  ;;  %v1335_v44 = vmul.f32 0.03125, %v1280_v37 }
 0x503   :  { %2253 = vmatmul.mubr.msk.bf16.gmra.mrb[32].mxu0 %vm1099_vm3, %v1514_v57  ;;  %v1437_v24 = vmul.f32 %v3722_v12, %v1406_v63  ;;  %v1467_v29 = vadd.f32 %v3728_v58, %v1436_v43 }
 0x504   :  { %2404 = vrsqrt.f32 %v1359_v62  ;;  %v1360_v60 = vadd.f32 1e-05, %v1335_v44  ;;  %2256 = vmatprep.mubr.msk.bf16.mxu0 %vm2780_vm0, %v2779_v0 }
 0x505   :  { %v1468_v27 = vadd.f32 %v3728_v58, %v1437_v24  ;;  %v1492_v21 = vmax.f32 %v1467_v29, 0.0 }
 0x506   :  { %v2401_v55 = vpop.eup %2400  ;;  %2406 = vrsqrt.f32 %v1360_v60 }
 0x507   :  { %v1407_v9 = vmul.f32 %v2401_v55, %v3624_v47  ;;  %v1283_v30 = vpop.xlane.xlu1 %1282  ;;  %v1493_v2 = vmax.f32 %v1468_v27, 0.0 }
 0x508   :  { %v2403_v59 = vpop.eup %2402  ;;  %v1336_v38 = vmul.f32 0.03125, %v1283_v30 }
 0x509   :  { %v1408_v32 = vmul.f32 %v2403_v59, %v3629_v50  ;;  %v1286_v48 = vpop.xlane.xlu0 %1285  ;;  %v1515_v41 = vpack.c.bf16 %v1493_v2, %v1492_v21  ;;  %v1438_v20 = vmul.f32 %v3722_v12, %v1407_v9 }
 0x50a   :  { %v1361_v33 = vadd.f32 1e-05, %v1336_v38  ;;  %v1337_v46 = vmul.f32 0.03125, %v1286_v48 }
 0x50b   :  { %2257 = vmatmul.mubr.msk.bf16.gmra.mrb[36].mxu0 %vm1099_vm3, %v1515_v41  ;;  %v1439_v10 = vmul.f32 %v3722_v12, %v1408_v32  ;;  %v1469_v11 = vadd.f32 %v3728_v58, %v1438_v20 }
 0x50c   :  { %2408 = vrsqrt.f32 %v1361_v33  ;;  %v1362_v47 = vadd.f32 1e-05, %v1337_v46  ;;  %2260 = vmatprep.mubr.msk.bf16.mxu0 %vm2780_vm0, %v2779_v0 }
 0x50d   :  { %v1470_v53 = vadd.f32 %v3728_v58, %v1439_v10  ;;  %v1494_v34 = vmax.f32 %v1469_v11, 0.0 }
 0x50e   :  { %v2405_v50 = vpop.eup %2404  ;;  %2410 = vrsqrt.f32 %v1362_v47 }
 0x50f   :  { %v1409_v1 = vmul.f32 %v2405_v50, %v3638_v51  ;;  %v1289_v7 = vpop.xlane.xlu1 %1288  ;;  %v1495_v16 = vmax.f32 %v1470_v53, 0.0 }
 0x510   :  { %v2407_v40 = vpop.eup %2406  ;;  %v1338_v22 = vmul.f32 0.03125, %v1289_v7 }
 0x511   :  { %v1410_v8 = vmul.f32 %v2407_v40, %v3641_v54  ;;  %v1292_v42 = vpop.xlane.xlu0 %1291  ;;  %v1516_v35 = vpack.c.bf16 %v1495_v16, %v1494_v34  ;;  %v1440_v14 = vmul.f32 %v3722_v12, %v1409_v1 }
 0x512   :  { %v1363_v23 = vadd.f32 1e-05, %v1338_v22  ;;  %v1339_v25 = vmul.f32 0.03125, %v1292_v42 }
 0x513   :  { %2261 = vmatmul.mubr.msk.bf16.gmra.mrb[40].mxu0 %vm1099_vm3, %v1516_v35  ;;  %v1441_v15 = vmul.f32 %v3722_v12, %v1410_v8  ;;  %v1471_v3 = vadd.f32 %v3728_v58, %v1440_v14 }
 0x514   :  { %2412 = vrsqrt.f32 %v1363_v23  ;;  %v1364_v51 = vadd.f32 1e-05, %v1339_v25  ;;  %2264 = vmatprep.mubr.msk.bf16.mxu0 %vm2780_vm0, %v2779_v0 }
 0x515   :  { %v1472_v36 = vadd.f32 %v3728_v58, %v1441_v15  ;;  %v1496_v37 = vmax.f32 %v1471_v3, 0.0 }
 0x516   :  { %v2409_v54 = vpop.eup %2408  ;;  %2414 = vrsqrt.f32 %v1364_v51 }
 0x517   :  { %v1411_v28 = vmul.f32 %v2409_v54, %v3650_v39  ;;  %v1295_v63 = vpop.xlane.xlu1 %1294  ;;  %v1497_v57 = vmax.f32 %v1472_v36, 0.0 }
 0x518   :  { %v2411_v43 = vpop.eup %2410  ;;  %v1340_v62 = vmul.f32 0.03125, %v1295_v63 }
 0x519   :  { %v1412_v44 = vmul.f32 %v2411_v43, %v3654_v49  ;;  %v1298_v24 = vpop.xlane.xlu0 %1297  ;;  %v1517_v29 = vpack.c.bf16 %v1497_v57, %v1496_v37  ;;  %v1442_v60 = vmul.f32 %v3722_v12, %v1411_v28 }
 0x51a   :  { %v1365_v27 = vadd.f32 1e-05, %v1340_v62  ;;  %v1341_v55 = vmul.f32 0.03125, %v1298_v24 }
 0x51b   :  { %2265 = vmatmul.mubr.msk.bf16.gmra.mrb[44].mxu0 %vm1099_vm3, %v1517_v29  ;;  %v1443_v9 = vmul.f32 %v3722_v12, %v1412_v44  ;;  %v1473_v30 = vadd.f32 %v3728_v58, %v1442_v60 }
 0x51c   :  { %2416 = vrsqrt.f32 %v1365_v27  ;;  %v1366_v39 = vadd.f32 1e-05, %v1341_v55  ;;  %2268 = vmatprep.mubr.msk.bf16.mxu0 %vm2780_vm0, %v2779_v0 }
 0x51d   :  { %v1474_v21 = vadd.f32 %v3728_v58, %v1443_v9  ;;  %v1498_v38 = vmax.f32 %v1473_v30, 0.0 }
 0x51e   :  { %v2413_v49 = vpop.eup %2412  ;;  %2418 = vrsqrt.f32 %v1366_v39 }
 0x51f   :  { %v1413_v2 = vmul.f32 %v2413_v49, %v3663_v31  ;;  %v1301_v59 = vpop.xlane.xlu1 %1300  ;;  %v1499_v32 = vmax.f32 %v1474_v21, 0.0 }
 0x520   :  { %v2415_v48 = vpop.eup %2414  ;;  %v1342_v41 = vmul.f32 0.03125, %v1301_v59 }
 0x521   :  { %v1414_v20 = vmul.f32 %v2415_v48, %v3666_v45  ;;  %v1304_v33 = vpop.xlane.xlu0 %1303  ;;  %v1518_v46 = vpack.c.bf16 %v1499_v32, %v1498_v38  ;;  %v1444_v10 = vmul.f32 %v3722_v12, %v1413_v2 }
 0x522   :  { %v1367_v11 = vadd.f32 1e-05, %v1342_v41  ;;  %v1343_v47 = vmul.f32 0.03125, %v1304_v33 }
 0x523   :  { %2269 = vmatmul.mubr.msk.bf16.gmra.mrb[48].mxu0 %vm1099_vm3, %v1518_v46  ;;  %v1445_v53 = vmul.f32 %v3722_v12, %v1414_v20  ;;  %v1475_v50 = vadd.f32 %v3728_v58, %v1444_v10 }
 0x524   :  { %2420 = vrsqrt.f32 %v1367_v11  ;;  %v1368_v31 = vadd.f32 1e-05, %v1343_v47  ;;  %2272 = vmatprep.mubr.msk.bf16.mxu0 %vm2780_vm0, %v2779_v0 }
 0x525   :  { %v1476_v1 = vadd.f32 %v3728_v58, %v1445_v53  ;;  %v1500_v16 = vmax.f32 %v1475_v50, 0.0 }
 0x526   :  { %v2417_v45 = vpop.eup %2416  ;;  %2422 = vrsqrt.f32 %v1368_v31 }
 0x527   :  { %v1415_v7 = vmul.f32 %v2417_v45, %v3675_v61  ;;  %v1307_v34 = vpop.xlane.xlu1 %1306  ;;  %v1501_v40 = vmax.f32 %v1476_v1, 0.0 }
 0x528   :  { %v2419_v22 = vpop.eup %2418  ;;  %v1344_v8 = vmul.f32 0.03125, %v1307_v34 }
 0x529   :  { %v1416_v42 = vmul.f32 %v2419_v22, %v3678_v13  ;;  %v1310_v35 = vpop.xlane.xlu0 %1309  ;;  %v1519_v14 = vpack.c.bf16 %v1501_v40, %v1500_v16  ;;  %v1446_v23 = vmul.f32 %v3722_v12, %v1415_v7 }
 0x52a   :  { %v1369_v25 = vadd.f32 1e-05, %v1344_v8  ;;  %v1345_v15 = vmul.f32 0.03125, %v1310_v35 }
 0x52b   :  { %2273 = vmatmul.mubr.msk.bf16.gmra.mrb[52].mxu0 %vm1099_vm3, %v1519_v14  ;;  %v1447_v3 = vmul.f32 %v3722_v12, %v1416_v42  ;;  %v1477_v51 = vadd.f32 %v3728_v58, %v1446_v23 }
 0x52c   :  { %2424 = vrsqrt.f32 %v1369_v25  ;;  %v1370_v61 = vadd.f32 1e-05, %v1345_v15  ;;  %2276 = vmatprep.mubr.msk.bf16.mxu0 %vm2780_vm0, %v2779_v0 }
 0x52d   :  { %v1478_v36 = vadd.f32 %v3728_v58, %v1447_v3  ;;  %v1502_v28 = vmax.f32 %v1477_v51, 0.0 }
 0x52e   :  { %v2421_v13 = vpop.eup %2420  ;;  %2426 = vrsqrt.f32 %v1370_v61 }
 0x52f   :  { %v1417_v54 = vmul.f32 %v2421_v13, %v3687_v52  ;;  %v1503_v63 = vmax.f32 %v1478_v36, 0.0 }
 0x530   :  { %v2423_v37 = vpop.eup %2422 }
 0x531   :  { %v1418_v57 = vmul.f32 %v2423_v37, %v3690_v56  ;;  %v1520_v43 = vpack.c.bf16 %v1503_v63, %v1502_v28  ;;  %v1448_v62 = vmul.f32 %v3722_v12, %v1417_v54 }
 0x533   :  { %2277 = vmatmul.mubr.msk.bf16.gmra.mrb[56].mxu0 %vm1099_vm3, %v1520_v43  ;;  %v1449_v44 = vmul.f32 %v3722_v12, %v1418_v57  ;;  %v1479_v24 = vadd.f32 %v3728_v58, %v1448_v62 }
 0x534   :  { %2280 = vmatprep.mubr.msk.bf16.mxu0 %vm2780_vm0, %v2779_v0 }
 0x535   :  { %v1480_v29 = vadd.f32 %v3728_v58, %v1449_v44  ;;  %v1504_v27 = vmax.f32 %v1479_v24, 0.0  ;;  %v3856_v44 = vld [vmem:[#allocation19] ss:$0 sm:$0xff] }
 0x536   :  { %v2425_v52 = vpop.eup %2424 }
 0x537   :  { %v1419_v60 = vmul.f32 %v2425_v52, %v3699_v5  ;;  %v1505_v55 = vmax.f32 %v1480_v29, 0.0 }
 0x538   :  { %v2427_v56 = vpop.eup %2426 }
 0x539   :  { %v1420_v9 = vmul.f32 %v2427_v56, %v3702_v18  ;;  %v1521_v30 = vpack.c.bf16 %v1505_v55, %v1504_v27  ;;  %v1450_v39 = vmul.f32 %v3722_v12, %v1419_v60 }
 0x53b   :  { %2281 = vmatmul.mubr.msk.bf16.gmra.mrb[60].mxu0 %vm1099_vm3, %v1521_v30  ;;  %v1451_v21 = vmul.f32 %v3722_v12, %v1420_v9  ;;  %v1481_v49 = vadd.f32 %v3728_v58, %v1450_v39 }
 0x53c   :  { %2284 = vmatprep.mubr.msk.bf16.mxu0 %vm2780_vm0, %v2779_v0 }
 0x53d   :  { %v1482_v2 = vadd.f32 %v3728_v58, %v1451_v21  ;;  %v1506_v5 = vmax.f32 %v1481_v49, 0.0 }
 0x53f   :  { %v1507_v59 = vmax.f32 %v1482_v2, 0.0 }
 0x541   :  { %v1522_v38 = vpack.c.bf16 %v1507_v59, %v1506_v5 }
 0x543   :  { %2285 = vmatmul.mubr.msk.bf16.gmra.mrb[64].mxu0 %vm1099_vm3, %v1522_v38 }
 0x544   :  { %2288 = vmatprep.mubr.msk.bf16.mxu0 %vm2780_vm0, %v2779_v0 }
 0x578   :  { %v1313_v18 = vpop.xlane.xlu1 %1312 }
 0x579   :  { %v1346_v32 = vmul.f32 0.03125, %v1313_v18 }
 0x57a   :  { %v1316_v48 = vpop.xlane.xlu0 %1315 }
 0x57b   :  { %v1371_v41 = vadd.f32 1e-05, %v1346_v32  ;;  %v1347_v20 = vmul.f32 0.03125, %v1316_v48 }
 0x57d   :  { %2428 = vrsqrt.f32 %v1371_v41  ;;  %v1372_v33 = vadd.f32 1e-05, %v1347_v20 }
 0x57f   :  { %2430 = vrsqrt.f32 %v1372_v33 }
 0x580   :  { %v1319_v46 = vpop.xlane.xlu1 %1318 }
 0x581   :  { %v1348_v10 = vmul.f32 0.03125, %v1319_v46 }
 0x582   :  { %v1322_v11 = vpop.xlane.xlu0 %1321 }
 0x583   :  { %v1373_v47 = vadd.f32 1e-05, %v1348_v10  ;;  %v1349_v53 = vmul.f32 0.03125, %v1322_v11 }
 0x585   :  { %2432 = vrsqrt.f32 %v1373_v47  ;;  %v1374_v50 = vadd.f32 1e-05, %v1349_v53 }
 0x587   :  { %v2429_v31 = vpop.eup %2428  ;;  %2434 = vrsqrt.f32 %v1374_v50 }
 0x588   :  { %v1421_v1 = vmul.f32 %v2429_v31, %v3711_v26  ;;  %v1325_v45 = vpop.xlane.xlu1 %1324 }
 0x589   :  { %v2431_v7 = vpop.eup %2430  ;;  %v1350_v34 = vmul.f32 0.03125, %v1325_v45 }
 0x58a   :  { %v1422_v16 = vmul.f32 %v2431_v7, %v3714_v19  ;;  %v1452_v40 = vmul.f32 %v3722_v12, %v1421_v1 }
 0x58b   :  { %v1375_v22 = vadd.f32 1e-05, %v1350_v34 }
 0x58c   :  { %v1453_v8 = vmul.f32 %v3722_v12, %v1422_v16  ;;  %v1483_v42 = vadd.f32 %v3728_v58, %v1452_v40 }
 0x58d   :  { %2436 = vrsqrt.f32 %v1375_v22 }
 0x58e   :  { %v1484_v35 = vadd.f32 %v3728_v58, %v1453_v8  ;;  %v1508_v25 = vmax.f32 %v1483_v42, 0.0 }
 0x58f   :  { %v2433_v14 = vpop.eup %2432 }
 0x590   :  { %v1423_v23 = vmul.f32 %v2433_v14, %v3725_v4  ;;  %v1509_v26 = vmax.f32 %v1484_v35, 0.0 }
 0x591   :  { %v2435_v15 = vpop.eup %2434 }
 0x592   :  { %v1424_v3 = vmul.f32 %v2435_v15, %v3731_v17  ;;  %v1523_v51 = vpack.c.bf16 %v1509_v26, %v1508_v25  ;;  %v1454_v19 = vmul.f32 %v3722_v12, %v1423_v23 }
 0x594   :  { %2289 = vmatmul.mubr.msk.bf16.gmra.mrb[68].mxu0 %vm1099_vm3, %v1523_v51  ;;  %v1455_v61 = vmul.f32 %v3722_v12, %v1424_v3  ;;  %v1485_v36 = vadd.f32 %v3728_v58, %v1454_v19 }
 0x595   :  { %2292 = vmatprep.mubr.msk.bf16.mxu0 %vm2780_vm0, %v2779_v0 }
 0x596   :  { %v1486_v13 = vadd.f32 %v3728_v58, %v1455_v61  ;;  %v1510_v28 = vmax.f32 %v1485_v36, 0.0 }
 0x597   :  { %v2437_v4 = vpop.eup %2436 }
 0x598   :  { %v1425_v54 = vmul.f32 %v2437_v4, %v3745_v6  ;;  %v1511_v63 = vmax.f32 %v1486_v13, 0.0 }
 0x59a   :  { %v1524_v17 = vpack.c.bf16 %v1511_v63, %v1510_v28  ;;  %v1456_v37 = vmul.f32 %v3722_v12, %v1425_v54 }
 0x59c   :  { %2293 = vmatmul.mubr.msk.bf16.gmra.mrb[72].mxu0 %vm1099_vm3, %v1524_v17  ;;  %v1487_v57 = vadd.f32 %v3728_v58, %v1456_v37 }
 0x59d   :  { %2296 = vmatprep.mubr.msk.bf16.mxu0 %vm2780_vm0, %v2779_v0 }
 0x59e   :  { %v1512_v43 = vmax.f32 %v1487_v57, 0.0 }
 0x5a0   :  { %v1525_v62 = vpack.c.bf16 %v1512_v43, %v1512_v43 }
 0x5a4   :  { %2297 = vmatmul.mubr.msk.bf16.gmra.mrb[76].mxu0 %vm1099_vm3, %v1525_v62 }
 0x5ce   :  { %v1622_v24 = vpop.f32.mrb[28].mxu0 }
 0x5cf   :  { %v1623_v6 = vadd.f32 %v3856_v44, %v1622_v24  ;;  %v2250_v29 = vpop.f32.mrb[29].mxu0 }
 0x5d0   :  { %v1625_v52 = vpop.f32.mrb[30].mxu0 }
 0x5d1   :  { %v1626_v12 = vadd.f32 %v3856_v44, %v1625_v52  ;;  %v2251_v60 = vpop.f32.mrb[31].mxu0  ;;  %2438 = vtanh.f32 %v1623_v6 }
 0x5d3   :  { %2440 = vtanh.f32 %v1626_v12 }
 0x5d6   :  { %v1630_v58 = vpop.f32.mrb[32].mxu0 }
 0x5d7   :  { %v1631_v27 = vadd.f32 %v3856_v44, %v1630_v58  ;;  %v2254_v0 = vpop.f32.mrb[33].mxu0 }
 0x5d8   :  { %v1633_v55 = vpop.f32.mrb[34].mxu0 }
 0x5d9   :  { %v1634_v56 = vadd.f32 %v3856_v44, %v1633_v55  ;;  %v2255_v9 = vpop.f32.mrb[35].mxu0  ;;  %2442 = vtanh.f32 %v1631_v27 }
 0x5db   :  { %2444 = vtanh.f32 %v1634_v56  ;;  %v2439_v30 = vpop.eup %2438 }
 0x5dd   :  { %v2441_v39 = vpop.eup %2440 }
 0x5de   :  { %v2016_v21 = vpack.c.bf16 %v2441_v39, %v2439_v30  ;;  %v1638_v49 = vpop.f32.mrb[36].mxu0 }
 0x5df   :  { %v1639_v2 = vadd.f32 %v3856_v44, %v1638_v49  ;;  %v2258_v5 = vpop.f32.mrb[37].mxu0 }
 0x5e0   :  { %2017 = vst [vmem:[#allocation20] sm:$0xff] %v2016_v21   ;;  %v1641_v59 = vpop.f32.mrb[38].mxu0 }
 0x5e1   :  { %v1642_v38 = vadd.f32 %v3856_v44, %v1641_v59  ;;  %v2259_v18 = vpop.f32.mrb[39].mxu0  ;;  %2446 = vtanh.f32 %v1639_v2 }
 0x5e3   :  { %2448 = vtanh.f32 %v1642_v38  ;;  %v2443_v32 = vpop.eup %2442 }
 0x5e5   :  { %v2445_v48 = vpop.eup %2444 }
 0x5e6   :  { %v2021_v41 = vpack.c.bf16 %v2445_v48, %v2443_v32  ;;  %v1646_v20 = vpop.f32.mrb[40].mxu0 }
 0x5e7   :  { %v1647_v33 = vadd.f32 %v3856_v44, %v1646_v20  ;;  %v2262_v46 = vpop.f32.mrb[41].mxu0 }
 0x5e8   :  { %2073 = vst [vmem:[#allocation20 + $0x8] sm:$0xff] %v2021_v41   ;;  %v1649_v10 = vpop.f32.mrb[42].mxu0 }
 0x5e9   :  { %v1650_v11 = vadd.f32 %v3856_v44, %v1649_v10  ;;  %v2263_v47 = vpop.f32.mrb[43].mxu0  ;;  %2450 = vtanh.f32 %v1647_v33 }
 0x5eb   :  { %2452 = vtanh.f32 %v1650_v11  ;;  %v2447_v53 = vpop.eup %2446 }
 0x5ed   :  { %v2449_v50 = vpop.eup %2448 }
 0x5ee   :  { %v2026_v31 = vpack.c.bf16 %v2449_v50, %v2447_v53  ;;  %v1654_v1 = vpop.f32.mrb[44].mxu0 }
 0x5ef   :  { %v1655_v45 = vadd.f32 %v3856_v44, %v1654_v1  ;;  %v2266_v7 = vpop.f32.mrb[45].mxu0 }
 0x5f0   :  { %2074 = vst [vmem:[#allocation20 + $0x10] sm:$0xff] %v2026_v31   ;;  %v1657_v34 = vpop.f32.mrb[46].mxu0 }
 0x5f1   :  { %v1658_v16 = vadd.f32 %v3856_v44, %v1657_v34  ;;  %v2267_v40 = vpop.f32.mrb[47].mxu0  ;;  %2454 = vtanh.f32 %v1655_v45 }
 0x5f3   :  { %2456 = vtanh.f32 %v1658_v16  ;;  %v2451_v22 = vpop.eup %2450 }
 0x5f5   :  { %v2453_v8 = vpop.eup %2452 }
 0x5f6   :  { %v2031_v42 = vpack.c.bf16 %v2453_v8, %v2451_v22  ;;  %v1662_v35 = vpop.f32.mrb[48].mxu0 }
 0x5f7   :  { %v1663_v14 = vadd.f32 %v3856_v44, %v1662_v35  ;;  %v2270_v23 = vpop.f32.mrb[49].mxu0 }
 0x5f8   :  { %2075 = vst [vmem:[#allocation20 + $0x18] sm:$0xff] %v2031_v42   ;;  %v1665_v25 = vpop.f32.mrb[50].mxu0 }
 0x5f9   :  { %v1666_v26 = vadd.f32 %v3856_v44, %v1665_v25  ;;  %v2271_v15 = vpop.f32.mrb[51].mxu0  ;;  %2458 = vtanh.f32 %v1663_v14 }
 0x5fb   :  { %2460 = vtanh.f32 %v1666_v26  ;;  %v2455_v3 = vpop.eup %2454 }
 0x5fd   :  { %v2457_v51 = vpop.eup %2456 }
 0x5fe   :  { %v2036_v19 = vpack.c.bf16 %v2457_v51, %v2455_v3  ;;  %v1670_v61 = vpop.f32.mrb[52].mxu0 }
 0x5ff   :  { %v1671_v36 = vadd.f32 %v3856_v44, %v1670_v61  ;;  %v2274_v13 = vpop.f32.mrb[53].mxu0 }
 0x600   :  { %2076 = vst [vmem:[#allocation20 + $0x20] sm:$0xff] %v2036_v19   ;;  %v1673_v4 = vpop.f32.mrb[54].mxu0 }
 0x601   :  { %v1674_v54 = vadd.f32 %v3856_v44, %v1673_v4  ;;  %v2275_v28 = vpop.f32.mrb[55].mxu0  ;;  %2462 = vtanh.f32 %v1671_v36 }
 0x603   :  { %2464 = vtanh.f32 %v1674_v54  ;;  %v2459_v63 = vpop.eup %2458 }
 0x605   :  { %v2461_v17 = vpop.eup %2460 }
 0x606   :  { %v2041_v37 = vpack.c.bf16 %v2461_v17, %v2459_v63  ;;  %v1678_v57 = vpop.f32.mrb[56].mxu0 }
 0x607   :  { %v1679_v43 = vadd.f32 %v3856_v44, %v1678_v57  ;;  %v2278_v62 = vpop.f32.mrb[57].mxu0 }
 0x608   :  { %2077 = vst [vmem:[#allocation20 + $0x28] sm:$0xff] %v2041_v37   ;;  %v1681_v24 = vpop.f32.mrb[58].mxu0 }
 0x609   :  { %v1682_v6 = vadd.f32 %v3856_v44, %v1681_v24  ;;  %v2279_v29 = vpop.f32.mrb[59].mxu0  ;;  %2466 = vtanh.f32 %v1679_v43 }
 0x60b   :  { %2468 = vtanh.f32 %v1682_v6  ;;  %v2463_v52 = vpop.eup %2462 }
 0x60d   :  { %v2465_v12 = vpop.eup %2464 }
 0x60e   :  { %v2046_v60 = vpack.c.bf16 %v2465_v12, %v2463_v52  ;;  %v1686_v58 = vpop.f32.mrb[60].mxu0 }
 0x60f   :  { %v1687_v27 = vadd.f32 %v3856_v44, %v1686_v58  ;;  %v2282_v0 = vpop.f32.mrb[61].mxu0 }
 0x610   :  { %2078 = vst [vmem:[#allocation20 + $0x30] sm:$0xff] %v2046_v60   ;;  %v1689_v55 = vpop.f32.mrb[62].mxu0 }
 0x611   :  { %v1690_v56 = vadd.f32 %v3856_v44, %v1689_v55  ;;  %v2283_v9 = vpop.f32.mrb[63].mxu0  ;;  %2470 = vtanh.f32 %v1687_v27 }
 0x613   :  { %2472 = vtanh.f32 %v1690_v56  ;;  %v2467_v30 = vpop.eup %2466 }
 0x615   :  { %v2469_v39 = vpop.eup %2468 }
 0x616   :  { %v2051_v21 = vpack.c.bf16 %v2469_v39, %v2467_v30  ;;  %v1694_v49 = vpop.f32.mrb[64].mxu0 }
 0x617   :  { %v1695_v2 = vadd.f32 %v3856_v44, %v1694_v49  ;;  %v2286_v5 = vpop.f32.mrb[65].mxu0 }
 0x618   :  { %2079 = vst [vmem:[#allocation20 + $0x38] sm:$0xff] %v2051_v21   ;;  %v1697_v59 = vpop.f32.mrb[66].mxu0 }
 0x619   :  { %v1698_v38 = vadd.f32 %v3856_v44, %v1697_v59  ;;  %v2287_v18 = vpop.f32.mrb[67].mxu0  ;;  %2474 = vtanh.f32 %v1695_v2 }
 0x61b   :  { %2476 = vtanh.f32 %v1698_v38  ;;  %v2471_v32 = vpop.eup %2470 }
 0x61d   :  { %v2473_v48 = vpop.eup %2472 }
 0x61e   :  { %v2056_v41 = vpack.c.bf16 %v2473_v48, %v2471_v32 }
 0x620   :  { %2080 = vst [vmem:[#allocation20 + $0x40] sm:$0xff] %v2056_v41  }
 0x623   :  { %v2475_v20 = vpop.eup %2474 }
 0x625   :  { %v2477_v33 = vpop.eup %2476 }
 0x626   :  { %v2061_v46 = vpack.c.bf16 %v2477_v33, %v2475_v20 }
 0x628   :  { %2081 = vst [vmem:[#allocation20 + $0x48] sm:$0xff] %v2061_v46  }
 0x667   :  { %v1702_v10 = vpop.f32.mrb[68].mxu0 }
 0x668   :  { %v1703_v11 = vadd.f32 %v3856_v44, %v1702_v10  ;;  %v2290_v47 = vpop.f32.mrb[69].mxu0 }
 0x669   :  { %v1705_v53 = vpop.f32.mrb[70].mxu0 }
 0x66a   :  { %v1706_v50 = vadd.f32 %v3856_v44, %v1705_v53  ;;  %v2291_v31 = vpop.f32.mrb[71].mxu0  ;;  %2478 = vtanh.f32 %v1703_v11 }
 0x66c   :  { %2480 = vtanh.f32 %v1706_v50 }
 0x66f   :  { %v1710_v1 = vpop.f32.mrb[72].mxu0 }
 0x670   :  { %v1711_v45 = vadd.f32 %v3856_v44, %v1710_v1  ;;  %v2294_v7 = vpop.f32.mrb[73].mxu0 }
 0x671   :  { %v1713_v34 = vpop.f32.mrb[74].mxu0 }
 0x672   :  { %v1714_v16 = vadd.f32 %v3856_v44, %v1713_v34  ;;  %v2295_v40 = vpop.f32.mrb[75].mxu0  ;;  %2482 = vtanh.f32 %v1711_v45 }
 0x674   :  { %2484 = vtanh.f32 %v1714_v16  ;;  %v2479_v22 = vpop.eup %2478 }
 0x676   :  { %v2481_v8 = vpop.eup %2480 }
 0x677   :  { %v2066_v42 = vpack.c.bf16 %v2481_v8, %v2479_v22  ;;  %v1718_v35 = vpop.f32.mrb[76].mxu0 }
 0x678   :  { %v1719_v14 = vadd.f32 %v3856_v44, %v1718_v35  ;;  %v2298_v23 = vpop.f32.mrb[77].mxu0 }
 0x679   :  { %2082 = vst [vmem:[#allocation20 + $0x50] sm:$0xff] %v2066_v42   ;;  %v1721_v25 = vpop.f32.mrb[78].mxu0 }
 0x67a   :  { %2486 = vtanh.f32 %v1719_v14  ;;  %v2299_v26 = vpop.f32.mrb[79].mxu0 }
 0x67c   :  { %v2483_v15 = vpop.eup %2482 }
 0x67e   :  { %v2485_v3 = vpop.eup %2484 }
 0x67f   :  { %v2071_v51 = vpack.c.bf16 %v2485_v3, %v2483_v15 }
 0x681   :  { %2083 = vst [vmem:[#allocation20 + $0x58] sm:$0xff] %v2071_v51  }
 0x684   :  { %v2487_v19 = vpop.eup %2486 }
 0x685   :  { %v2012_v61 = vpack.c.bf16 %v2487_v19, %v2487_v19 }
 0x687   :  { %1874 = vst [vmem:[#allocation20 + $0x60] sm:$0xf] %v2012_v61 }
 0x688   :  { %2741 = shalt.err (!%p2738_p8)
}
 0x689   :  { %s2742_s13 = scalar_lea.hbm %s3909_s11, 1600 }
 0x68a   :  { %p2743_p9 = scmp.ne.s32.totalorder %s3909_s11, %s2742_s13  ;;  %p2746_p10 = scmp.lt.u32.totalorder %s2742_s13, %s3909_s11 }
 0x68c   :  { %p2748_p11 = pnand %p2746_p10, %p2743_p9 }
 0x68e   :  { %2751 = shalt.err (!%p2748_p11)
}
 0x68f   :  { %1886 = dma.vmem_to_hbm [thread:$0]  %s1881_s20, 1600, %s3909_s11, [#allocation4], %s2768_s29, %s2768_s29, %s2769_s30  }
 0x690   :  { %2764 = dma.done.wait [#allocation4], 1600  }
 0x691   :  { %2765 = vsyncadd [#allocation4], 4294965696 }
 0x692   :  { %1890 = vsyncpa [#allocation3], 1 }
 0x693   :  { %1891 = vsyncpa [#allocation6], 1 }
 0x694   :  { %1892 = vsyncpa [#allocation9], 1 }
 0x695   :  { %1893 = vsyncpa [#allocation12], 1 }
 0x696   :  { %1894 = vsyncpa [#allocation15], 1 }
 0x697   :  { %1895 = vsyncpa [#allocation18], 1 }
 0x698   :  { %1896 = vsyncpa [#allocation4], 1 }

</bundles_post_ra>
